<compile_context>
chip_gen: v7x
topology: tpu7x:2x2x1
jax: 0.10.0
libtpu: 0.0.40
codegen_flags: <defaults>
</compile_context>

<pallas_src>
import jax
import jax.numpy as jnp
from jax.experimental import pallas as pl
from jax.experimental.pallas import tpu as pltpu

B = 2            # batch
C_IN = 3         # RGB input channels (what densenet161 expects)
H = W = 16       # small spatial size
HW = H * W
C_FEAT = 256     # stand-in for DenseNet-161's 2208-dim pooled feature width
FEAT_DIM = 1000  # densenet classifier output width (hooked)
FEAT_PAD = 1024  # per-head column stride (lane-tile aligned)
N_HEADS = 3
N_PAD = N_HEADS * FEAT_PAD   # 3072 fused classifier width
HEAD_DIMS = (3, 2, 3)        # mask, gender, age
CONCAT_DIM = sum(HEAD_DIMS)  # 8
EPS = 1e-5
TRUNK_CHUNK = 128            # spatial rows processed per trunk matmul

# small_pack row layout (lane width 128, f32, zero padded):
ROW_W1 = 0      # rows  0..7   : w1   (8, 50)
ROW_VEC = 8     # rows  8..15  : b1, g1, be1, b2, g2, be2, b3, hook_b
ROW_W2 = 16     # rows 16..65  : w2   (50, 100)
ROW_W3 = 72     # rows 72..171 : w3   (100, 18)
SMALL_ROWS = 176


# ------------------------------ Pallas kernel ------------------------------ #

def _bn_train(x, gamma, beta):
    """nn.BatchNorm1d forward, training mode (biased batch stats)."""
    if x.shape[0] == 2:
        # Exact B == 2 closed form: mu=(x0+x1)/2, x0-mu=d, x1-mu=-d, var=d^2.
        d = (x[0:1, :] - x[1:2, :]) * 0.5
        dn = d * jax.lax.rsqrt(d * d + EPS)
        return jnp.concatenate([dn, -dn], axis=0) * gamma + beta
    mu = jnp.mean(x, axis=0, keepdims=True)
    var = jnp.mean((x - mu) ** 2, axis=0, keepdims=True)
    return (x - mu) * jax.lax.rsqrt(var + EPS) * gamma + beta


def _fused_kernel(x_ref, wide_ref, hook_wt_ref, small_ref, cls_w_hbm_ref,
                  out_ref, cls_w_vmem, dma_sem):
    # Start streaming the dominant classifier weight (bf16, ~1.5 MiB) from HBM
    # into VMEM now; it is only needed after the trunk, so the transfer hides
    # under the trunk matmuls / pooling below.
    cls_cp = pltpu.make_async_copy(cls_w_hbm_ref, cls_w_vmem, dma_sem)
    cls_cp.start()

    conv_w = wide_ref[0:C_IN, 0:C_FEAT]            # (3, 256)

    # --- shared synthetic trunk: 1x1 conv + ReLU + adaptive_avg_pool2d((1,1))
    # Chunked over the HW positions so the (chunk, C_FEAT) intermediate stays
    # small (128x256 f32) instead of materializing the full 512 KiB feature
    # map; each chunk is matmul -> ReLU -> sublane reduction into a per-batch
    # (1, C_FEAT) accumulator.
    pooled_rows = []
    for b in range(B):
        xb = x_ref[b]                              # (C_IN, HW) = (3, 256)
        acc = jnp.zeros((1, C_FEAT), jnp.float32)
        for c in range(HW // TRUNK_CHUNK):
            xc = xb[:, c * TRUNK_CHUNK:(c + 1) * TRUNK_CHUNK]      # (3, 128)
            f = jax.lax.dot_general(
                xc, conv_w,
                dimension_numbers=(((0,), (0,)), ((), ())),
                preferred_element_type=jnp.float32)                # (128, 256)
            acc = acc + jnp.sum(jnp.maximum(f, 0.0), axis=0, keepdims=True)
        pooled_rows.append(acc)
    pooled = jnp.concatenate(pooled_rows, axis=0) * (1.0 / HW)     # (B, 256)

    # --- three densenet classifiers fused along N (bf16 weights, f32 acc) --- #
    cls_cp.wait()                                   # weight stream must be done
    cls_b = wide_ref[C_IN:C_IN + 1, :]              # (1, 3072)
    logits = jnp.dot(pooled.astype(jnp.bfloat16), cls_w_vmem[...],
                     preferred_element_type=jnp.float32) + cls_b   # (B, 3072)

    # --- forward hooks: fresh nn.BatchNorm1d(1000) (training mode) + Linear - #
    # Per-column BN over the batch; padded columns are exactly 0 for both rows
    # so they normalize to 0 and hit zero hook_wt rows (no contribution).
    if B == 2:
        d = (logits[0:1, :] - logits[1:2, :]) * 0.5
        dn = d * jax.lax.rsqrt(d * d + EPS)
        bn = jnp.concatenate([dn, -dn], axis=0)                    # (2, 3072)
    else:
        mu = jnp.mean(logits, axis=0, keepdims=True)
        var = jnp.mean((logits - mu) ** 2, axis=0, keepdims=True)
        bn = (logits - mu) * jax.lax.rsqrt(var + EPS)

    # Hook Linears(1000, {3,2,3}) packed block-diagonally, transposed (8, N):
    # one dim-1/dim-1 contraction over the 3072 lanes gives the concatenated
    # (B, 8).  (Kept in this proven orientation; (N, 8) storage would lane-pad
    # 8 -> 128 and inflate the operand ~16x.)
    vecs = small_ref[ROW_VEC:ROW_VEC + 8, :]        # (8, 128) bias/BN rows
    hook_b = vecs[7:8, 0:CONCAT_DIM]                # (1, 8)
    concat8 = jax.lax.dot_general(
        bn.astype(jnp.bfloat16), hook_wt_ref[...],
        dimension_numbers=(((1,), (1,)), ((), ())),
        preferred_element_type=jnp.float32) + hook_b               # (B, 8)

    # --- final classifier: Linear(8,50)-BN-ReLU-Linear(50,100)-BN-ReLU-Linear(100,18)
    w1 = small_ref[ROW_W1:ROW_W1 + CONCAT_DIM, 0:50]
    b1, g1, be1 = vecs[0:1, 0:50], vecs[1:2, 0:50], vecs[2:3, 0:50]
    h = jnp.dot(concat8, w1, preferred_element_type=jnp.float32) + b1
    h = jnp.maximum(_bn_train(h, g1, be1), 0.0)

    w2 = small_ref[ROW_W2:ROW_W2 + 50, 0:100]
    b2, g2, be2 = vecs[3:4, 0:100], vecs[4:5, 0:100], vecs[5:6, 0:100]
    h = jnp.dot(h, w2, preferred_element_type=jnp.float32) + b2
    h = jnp.maximum(_bn_train(h, g2, be2), 0.0)

    w3 = small_ref[ROW_W3:ROW_W3 + 100, 0:18]
    b3 = vecs[6:7, 0:18]
    out_ref[...] = (jnp.dot(h, w3, preferred_element_type=jnp.float32) + b3)


# --------------------------------- wrapper --------------------------------- #

@jax.jit
def mask_densenet_three_head(x_nchw, params):
    cls_w, wide_pack, hook_wt, small_pack = params
    # NCHW -> (B, C_IN, H*W): a contiguous-merge reshape (no transpose, no
    # separate copy kernel).
    x3 = x_nchw.reshape(B, C_IN, HW)

    vmem = pl.BlockSpec(memory_space=pltpu.MemorySpace.VMEM)
    call = pl.pallas_call(
        _fused_kernel,
        out_shape=jax.ShapeDtypeStruct((B, 18), jnp.float32),
        in_specs=[vmem, vmem, vmem, vmem,
                  pl.BlockSpec(memory_space=pl.ANY)],   # cls_w: manual DMA
        out_specs=vmem,
        scratch_shapes=[pltpu.VMEM((C_FEAT, N_PAD), jnp.bfloat16),
                        pltpu.SemaphoreType.DMA],
    )
    return call(x3, wide_pack, hook_wt, small_pack, cls_w)


# ------------------------- deterministic parameters ------------------------ #

def _linear_params(key, fan_in, fan_out):
    """PyTorch nn.Linear default init: U(-1/sqrt(fan_in), 1/sqrt(fan_in))."""
    kw, kb = jax.random.split(key)
    bound = 1.0 / (fan_in ** 0.5)
    w = jax.random.uniform(kw, (fan_in, fan_out), jnp.float32, -bound, bound)
    b = jax.random.uniform(kb, (fan_out,), jnp.float32, -bound, bound)
    return w, b


def make_params(key):
    k_conv, k_cls, k_hook, k_head = jax.random.split(key, 4)

    # Shared synthetic trunk (the three pretrained densenet trunks are identical).
    bound = 1.0 / (C_IN ** 0.5)
    conv_w = jax.random.uniform(k_conv, (C_IN, C_FEAT), jnp.float32, -bound, bound)

    # Three classifier Linears(C_FEAT, 1000), head i at columns
    # [i*1024, i*1024+1000); stored bf16 (HBM traffic halved vs f32).
    cls_w = jnp.zeros((C_FEAT, N_PAD), jnp.float32)
    cls_b = jnp.zeros((N_PAD,), jnp.float32)
    for i, k in enumerate(jax.random.split(k_cls, N_HEADS)):
        w, b = _linear_params(k, C_FEAT, FEAT_DIM)
        cls_w = cls_w.at[:, i * FEAT_PAD:i * FEAT_PAD + FEAT_DIM].set(w)
        cls_b = cls_b.at[i * FEAT_PAD:i * FEAT_PAD + FEAT_DIM].set(b)
    cls_w = cls_w.astype(jnp.bfloat16)

    # wide_pack: rows 0..2 = conv_w (cols 0..255), row 3 = fused cls_b.
    wide_pack = jnp.zeros((C_IN + 1, N_PAD), jnp.float32)
    wide_pack = wide_pack.at[0:C_IN, 0:C_FEAT].set(conv_w)
    wide_pack = wide_pack.at[C_IN, :].set(cls_b)

    # Three hook Linears(1000, {3,2,3}) packed block-diagonally, transposed
    # (8, 3072), bf16; hook biases go into small_pack.
    hook_wt = jnp.zeros((CONCAT_DIM, N_PAD), jnp.float32)
    hook_b = jnp.zeros((CONCAT_DIM,), jnp.float32)
    off = 0
    for i, (k, odim) in enumerate(zip(jax.random.split(k_hook, N_HEADS), HEAD_DIMS)):
        w, b = _linear_params(k, FEAT_DIM, odim)
        hook_wt = hook_wt.at[off:off + odim,
                             i * FEAT_PAD:i * FEAT_PAD + FEAT_DIM].set(w.T)
        hook_b = hook_b.at[off:off + odim].set(b)
        off += odim
    hook_wt = hook_wt.astype(jnp.bfloat16)

    # Final classifier head, packed into one (SMALL_ROWS, 128) f32 buffer.
    k1, k2, k3 = jax.random.split(k_head, 3)
    w1, b1 = _linear_params(k1, CONCAT_DIM, 50)
    w2, b2 = _linear_params(k2, 50, 100)
    w3, b3 = _linear_params(k3, 100, 18)

    small = jnp.zeros((SMALL_ROWS, 128), jnp.float32)
    small = small.at[ROW_W1:ROW_W1 + CONCAT_DIM, 0:50].set(w1)
    small = small.at[ROW_VEC + 0, 0:50].set(b1)
    small = small.at[ROW_VEC + 1, 0:50].set(jnp.ones((50,), jnp.float32))    # g1
    # be1 (row ROW_VEC+2) stays zero.
    small = small.at[ROW_VEC + 3, 0:100].set(b2)
    small = small.at[ROW_VEC + 4, 0:100].set(jnp.ones((100,), jnp.float32))  # g2
    # be2 (row ROW_VEC+5) stays zero.
    small = small.at[ROW_VEC + 6, 0:18].set(b3)
    small = small.at[ROW_VEC + 7, 0:CONCAT_DIM].set(hook_b)
    small = small.at[ROW_W2:ROW_W2 + 50, 0:100].set(w2)
    small = small.at[ROW_W3:ROW_W3 + 100, 0:18].set(w3)

    return (cls_w, wide_pack, hook_wt, small)


if __name__ == "__main__":
    x = jax.random.normal(jax.random.PRNGKey(0), (B, C_IN, H, W), jnp.float32)
    params = make_params(jax.random.PRNGKey(42))

    out = mask_densenet_three_head(x, params)
    out = jax.block_until_ready(out)
    assert out.shape == (B, 18) and out.dtype == jnp.float32
    assert bool(jnp.all(jnp.isfinite(out)))
    print("KERNEL_OK")
</pallas_src>

<mosaic_0001>
module attributes {stable_mosaic.version = 11 : i64} {
  func.func @_fused_kernel(%arg0: memref<2x3x256xf32, #tpu.memory_space<vmem>>, %arg1: memref<4x3072xf32, #tpu.memory_space<vmem>>, %arg2: memref<8x3072xbf16, #tpu.memory_space<vmem>>, %arg3: memref<176x128xf32, #tpu.memory_space<vmem>>, %arg4: memref<256x3072xbf16, #tpu.memory_space<any>>, %arg5: memref<2x18xf32, #tpu.memory_space<vmem>>, %arg6: memref<256x3072xbf16, #tpu.memory_space<vmem>>, %arg7: memref<!tpu.dma_semaphore, #tpu.memory_space<semaphore_mem>>) attributes {dimension_semantics = [], scalar_prefetch = 0 : i64, scratch_operands = 2 : i64, tpu.core_type = #tpu.core_type<tc>} {
    tpu.enqueue_dma source(%arg4 : memref<256x3072xbf16, #tpu.memory_space<any>>) target(%arg6 : memref<256x3072xbf16, #tpu.memory_space<vmem>>) target_semaphore(%arg7 : memref<!tpu.dma_semaphore, #tpu.memory_space<semaphore_mem>>)
    %c0 = arith.constant 0 : index
    %c0_0 = arith.constant 0 : index
    %0 = vector.load %arg1[%c0, %c0_0] : memref<4x3072xf32, #tpu.memory_space<vmem>>, vector<3x256xf32>
    %c0_1 = arith.constant 0 : index
    %c0_2 = arith.constant 0 : index
    %c0_3 = arith.constant 0 : index
    %1 = vector.load %arg0[%c0_1, %c0_2, %c0_3] : memref<2x3x256xf32, #tpu.memory_space<vmem>>, vector<1x3x256xf32>
    %2 = vector.shape_cast %1 : vector<1x3x256xf32> to vector<3x256xf32>
    %cst = arith.constant 0.000000e+00 : f32
    %3 = vector.broadcast %cst : f32 to vector<1x256xf32>
    %4 = vector.extract_strided_slice %2 {offsets = [0, 0], sizes = [3, 128], strides = [1, 1]} : vector<3x256xf32> to vector<3x128xf32>
    %cst_4 = arith.constant dense<0.000000e+00> : vector<128x256xf32>
    %5 = tpu.matmul %4, %0, %cst_4 {dimension_numbers = #tpu.dot_dimension_numbers<[0], [0], [1], [1], [0, 1, 1, 1], [], []>} : vector<3x128xf32>, vector<3x256xf32>, vector<128x256xf32> -> vector<128x256xf32>
    %cst_5 = arith.constant 0.000000e+00 : f32
    %6 = vector.broadcast %cst_5 : f32 to vector<128x256xf32>
    %7 = arith.maximumf %5, %6 : vector<128x256xf32>
    %cst_6 = arith.constant dense<0.000000e+00> : vector<256xf32>
    %8 = vector.multi_reduction <add>, %7, %cst_6 [0] : vector<128x256xf32> to vector<256xf32>
    %9 = vector.shape_cast %8 : vector<256xf32> to vector<1x256xf32>
    %10 = arith.addf %3, %9 : vector<1x256xf32>
    %11 = vector.extract_strided_slice %2 {offsets = [0, 128], sizes = [3, 128], strides = [1, 1]} : vector<3x256xf32> to vector<3x128xf32>
    %cst_7 = arith.constant dense<0.000000e+00> : vector<128x256xf32>
    %12 = tpu.matmul %11, %0, %cst_7 {dimension_numbers = #tpu.dot_dimension_numbers<[0], [0], [1], [1], [0, 1, 1, 1], [], []>} : vector<3x128xf32>, vector<3x256xf32>, vector<128x256xf32> -> vector<128x256xf32>
    %cst_8 = arith.constant 0.000000e+00 : f32
    %13 = vector.broadcast %cst_8 : f32 to vector<128x256xf32>
    %14 = arith.maximumf %12, %13 : vector<128x256xf32>
    %cst_9 = arith.constant dense<0.000000e+00> : vector<256xf32>
    %15 = vector.multi_reduction <add>, %14, %cst_9 [0] : vector<128x256xf32> to vector<256xf32>
    %16 = vector.shape_cast %15 : vector<256xf32> to vector<1x256xf32>
    %17 = arith.addf %10, %16 : vector<1x256xf32>
    %c1 = arith.constant 1 : index
    %c0_10 = arith.constant 0 : index
    %c0_11 = arith.constant 0 : index
    %18 = vector.load %arg0[%c1, %c0_10, %c0_11] : memref<2x3x256xf32, #tpu.memory_space<vmem>>, vector<1x3x256xf32>
    %19 = vector.shape_cast %18 : vector<1x3x256xf32> to vector<3x256xf32>
    %cst_12 = arith.constant 0.000000e+00 : f32
    %20 = vector.broadcast %cst_12 : f32 to vector<1x256xf32>
    %21 = vector.extract_strided_slice %19 {offsets = [0, 0], sizes = [3, 128], strides = [1, 1]} : vector<3x256xf32> to vector<3x128xf32>
    %cst_13 = arith.constant dense<0.000000e+00> : vector<128x256xf32>
    %22 = tpu.matmul %21, %0, %cst_13 {dimension_numbers = #tpu.dot_dimension_numbers<[0], [0], [1], [1], [0, 1, 1, 1], [], []>} : vector<3x128xf32>, vector<3x256xf32>, vector<128x256xf32> -> vector<128x256xf32>
    %cst_14 = arith.constant 0.000000e+00 : f32
    %23 = vector.broadcast %cst_14 : f32 to vector<128x256xf32>
    %24 = arith.maximumf %22, %23 : vector<128x256xf32>
    %cst_15 = arith.constant dense<0.000000e+00> : vector<256xf32>
    %25 = vector.multi_reduction <add>, %24, %cst_15 [0] : vector<128x256xf32> to vector<256xf32>
    %26 = vector.shape_cast %25 : vector<256xf32> to vector<1x256xf32>
    %27 = arith.addf %20, %26 : vector<1x256xf32>
    %28 = vector.extract_strided_slice %19 {offsets = [0, 128], sizes = [3, 128], strides = [1, 1]} : vector<3x256xf32> to vector<3x128xf32>
    %cst_16 = arith.constant dense<0.000000e+00> : vector<128x256xf32>
    %29 = tpu.matmul %28, %0, %cst_16 {dimension_numbers = #tpu.dot_dimension_numbers<[0], [0], [1], [1], [0, 1, 1, 1], [], []>} : vector<3x128xf32>, vector<3x256xf32>, vector<128x256xf32> -> vector<128x256xf32>
    %cst_17 = arith.constant 0.000000e+00 : f32
    %30 = vector.broadcast %cst_17 : f32 to vector<128x256xf32>
    %31 = arith.maximumf %29, %30 : vector<128x256xf32>
    %cst_18 = arith.constant dense<0.000000e+00> : vector<256xf32>
    %32 = vector.multi_reduction <add>, %31, %cst_18 [0] : vector<128x256xf32> to vector<256xf32>
    %33 = vector.shape_cast %32 : vector<256xf32> to vector<1x256xf32>
    %34 = arith.addf %27, %33 : vector<1x256xf32>
    %35 = tpu.concatenate %17, %34 in 0 : vector<1x256xf32>, vector<1x256xf32> -> vector<2x256xf32>
    %cst_19 = arith.constant 3.906250e-03 : f32
    %36 = vector.broadcast %cst_19 : f32 to vector<2x256xf32>
    %37 = arith.mulf %35, %36 : vector<2x256xf32>
    tpu.wait_dma2 semaphore(%arg7 : memref<!tpu.dma_semaphore, #tpu.memory_space<semaphore_mem>>) src(%arg4 : memref<256x3072xbf16, #tpu.memory_space<any>>) dst(%arg6 : memref<256x3072xbf16, #tpu.memory_space<vmem>>)
    %c3 = arith.constant 3 : index
    %c0_20 = arith.constant 0 : index
    %38 = vector.load %arg1[%c3, %c0_20] : memref<4x3072xf32, #tpu.memory_space<vmem>>, vector<1x3072xf32>
    %39 = arith.truncf %37 : vector<2x256xf32> to vector<2x256xbf16>
    %c0_21 = arith.constant 0 : index
    %c0_22 = arith.constant 0 : index
    %40 = vector.load %arg6[%c0_21, %c0_22] : memref<256x3072xbf16, #tpu.memory_space<vmem>>, vector<256x3072xbf16>
    %cst_23 = arith.constant dense<0.000000e+00> : vector<2x3072xf32>
    %41 = tpu.matmul %39, %40, %cst_23 {dimension_numbers = #tpu.dot_dimension_numbers<[1], [0], [0], [1], [0, 0, 1, 1], [], []>} : vector<2x256xbf16>, vector<256x3072xbf16>, vector<2x3072xf32> -> vector<2x3072xf32>
    %42 = vector.broadcast %38 : vector<1x3072xf32> to vector<2x3072xf32>
    %43 = arith.addf %41, %42 : vector<2x3072xf32>
    %44 = vector.extract_strided_slice %43 {offsets = [0, 0], sizes = [1, 3072], strides = [1, 1]} : vector<2x3072xf32> to vector<1x3072xf32>
    %45 = vector.extract_strided_slice %43 {offsets = [1, 0], sizes = [1, 3072], strides = [1, 1]} : vector<2x3072xf32> to vector<1x3072xf32>
    %46 = arith.subf %44, %45 : vector<1x3072xf32>
    %cst_24 = arith.constant 5.000000e-01 : f32
    %47 = vector.broadcast %cst_24 : f32 to vector<1x3072xf32>
    %48 = arith.mulf %46, %47 : vector<1x3072xf32>
    %49 = arith.mulf %48, %48 : vector<1x3072xf32>
    %cst_25 = arith.constant 9.99999974E-6 : f32
    %50 = vector.broadcast %cst_25 : f32 to vector<1x3072xf32>
    %51 = arith.addf %49, %50 : vector<1x3072xf32>
    %52 = math.rsqrt %51 : vector<1x3072xf32>
    %53 = arith.mulf %48, %52 : vector<1x3072xf32>
    %cst_26 = arith.constant 0.000000e+00 : f32
    %54 = vector.broadcast %cst_26 : f32 to vector<1x3072xf32>
    %55 = arith.subf %54, %53 : vector<1x3072xf32>
    %56 = tpu.concatenate %53, %55 in 0 : vector<1x3072xf32>, vector<1x3072xf32> -> vector<2x3072xf32>
    %c8 = arith.constant 8 : index
    %c0_27 = arith.constant 0 : index
    %57 = vector.load %arg3[%c8, %c0_27] : memref<176x128xf32, #tpu.memory_space<vmem>>, vector<8x128xf32>
    %58 = vector.extract_strided_slice %57 {offsets = [7, 0], sizes = [1, 8], strides = [1, 1]} : vector<8x128xf32> to vector<1x8xf32>
    %59 = arith.truncf %56 : vector<2x3072xf32> to vector<2x3072xbf16>
    %c0_28 = arith.constant 0 : index
    %c0_29 = arith.constant 0 : index
    %60 = vector.load %arg2[%c0_28, %c0_29] : memref<8x3072xbf16, #tpu.memory_space<vmem>>, vector<8x3072xbf16>
    %cst_30 = arith.constant dense<0.000000e+00> : vector<2x8xf32>
    %61 = tpu.matmul %59, %60, %cst_30 {dimension_numbers = #tpu.dot_dimension_numbers<[1], [1], [0], [0], [0, 0, 1, 0], [], []>} : vector<2x3072xbf16>, vector<8x3072xbf16>, vector<2x8xf32> -> vector<2x8xf32>
    %62 = vector.broadcast %58 : vector<1x8xf32> to vector<2x8xf32>
    %63 = arith.addf %61, %62 : vector<2x8xf32>
    %c0_31 = arith.constant 0 : index
    %c0_32 = arith.constant 0 : index
    %64 = vector.load %arg3[%c0_31, %c0_32] : memref<176x128xf32, #tpu.memory_space<vmem>>, vector<8x50xf32>
    %65 = vector.extract_strided_slice %57 {offsets = [0, 0], sizes = [1, 50], strides = [1, 1]} : vector<8x128xf32> to vector<1x50xf32>
    %66 = vector.extract_strided_slice %57 {offsets = [1, 0], sizes = [1, 50], strides = [1, 1]} : vector<8x128xf32> to vector<1x50xf32>
    %67 = vector.extract_strided_slice %57 {offsets = [2, 0], sizes = [1, 50], strides = [1, 1]} : vector<8x128xf32> to vector<1x50xf32>
    %cst_33 = arith.constant dense<0.000000e+00> : vector<2x50xf32>
    %68 = tpu.matmul %63, %64, %cst_33 {dimension_numbers = #tpu.dot_dimension_numbers<[1], [0], [0], [1], [0, 0, 1, 1], [], []>} : vector<2x8xf32>, vector<8x50xf32>, vector<2x50xf32> -> vector<2x50xf32>
    %69 = vector.broadcast %65 : vector<1x50xf32> to vector<2x50xf32>
    %70 = arith.addf %68, %69 : vector<2x50xf32>
    %71 = vector.extract_strided_slice %70 {offsets = [0, 0], sizes = [1, 50], strides = [1, 1]} : vector<2x50xf32> to vector<1x50xf32>
    %72 = vector.extract_strided_slice %70 {offsets = [1, 0], sizes = [1, 50], strides = [1, 1]} : vector<2x50xf32> to vector<1x50xf32>
    %73 = arith.subf %71, %72 : vector<1x50xf32>
    %cst_34 = arith.constant 5.000000e-01 : f32
    %74 = vector.broadcast %cst_34 : f32 to vector<1x50xf32>
    %75 = arith.mulf %73, %74 : vector<1x50xf32>
    %76 = arith.mulf %75, %75 : vector<1x50xf32>
    %cst_35 = arith.constant 9.99999974E-6 : f32
    %77 = vector.broadcast %cst_35 : f32 to vector<1x50xf32>
    %78 = arith.addf %76, %77 : vector<1x50xf32>
    %79 = math.rsqrt %78 : vector<1x50xf32>
    %80 = arith.mulf %75, %79 : vector<1x50xf32>
    %cst_36 = arith.constant 0.000000e+00 : f32
    %81 = vector.broadcast %cst_36 : f32 to vector<1x50xf32>
    %82 = arith.subf %81, %80 : vector<1x50xf32>
    %83 = tpu.concatenate %80, %82 in 0 : vector<1x50xf32>, vector<1x50xf32> -> vector<2x50xf32>
    %84 = vector.broadcast %66 : vector<1x50xf32> to vector<2x50xf32>
    %85 = arith.mulf %83, %84 : vector<2x50xf32>
    %86 = vector.broadcast %67 : vector<1x50xf32> to vector<2x50xf32>
    %87 = arith.addf %85, %86 : vector<2x50xf32>
    %cst_37 = arith.constant 0.000000e+00 : f32
    %88 = vector.broadcast %cst_37 : f32 to vector<2x50xf32>
    %89 = arith.maximumf %87, %88 : vector<2x50xf32>
    %c16 = arith.constant 16 : index
    %c0_38 = arith.constant 0 : index
    %90 = vector.load %arg3[%c16, %c0_38] : memref<176x128xf32, #tpu.memory_space<vmem>>, vector<50x100xf32>
    %91 = vector.extract_strided_slice %57 {offsets = [3, 0], sizes = [1, 100], strides = [1, 1]} : vector<8x128xf32> to vector<1x100xf32>
    %92 = vector.extract_strided_slice %57 {offsets = [4, 0], sizes = [1, 100], strides = [1, 1]} : vector<8x128xf32> to vector<1x100xf32>
    %93 = vector.extract_strided_slice %57 {offsets = [5, 0], sizes = [1, 100], strides = [1, 1]} : vector<8x128xf32> to vector<1x100xf32>
    %cst_39 = arith.constant dense<0.000000e+00> : vector<2x100xf32>
    %94 = tpu.matmul %89, %90, %cst_39 {dimension_numbers = #tpu.dot_dimension_numbers<[1], [0], [0], [1], [0, 0, 1, 1], [], []>} : vector<2x50xf32>, vector<50x100xf32>, vector<2x100xf32> -> vector<2x100xf32>
    %95 = vector.broadcast %91 : vector<1x100xf32> to vector<2x100xf32>
    %96 = arith.addf %94, %95 : vector<2x100xf32>
    %97 = vector.extract_strided_slice %96 {offsets = [0, 0], sizes = [1, 100], strides = [1, 1]} : vector<2x100xf32> to vector<1x100xf32>
    %98 = vector.extract_strided_slice %96 {offsets = [1, 0], sizes = [1, 100], strides = [1, 1]} : vector<2x100xf32> to vector<1x100xf32>
    %99 = arith.subf %97, %98 : vector<1x100xf32>
    %cst_40 = arith.constant 5.000000e-01 : f32
    %100 = vector.broadcast %cst_40 : f32 to vector<1x100xf32>
    %101 = arith.mulf %99, %100 : vector<1x100xf32>
    %102 = arith.mulf %101, %101 : vector<1x100xf32>
    %cst_41 = arith.constant 9.99999974E-6 : f32
    %103 = vector.broadcast %cst_41 : f32 to vector<1x100xf32>
    %104 = arith.addf %102, %103 : vector<1x100xf32>
    %105 = math.rsqrt %104 : vector<1x100xf32>
    %106 = arith.mulf %101, %105 : vector<1x100xf32>
    %cst_42 = arith.constant 0.000000e+00 : f32
    %107 = vector.broadcast %cst_42 : f32 to vector<1x100xf32>
    %108 = arith.subf %107, %106 : vector<1x100xf32>
    %109 = tpu.concatenate %106, %108 in 0 : vector<1x100xf32>, vector<1x100xf32> -> vector<2x100xf32>
    %110 = vector.broadcast %92 : vector<1x100xf32> to vector<2x100xf32>
    %111 = arith.mulf %109, %110 : vector<2x100xf32>
    %112 = vector.broadcast %93 : vector<1x100xf32> to vector<2x100xf32>
    %113 = arith.addf %111, %112 : vector<2x100xf32>
    %cst_43 = arith.constant 0.000000e+00 : f32
    %114 = vector.broadcast %cst_43 : f32 to vector<2x100xf32>
    %115 = arith.maximumf %113, %114 : vector<2x100xf32>
    %c72 = arith.constant 72 : index
    %c0_44 = arith.constant 0 : index
    %116 = vector.load %arg3[%c72, %c0_44] : memref<176x128xf32, #tpu.memory_space<vmem>>, vector<100x18xf32>
    %117 = vector.extract_strided_slice %57 {offsets = [6, 0], sizes = [1, 18], strides = [1, 1]} : vector<8x128xf32> to vector<1x18xf32>
    %cst_45 = arith.constant dense<0.000000e+00> : vector<2x18xf32>
    %118 = tpu.matmul %115, %116, %cst_45 {dimension_numbers = #tpu.dot_dimension_numbers<[1], [0], [0], [1], [0, 0, 1, 1], [], []>} : vector<2x100xf32>, vector<100x18xf32>, vector<2x18xf32> -> vector<2x18xf32>
    %119 = vector.broadcast %117 : vector<1x18xf32> to vector<2x18xf32>
    %120 = arith.addf %118, %119 : vector<2x18xf32>
    %c0_46 = arith.constant 0 : index
    %c0_47 = arith.constant 0 : index
    %121 = vector.load %arg5[%c0_46, %c0_47] : memref<2x18xf32, #tpu.memory_space<vmem>>, vector<2x18xf32>
    tpu.vector_store %arg5[%c0_46, %c0_47], %120 {strides = array<i32>} : memref<2x18xf32, #tpu.memory_space<vmem>>, vector<2x18xf32>,
    return
  }
}

</mosaic_0001>

<bundles_post_ra>
// kernel: mask_densenet_three_head.1
= control target key start
LH: loop header
LB: loop body
LE: loop exit
PB: predicated region body
PF: predicated region fallthrough
CT: control target
= control target key end

     0   :  { %10 = vsyncpa [#allocation5], 0  ;;  %s4648_s0 = inlined_call_operand.vmem [shape: f32[2,3,256], index: 0, kind: input, shape index: {}]   ;;  %s4649_s1 = inlined_call_operand.hbm [shape: f32[4,3072], index: 1, kind: input, shape index: {}]   ;;  %s4650_s2 = inlined_call_operand.hbm [shape: bf16[8,3072], index: 2, kind: input, shape index: {}]   ;;  %s4651_s3 = inlined_call_operand.hbm [shape: f32[176,128], index: 3, kind: input, shape index: {}]   ;;  %s4652_s4 = inlined_call_operand.hbm [shape: bf16[256,3072], index: 4, kind: input, shape index: {}]   ;;  %s4653_s5 = inlined_call_operand.hbm [shape: f32[2,18], index: 5, kind: output, shape index: {}]  }
   0x1   :  { %11 = vsyncpa [#allocation8], 0 }
   0x2   :  { %12 = vsyncpa [#allocation6], 0  ;;  %s4119_s18 = smov [#allocation7]   ;;  %s4120_s20 = smov [#allocation4]  }
   0x3   :  { %s31_s19 = sshll.u32 %s4119_s18, 4  ;;  %s21_s21 = sshll.u32 %s4120_s20, 4  ;;  %s32_s19 = int_to_ptr.vmem [resolvable:$true] %s31_s19  ;;  %s22_s21 = int_to_ptr.vmem [resolvable:$true] %s21_s21 }
   0x4   :  { %s4023_s24 = scalar_lea.hbm %s4650_s2, 1536 }
   0x5   :  { %p4024_p0 = scmp.ne.s32.totalorder %s4650_s2, %s4023_s24  ;;  %p4027_p1 = scmp.lt.u32.totalorder %s4023_s24, %s4650_s2 }
   0x7   :  { %p4029_p2 = pnand %p4027_p1, %p4024_p0 }
   0x9   :  { %4032 = shalt.err (!%p4029_p2)
}
   0xa   :  { %s4033_s29 = scalar_lea.vmem %s32_s19, 1536  ;;  %p4038_p4 = scmp.lt.s32.totalorder %s32_s19, %s32_s19 }
   0xb   :  { %p4034_p3 = scmp.ne.s32.totalorder %s32_s19, %s4033_s29  ;;  %p4039_p5 = scmp.lt.s32.totalorder %s4033_s29, %s4033_s29 }
   0xd   :  { %p4040_p6 = por %p4039_p5, %p4038_p4 }
   0xf   :  { %p4041_p7 = pnand %p4040_p6, %p4034_p3 }
  0x11   :  { %4044 = shalt.err (!%p4041_p7)
}
  0x12   :  { %34 = dma.hbm_to_vmem [thread:$0]  %s4650_s2, 1536, %s32_s19, [#allocation8]  }
  0x13   :  { %s4045_s9 = scalar_lea.hbm %s4649_s1, 1536 }
  0x14   :  { %p4046_p8 = scmp.ne.s32.totalorder %s4649_s1, %s4045_s9  ;;  %p4049_p9 = scmp.lt.u32.totalorder %s4045_s9, %s4649_s1 }
  0x16   :  { %p4051_p10 = pnand %p4049_p9, %p4046_p8 }
  0x18   :  { %4054 = shalt.err (!%p4051_p10)
}
  0x19   :  { %s4055_s14 = scalar_lea.vmem %s22_s21, 1536  ;;  %p4060_p12 = scmp.lt.s32.totalorder %s22_s21, %s22_s21 }
  0x1a   :  { %p4056_p11 = scmp.ne.s32.totalorder %s22_s21, %s4055_s14  ;;  %p4061_p13 = scmp.lt.s32.totalorder %s4055_s14, %s4055_s14 }
  0x1c   :  { %p4062_p0 = por %p4061_p13, %p4060_p12 }
  0x1e   :  { %p4063_p1 = pnand %p4062_p0, %p4056_p11 }
  0x20   :  { %4066 = shalt.err (!%p4063_p1)
}
  0x21   :  { %24 = dma.hbm_to_vmem [thread:$0]  %s4649_s1, 1536, %s22_s21, [#allocation5]  }
  0x22   :  { %s4121_s16 = smov [#allocation9]   ;;  %s4067_s20 = scalar_lea.hbm %s4651_s3, 2816 }
  0x23   :  { %s40_s17 = sshll.u32 %s4121_s16, 4  ;;  %p4068_p2 = scmp.ne.s32.totalorder %s4651_s3, %s4067_s20  ;;  %s41_s17 = int_to_ptr.vmem [resolvable:$true] %s40_s17 }
  0x24   :  { %p4071_p3 = scmp.lt.u32.totalorder %s4067_s20, %s4651_s3 }
  0x26   :  { %p4073_p4 = pnand %p4071_p3, %p4068_p2 }
  0x28   :  { %4076 = shalt.err (!%p4073_p4)
}
  0x29   :  { %s4077_s26 = scalar_lea.vmem %s41_s17, 2816  ;;  %p4082_p6 = scmp.lt.s32.totalorder %s41_s17, %s41_s17 }
  0x2a   :  { %p4078_p5 = scmp.ne.s32.totalorder %s41_s17, %s4077_s26  ;;  %p4083_p7 = scmp.lt.s32.totalorder %s4077_s26, %s4077_s26 }
  0x2c   :  { %p4084_p8 = por %p4083_p7, %p4082_p6 }
  0x2e   :  { %p4085_p9 = pnand %p4084_p8, %p4078_p5 }
  0x30   :  { %4088 = shalt.err (!%p4085_p9)
}
  0x31   :  { %s4122_s1 = smov 128   ;;  %s4123_s21 = smov 8  }
  0x32   :  { %46 = dma.hbm_to_vmem [thread:$0]  %s4651_s3, 2816, %s41_s17, [#allocation8], %s4122_s1, %s4122_s1, %s4123_s21  }
  0x33   :  { %4111 = dma.done.wait [#allocation5], 1536  }
  0x34   :  { %4112 = vsyncadd [#allocation5], 4294965760 }
  0x35   :  { %4113 = dma.done.wait [#allocation8], 4352  }
  0x36   :  { %4114 = vsyncadd [#allocation8], 4294962944  ;;  %s61_s29 = sld [smem:[#allocation0]]   ;;  %s4124_s30 = smov 3072   ;;  %v4125_v0 = vmov 0.0   ;;  %vm177_vm0 = vcmask 1042432  }
  0x37   :  { %73 = sst [smem:[#allocation12]] %s4124_s30  ;;  %246 = vmatprep.mubr.f32.mxu0 %v4125_v0  ;;  %306 = vmatprep.mubr.f32.mxu1 %v4125_v0  ;;  %s4126_s6 = smov 24   ;;  %vm128_vm1 = vcmask 23552   ;;  %vm1378_vm2 = vcmask 1040384  }
  0x38   :  { %75 = sst [smem:[#allocation12 + $0x1]] %s4124_s30  ;;  %s4127_s7 = smov 64  }
  0x39   :  { %77 = sst [smem:[#allocation12 + $0x2]] %s4126_s6  ;;  %s4128_s8 = smov 2  }
  0x3a   :  { %79 = sst [smem:[#allocation12 + $0x3]] %s4127_s7  ;;  %s4129_s9 = smov 1536  }
  0x3b   :  { %81 = sst [smem:[#allocation12 + $0x4]] %s4122_s1  ;;  %s4130_s11 = smov 4  }
  0x3c   :  { %83 = sst [smem:[#allocation12 + $0x5]] %s4128_s8  ;;  %s3672_s3 = sshll.u32 %s61_s29, 26 }
  0x3d   :  { %85 = sst [smem:[#allocation12 + $0x6]] %s4129_s9  ;;  %s3673_s10 = sadd.s32 134217728, %s3672_s3 }
  0x3e   :  { %87 = sst [smem:[#allocation12 + $0x7]] %s4127_s7  ;;  %s4131_s12 = smov [#allocation2]  }
  0x3f   :  { %89 = sst [smem:[#allocation12 + $0x8]] %s4130_s11  ;;  %s69_s13 = sshll.u32 %s4131_s12, 4  ;;  %s70_s13 = int_to_ptr.vmem [resolvable:$true] %s69_s13 }
  0x40   :  { %s4132_s14 = smov [#allocation3]   ;;  %s4133_s2 = smov [#allocation11]  }
  0x41   :  { %91 = dma.general %s4652_s4, 49152, %s70_s13, %s4132_s14, %s4133_s2, [#allocation12], %s3673_s10, 0  }
  0x42   :  { %v4208_v1 = vld [vmem:[#allocation4] sm:$0x77]  ;;  %v3710_v3 = vld [vmem:[%s4648_s0 + $0x8] sm:$0x77] }
  0x43   :  { %v93_v2 = vld [vmem:[%s4648_s0] sm:$0x77]  ;;  %741 = vxpose.xlu1.b32.start.end [1/1] (short) %v3710_v3, 128  ;;  %v127_v4 = vcombine.high %v4208_v1, %v4208_v1  ;;  %v1059_v6 = vcombine.high %v3710_v3, %v3710_v3 }
  0x44   :  { %94 = vxpose.xlu0.b32.start.end [1/1] (short) %v93_v2, 128  ;;  %v420_v5 = vcombine.high %v93_v2, %v93_v2 }
  0x45   :  { %3674 = vmatprep.subr.msk.mxu0 %vm177_vm0, %v127_v4  ;;  %3879 = vmatprep.subr.msk.mxu1 %vm177_vm0, %v127_v4 }
  0x46   :  { %3675 = vmatpush1.msk.msra.mxu0 %vm177_vm0, %v4208_v1  ;;  %3880 = vmatpush1.msk.msra.mxu1 %vm177_vm0, %v4208_v1 }
  0x47   :  { %3711 = vmatprep.subr.msk.mxu0 %vm177_vm0, %v127_v4  ;;  %3692 = vmatprep.subr.msk.mxu1 %vm177_vm0, %v127_v4 }
  0x80   :  { %1061 = vxpose.xlu1.b32.start.end [1/1] (short) %v1059_v6, 128 }
  0x81   :  { %422 = vxpose.xlu0.b32.start.end [1/1] (short) %v420_v5, 128 }
  0xc3   :  { %v757_v8 = vpop.trf.xlu1 }
  0xc4   :  { %v110_v7 = vpop.trf.xlu0 }
  0xc5   :  { %3676 = vmatmul.mubr.msk.f32.vlgmr.msra.gmra.mrb[0].mxu0 %vm128_vm1, %v110_v7 }
  0xc6   :  { %252 = vmatprep.mubr.f32.mxu0 %v4125_v0  ;;  %3712 = vmatpush1.msk.msra.mxu0 %vm177_vm0, %v4208_v1 }
  0xc7   :  { %v758_v11 = vpop.trf.xlu1 }
  0xc8   :  { %v111_v9 = vpop.trf.xlu0 }
  0xc9   :  { %3677 = vmatmul.mubr.msk.f32.gmra.mrb[2].mxu0 %vm128_vm1, %v111_v9 }
  0xca   :  { %258 = vmatprep.mubr.f32.mxu0 %v4125_v0 }
  0xcb   :  { %v759_v13 = vpop.trf.xlu1 }
  0xcc   :  { %v112_v10 = vpop.trf.xlu0 }
  0xcd   :  { %3678 = vmatmul.mubr.msk.f32.gmra.mrb[4].mxu0 %vm128_vm1, %v112_v10 }
  0xce   :  { %264 = vmatprep.mubr.f32.mxu0 %v4125_v0 }
  0xcf   :  { %v760_v16 = vpop.trf.xlu1 }
  0xd0   :  { %v113_v12 = vpop.trf.xlu0 }
  0xd1   :  { %3679 = vmatmul.mubr.msk.f32.gmra.mrb[6].mxu0 %vm128_vm1, %v113_v12 }
  0xd2   :  { %270 = vmatprep.mubr.f32.mxu0 %v4125_v0 }
  0xd3   :  { %v761_v18 = vpop.trf.xlu1 }
  0xd4   :  { %v114_v14 = vpop.trf.xlu0 }
  0xd5   :  { %3680 = vmatmul.mubr.msk.f32.gmra.mrb[8].mxu0 %vm128_vm1, %v114_v14 }
  0xd6   :  { %276 = vmatprep.mubr.f32.mxu0 %v4125_v0 }
  0xd7   :  { %v762_v21 = vpop.trf.xlu1 }
  0xd8   :  { %v115_v15 = vpop.trf.xlu0 }
  0xd9   :  { %3681 = vmatmul.mubr.msk.f32.gmra.mrb[10].mxu0 %vm128_vm1, %v115_v15 }
  0xda   :  { %282 = vmatprep.mubr.f32.mxu0 %v4125_v0 }
  0xdb   :  { %v763_v23 = vpop.trf.xlu1 }
  0xdc   :  { %v116_v17 = vpop.trf.xlu0 }
  0xdd   :  { %3682 = vmatmul.mubr.msk.f32.gmra.mrb[12].mxu0 %vm128_vm1, %v116_v17 }
  0xde   :  { %288 = vmatprep.mubr.f32.mxu0 %v4125_v0 }
  0xdf   :  { %v764_v26 = vpop.trf.xlu1 }
  0xe0   :  { %v117_v19 = vpop.trf.xlu0 }
  0xe1   :  { %3683 = vmatmul.mubr.msk.f32.gmra.mrb[14].mxu0 %vm128_vm1, %v117_v19 }
  0xe2   :  { %294 = vmatprep.mubr.f32.mxu0 %v4125_v0 }
  0xe3   :  { %v765_v28 = vpop.trf.xlu1 }
  0xe4   :  { %v118_v20 = vpop.trf.xlu0 }
  0xe5   :  { %3684 = vmatmul.mubr.msk.f32.gmra.mrb[16].mxu0 %vm128_vm1, %v118_v20 }
  0xe6   :  { %300 = vmatprep.mubr.f32.mxu0 %v4125_v0 }
  0xe7   :  { %v766_v31 = vpop.trf.xlu1 }
  0xe8   :  { %v119_v22 = vpop.trf.xlu0 }
  0xe9   :  { %3685 = vmatmul.mubr.msk.f32.gmra.mrb[18].mxu0 %vm128_vm1, %v119_v22 }
  0xea   :  { %885 = vmatprep.mubr.f32.mxu0 %v4125_v0 }
  0xeb   :  { %v767_v33 = vpop.trf.xlu1 }
  0xec   :  { %v120_v24 = vpop.trf.xlu0 }
  0xed   :  { %3686 = vmatmul.mubr.msk.f32.vlgmr.msra.gmra.mrb[0].mxu1 %vm128_vm1, %v120_v24  ;;  %3713 = vmatmul.mubr.msk.f32.vlgmr.msra.gmra.mrb[20].mxu0 %vm128_vm1, %v757_v8 }
  0xee   :  { %3693 = vmatpush1.msk.msra.mxu1 %vm177_vm0, %v4208_v1  ;;  %312 = vmatprep.mubr.f32.mxu1 %v4125_v0 }
  0xef   :  { %891 = vmatprep.mubr.f32.mxu0 %v4125_v0  ;;  %3729 = vmatprep.subr.msk.mxu1 %vm177_vm0, %v127_v4  ;;  %v768_v36 = vpop.trf.xlu1 }
  0xf0   :  { %v121_v25 = vpop.trf.xlu0 }
  0xf1   :  { %3687 = vmatmul.mubr.msk.f32.gmra.mrb[2].mxu1 %vm128_vm1, %v121_v25  ;;  %3714 = vmatmul.mubr.msk.f32.gmra.mrb[22].mxu0 %vm128_vm1, %v758_v11 }
  0xf2   :  { %318 = vmatprep.mubr.f32.mxu1 %v4125_v0  ;;  %897 = vmatprep.mubr.f32.mxu0 %v4125_v0 }
  0xf3   :  { %v769_v38 = vpop.trf.xlu1 }
  0xf4   :  { %v122_v27 = vpop.trf.xlu0 }
  0xf5   :  { %3688 = vmatmul.mubr.msk.f32.gmra.mrb[4].mxu1 %vm128_vm1, %v122_v27  ;;  %3715 = vmatmul.mubr.msk.f32.gmra.mrb[24].mxu0 %vm128_vm1, %v759_v13 }
  0xf6   :  { %324 = vmatprep.mubr.f32.mxu1 %v4125_v0  ;;  %903 = vmatprep.mubr.f32.mxu0 %v4125_v0 }
  0xf7   :  { %v770_v41 = vpop.trf.xlu1 }
  0xf8   :  { %v123_v29 = vpop.trf.xlu0 }
  0xf9   :  { %3689 = vmatmul.mubr.msk.f32.gmra.mrb[6].mxu1 %vm128_vm1, %v123_v29  ;;  %3716 = vmatmul.mubr.msk.f32.gmra.mrb[26].mxu0 %vm128_vm1, %v760_v16 }
  0xfa   :  { %330 = vmatprep.mubr.f32.mxu1 %v4125_v0  ;;  %909 = vmatprep.mubr.f32.mxu0 %v4125_v0 }
  0xfb   :  { %v771_v43 = vpop.trf.xlu1 }
  0xfc   :  { %v124_v30 = vpop.trf.xlu0 }
  0xfd   :  { %3690 = vmatmul.mubr.msk.f32.gmra.mrb[8].mxu1 %vm128_vm1, %v124_v30  ;;  %3717 = vmatmul.mubr.msk.f32.gmra.mrb[28].mxu0 %vm128_vm1, %v761_v18 }
  0xfe   :  { %336 = vmatprep.mubr.f32.mxu1 %v4125_v0  ;;  %915 = vmatprep.mubr.f32.mxu0 %v4125_v0 }
  0xff   :  { %v772_v46 = vpop.trf.xlu1 }
 0x100   :  { %v125_v32 = vpop.trf.xlu0 }
 0x101   :  { %3691 = vmatmul.mubr.msk.f32.gmra.mrb[10].mxu1 %vm128_vm1, %v125_v32  ;;  %3718 = vmatmul.mubr.msk.f32.gmra.mrb[30].mxu0 %vm128_vm1, %v762_v21 }
 0x102   :  { %566 = vmatprep.mubr.f32.mxu1 %v4125_v0  ;;  %921 = vmatprep.mubr.f32.mxu0 %v4125_v0 }
 0x103   :  { %v1077_v48 = vpop.trf.xlu1 }
 0x104   :  { %v438_v34 = vpop.trf.xlu0 }
 0x105   :  { %3694 = vmatmul.mubr.msk.f32.vlgmr.msra.gmra.mrb[12].mxu1 %vm128_vm1, %v438_v34  ;;  %3719 = vmatmul.mubr.msk.f32.gmra.mrb[32].mxu0 %vm128_vm1, %v763_v23 }
 0x106   :  { %3730 = vmatpush1.msk.msra.mxu1 %vm177_vm0, %v4208_v1  ;;  %572 = vmatprep.mubr.f32.mxu1 %v4125_v0 }
 0x107   :  { %927 = vmatprep.mubr.f32.mxu0 %v4125_v0  ;;  %v1078_v50 = vpop.trf.xlu1 }
 0x108   :  { %v439_v35 = vpop.trf.xlu0 }
 0x109   :  { %3695 = vmatmul.mubr.msk.f32.gmra.mrb[14].mxu1 %vm128_vm1, %v439_v35  ;;  %3720 = vmatmul.mubr.msk.f32.gmra.mrb[34].mxu0 %vm128_vm1, %v764_v26 }
 0x10a   :  { %578 = vmatprep.mubr.f32.mxu1 %v4125_v0  ;;  %933 = vmatprep.mubr.f32.mxu0 %v4125_v0 }
 0x10b   :  { %v1079_v53 = vpop.trf.xlu1 }
 0x10c   :  { %v440_v37 = vpop.trf.xlu0 }
 0x10d   :  { %3696 = vmatmul.mubr.msk.f32.gmra.mrb[16].mxu1 %vm128_vm1, %v440_v37  ;;  %3721 = vmatmul.mubr.msk.f32.gmra.mrb[36].mxu0 %vm128_vm1, %v765_v28 }
 0x10e   :  { %584 = vmatprep.mubr.f32.mxu1 %v4125_v0  ;;  %939 = vmatprep.mubr.f32.mxu0 %v4125_v0 }
 0x10f   :  { %v1080_v55 = vpop.trf.xlu1 }
 0x110   :  { %v441_v39 = vpop.trf.xlu0 }
 0x111   :  { %3697 = vmatmul.mubr.msk.f32.gmra.mrb[18].mxu1 %vm128_vm1, %v441_v39  ;;  %3722 = vmatmul.mubr.msk.f32.gmra.mrb[38].mxu0 %vm128_vm1, %v766_v31 }
 0x112   :  { %590 = vmatprep.mubr.f32.mxu1 %v4125_v0  ;;  %945 = vmatprep.mubr.f32.mxu0 %v4125_v0 }
 0x113   :  { %v1081_v58 = vpop.trf.xlu1 }
 0x114   :  { %v442_v40 = vpop.trf.xlu0 }
 0x115   :  { %3698 = vmatmul.mubr.msk.f32.gmra.mrb[20].mxu1 %vm128_vm1, %v442_v40  ;;  %3723 = vmatmul.mubr.msk.f32.gmra.mrb[40].mxu0 %vm128_vm1, %v767_v33 }
 0x116   :  { %596 = vmatprep.mubr.f32.mxu1 %v4125_v0  ;;  %951 = vmatprep.mubr.f32.mxu0 %v4125_v0 }
 0x117   :  { %v1082_v60 = vpop.trf.xlu1 }
 0x118   :  { %v443_v42 = vpop.trf.xlu0 }
 0x119   :  { %3699 = vmatmul.mubr.msk.f32.gmra.mrb[22].mxu1 %vm128_vm1, %v443_v42  ;;  %3724 = vmatmul.mubr.msk.f32.gmra.mrb[42].mxu0 %vm128_vm1, %v768_v36 }
 0x11a   :  { %602 = vmatprep.mubr.f32.mxu1 %v4125_v0  ;;  %957 = vmatprep.mubr.f32.mxu0 %v4125_v0 }
 0x11b   :  { %v1083_v61 = vpop.trf.xlu1 }
 0x11c   :  { %v444_v44 = vpop.trf.xlu0 }
 0x11d   :  { %3700 = vmatmul.mubr.msk.f32.gmra.mrb[24].mxu1 %vm128_vm1, %v444_v44  ;;  %3725 = vmatmul.mubr.msk.f32.gmra.mrb[44].mxu0 %vm128_vm1, %v769_v38 }
 0x11e   :  { %608 = vmatprep.mubr.f32.mxu1 %v4125_v0  ;;  %963 = vmatprep.mubr.f32.mxu0 %v4125_v0 }
 0x11f   :  { %v1084_v62 = vpop.trf.xlu1 }
 0x120   :  { %v445_v45 = vpop.trf.xlu0 }
 0x121   :  { %3701 = vmatmul.mubr.msk.f32.gmra.mrb[26].mxu1 %vm128_vm1, %v445_v45  ;;  %3726 = vmatmul.mubr.msk.f32.gmra.mrb[46].mxu0 %vm128_vm1, %v770_v41 }
 0x122   :  { %614 = vmatprep.mubr.f32.mxu1 %v4125_v0  ;;  %969 = vmatprep.mubr.f32.mxu0 %v4125_v0 }
 0x123   :  { %v1085_v63 = vpop.trf.xlu1 }
 0x124   :  { %v446_v47 = vpop.trf.xlu0 }
 0x125   :  { %3702 = vmatmul.mubr.msk.f32.gmra.mrb[28].mxu1 %vm128_vm1, %v446_v47  ;;  %3727 = vmatmul.mubr.msk.f32.gmra.mrb[48].mxu0 %vm128_vm1, %v771_v43 }
 0x126   :  { %620 = vmatprep.mubr.f32.mxu1 %v4125_v0  ;;  %975 = vmatprep.mubr.f32.mxu0 %v4125_v0 }
 0x127   :  { %v1086_v1 = vpop.trf.xlu1 }
 0x128   :  { %v447_v49 = vpop.trf.xlu0 }
 0x129   :  { %3703 = vmatmul.mubr.msk.f32.gmra.mrb[30].mxu1 %vm128_vm1, %v447_v49  ;;  %3728 = vmatmul.mubr.msk.f32.gmra.mrb[50].mxu0 %vm128_vm1, %v772_v46 }
 0x12a   :  { %626 = vmatprep.mubr.f32.mxu1 %v4125_v0 }
 0x12b   :  { %v1087_v2 = vpop.trf.xlu1 }
 0x12c   :  { %v448_v51 = vpop.trf.xlu0 }
 0x12d   :  { %3704 = vmatmul.mubr.msk.f32.gmra.mrb[32].mxu1 %vm128_vm1, %v448_v51 }
 0x12e   :  { %632 = vmatprep.mubr.f32.mxu1 %v4125_v0 }
 0x12f   :  { %v1088_v3 = vpop.trf.xlu1 }
 0x130   :  { %v449_v52 = vpop.trf.xlu0 }
 0x131   :  { %3705 = vmatmul.mubr.msk.f32.gmra.mrb[34].mxu1 %vm128_vm1, %v449_v52 }
 0x132   :  { %638 = vmatprep.mubr.f32.mxu1 %v4125_v0 }
 0x133   :  { %v1089_v4 = vpop.trf.xlu1 }
 0x134   :  { %v450_v54 = vpop.trf.xlu0 }
 0x135   :  { %3706 = vmatmul.mubr.msk.f32.gmra.mrb[36].mxu1 %vm128_vm1, %v450_v54 }
 0x136   :  { %644 = vmatprep.mubr.f32.mxu1 %v4125_v0 }
 0x137   :  { %v1090_v5 = vpop.trf.xlu1 }
 0x138   :  { %v451_v56 = vpop.trf.xlu0 }
 0x139   :  { %3707 = vmatmul.mubr.msk.f32.gmra.mrb[38].mxu1 %vm128_vm1, %v451_v56 }
 0x13a   :  { %650 = vmatprep.mubr.f32.mxu1 %v4125_v0 }
 0x13b   :  { %v1091_v6 = vpop.trf.xlu1 }
 0x13c   :  { %v452_v57 = vpop.trf.xlu0 }
 0x13d   :  { %3708 = vmatmul.mubr.msk.f32.gmra.mrb[40].mxu1 %vm128_vm1, %v452_v57 }
 0x13e   :  { %656 = vmatprep.mubr.f32.mxu1 %v4125_v0 }
 0x13f   :  { %v1092_v7 = vpop.trf.xlu1 }
 0x140   :  { %v453_v59 = vpop.trf.xlu0 }
 0x141   :  { %3709 = vmatmul.mubr.msk.f32.gmra.mrb[42].mxu1 %vm128_vm1, %v453_v59 }
 0x142   :  { %1205 = vmatprep.mubr.f32.mxu1 %v4125_v0 }
 0x145   :  { %3731 = vmatmul.mubr.msk.f32.vlgmr.msra.gmra.mrb[44].mxu1 %vm128_vm1, %v1077_v48 }
 0x146   :  { %1211 = vmatprep.mubr.f32.mxu1 %v4125_v0 }
 0x149   :  { %3732 = vmatmul.mubr.msk.f32.gmra.mrb[46].mxu1 %vm128_vm1, %v1078_v50 }
 0x14a   :  { %1217 = vmatprep.mubr.f32.mxu1 %v4125_v0 }
 0x14d   :  { %3733 = vmatmul.mubr.msk.f32.gmra.mrb[48].mxu1 %vm128_vm1, %v1079_v53 }
 0x14e   :  { %1223 = vmatprep.mubr.f32.mxu1 %v4125_v0 }
 0x151   :  { %3734 = vmatmul.mubr.msk.f32.gmra.mrb[50].mxu1 %vm128_vm1, %v1080_v55 }
 0x152   :  { %1229 = vmatprep.mubr.f32.mxu1 %v4125_v0 }
 0x155   :  { %3735 = vmatmul.mubr.msk.f32.gmra.mrb[52].mxu1 %vm128_vm1, %v1081_v58 }
 0x156   :  { %1235 = vmatprep.mubr.f32.mxu1 %v4125_v0 }
 0x159   :  { %3736 = vmatmul.mubr.msk.f32.gmra.mrb[54].mxu1 %vm128_vm1, %v1082_v60 }
 0x15a   :  { %1241 = vmatprep.mubr.f32.mxu1 %v4125_v0 }
 0x15d   :  { %3737 = vmatmul.mubr.msk.f32.gmra.mrb[56].mxu1 %vm128_vm1, %v1083_v61 }
 0x15e   :  { %1247 = vmatprep.mubr.f32.mxu1 %v4125_v0 }
 0x161   :  { %3738 = vmatmul.mubr.msk.f32.gmra.mrb[58].mxu1 %vm128_vm1, %v1084_v62 }
 0x162   :  { %1253 = vmatprep.mubr.f32.mxu1 %v4125_v0 }
 0x165   :  { %3739 = vmatmul.mubr.msk.f32.gmra.mrb[60].mxu1 %vm128_vm1, %v1085_v63 }
 0x166   :  { %1259 = vmatprep.mubr.f32.mxu1 %v4125_v0 }
 0x169   :  { %3740 = vmatmul.mubr.msk.f32.gmra.mrb[62].mxu1 %vm128_vm1, %v1086_v1 }
 0x16a   :  { %1265 = vmatprep.mubr.f32.mxu1 %v4125_v0 }
 0x16d   :  { %3741 = vmatmul.mubr.msk.f32.gmra.mrb[64].mxu1 %vm128_vm1, %v1087_v2 }
 0x16e   :  { %1271 = vmatprep.mubr.f32.mxu1 %v4125_v0 }
 0x171   :  { %3742 = vmatmul.mubr.msk.f32.gmra.mrb[66].mxu1 %vm128_vm1, %v1088_v3 }
 0x172   :  { %1277 = vmatprep.mubr.f32.mxu1 %v4125_v0 }
 0x175   :  { %3743 = vmatmul.mubr.msk.f32.gmra.mrb[68].mxu1 %vm128_vm1, %v1089_v4 }
 0x176   :  { %1283 = vmatprep.mubr.f32.mxu1 %v4125_v0 }
 0x179   :  { %3744 = vmatmul.mubr.msk.f32.gmra.mrb[70].mxu1 %vm128_vm1, %v1090_v5 }
 0x17a   :  { %1289 = vmatprep.mubr.f32.mxu1 %v4125_v0 }
 0x17d   :  { %3745 = vmatmul.mubr.msk.f32.gmra.mrb[72].mxu1 %vm128_vm1, %v1091_v6 }
 0x17e   :  { %1295 = vmatprep.mubr.f32.mxu1 %v4125_v0 }
 0x181   :  { %3746 = vmatmul.mubr.msk.f32.gmra.mrb[74].mxu1 %vm128_vm1, %v1092_v7 }
 0x198   :  { %v248_v8 = vpop.f32.mrb[0].mxu0 }
 0x199   :  { %v250_v9 = vpop.f32.mrb[1].mxu0  ;;  %v343_v11 = vmax.f32 %v248_v8, 0.0 }
 0x19a   :  { %v344_v14 = vmax.f32 %v250_v9, 0.0 }
 0x19c   :  { %v254_v10 = vpop.f32.mrb[2].mxu0 }
 0x19d   :  { %v345_v12 = vmax.f32 %v254_v10, 0.0  ;;  %v256_v13 = vpop.f32.mrb[3].mxu0 }
 0x19e   :  { %v346_v15 = vmax.f32 %v256_v13, 0.0 }
 0x19f   :  { %v375_v16 = vadd.f32 %v345_v12, %v343_v11 }
 0x1a0   :  { %v396_v17 = vadd.f32 %v346_v15, %v344_v14  ;;  %v260_v18 = vpop.f32.mrb[4].mxu0 }
 0x1a1   :  { %v347_v19 = vmax.f32 %v260_v18, 0.0  ;;  %v262_v20 = vpop.f32.mrb[5].mxu0 }
 0x1a2   :  { %v348_v21 = vmax.f32 %v262_v20, 0.0 }
 0x1a3   :  { %v376_v22 = vadd.f32 %v375_v16, %v347_v19 }
 0x1a4   :  { %v397_v23 = vadd.f32 %v396_v17, %v348_v21  ;;  %v266_v24 = vpop.f32.mrb[6].mxu0 }
 0x1a5   :  { %v349_v25 = vmax.f32 %v266_v24, 0.0  ;;  %v268_v26 = vpop.f32.mrb[7].mxu0 }
 0x1a6   :  { %v350_v27 = vmax.f32 %v268_v26, 0.0 }
 0x1a7   :  { %v377_v28 = vadd.f32 %v376_v22, %v349_v25 }
 0x1a8   :  { %v398_v29 = vadd.f32 %v397_v23, %v350_v27  ;;  %v272_v30 = vpop.f32.mrb[8].mxu0 }
 0x1a9   :  { %v351_v31 = vmax.f32 %v272_v30, 0.0  ;;  %v274_v32 = vpop.f32.mrb[9].mxu0 }
 0x1aa   :  { %v352_v33 = vmax.f32 %v274_v32, 0.0 }
 0x1ab   :  { %v378_v34 = vadd.f32 %v377_v28, %v351_v31 }
 0x1ac   :  { %v399_v35 = vadd.f32 %v398_v29, %v352_v33  ;;  %v278_v36 = vpop.f32.mrb[10].mxu0 }
 0x1ad   :  { %v353_v37 = vmax.f32 %v278_v36, 0.0  ;;  %v280_v38 = vpop.f32.mrb[11].mxu0 }
 0x1ae   :  { %v354_v39 = vmax.f32 %v280_v38, 0.0 }
 0x1af   :  { %v379_v40 = vadd.f32 %v378_v34, %v353_v37 }
 0x1b0   :  { %v400_v41 = vadd.f32 %v399_v35, %v354_v39  ;;  %v284_v42 = vpop.f32.mrb[12].mxu0 }
 0x1b1   :  { %v355_v43 = vmax.f32 %v284_v42, 0.0  ;;  %v286_v44 = vpop.f32.mrb[13].mxu0 }
 0x1b2   :  { %v356_v45 = vmax.f32 %v286_v44, 0.0 }
 0x1b3   :  { %v380_v46 = vadd.f32 %v379_v40, %v355_v43 }
 0x1b4   :  { %v401_v47 = vadd.f32 %v400_v41, %v356_v45  ;;  %v290_v48 = vpop.f32.mrb[14].mxu0 }
 0x1b5   :  { %v357_v49 = vmax.f32 %v290_v48, 0.0  ;;  %v292_v50 = vpop.f32.mrb[15].mxu0 }
 0x1b6   :  { %v358_v51 = vmax.f32 %v292_v50, 0.0 }
 0x1b7   :  { %v381_v52 = vadd.f32 %v380_v46, %v357_v49 }
 0x1b8   :  { %v402_v53 = vadd.f32 %v401_v47, %v358_v51  ;;  %v296_v54 = vpop.f32.mrb[16].mxu0 }
 0x1b9   :  { %v359_v55 = vmax.f32 %v296_v54, 0.0  ;;  %v298_v56 = vpop.f32.mrb[17].mxu0 }
 0x1ba   :  { %v360_v57 = vmax.f32 %v298_v56, 0.0 }
 0x1bb   :  { %v382_v58 = vadd.f32 %v381_v52, %v359_v55 }
 0x1bc   :  { %v403_v59 = vadd.f32 %v402_v53, %v360_v57  ;;  %v302_v60 = vpop.f32.mrb[18].mxu0 }
 0x1bd   :  { %v361_v61 = vmax.f32 %v302_v60, 0.0  ;;  %v304_v62 = vpop.f32.mrb[19].mxu0 }
 0x1be   :  { %v362_v63 = vmax.f32 %v304_v62, 0.0 }
 0x1bf   :  { %v383_v1 = vadd.f32 %v382_v58, %v361_v61 }
 0x1c0   :  { %v404_v2 = vadd.f32 %v403_v59, %v362_v63  ;;  %v308_v3 = vpop.f32.mrb[0].mxu1  ;;  %v887_v4 = vpop.f32.mrb[20].mxu0 }
 0x1c1   :  { %v363_v5 = vmax.f32 %v308_v3, 0.0  ;;  %v310_v6 = vpop.f32.mrb[1].mxu1  ;;  %v889_v7 = vpop.f32.mrb[21].mxu0  ;;  %v982_v10 = vmax.f32 %v887_v4, 0.0 }
 0x1c2   :  { %v364_v8 = vmax.f32 %v310_v6, 0.0  ;;  %v983_v13 = vmax.f32 %v889_v7, 0.0 }
 0x1c3   :  { %v384_v9 = vadd.f32 %v383_v1, %v363_v5 }
 0x1c4   :  { %v405_v11 = vadd.f32 %v404_v2, %v364_v8  ;;  %v314_v12 = vpop.f32.mrb[2].mxu1  ;;  %v893_v14 = vpop.f32.mrb[22].mxu0 }
 0x1c5   :  { %v365_v15 = vmax.f32 %v314_v12, 0.0  ;;  %v316_v16 = vpop.f32.mrb[3].mxu1  ;;  %v984_v17 = vmax.f32 %v893_v14, 0.0  ;;  %v895_v18 = vpop.f32.mrb[23].mxu0 }
 0x1c6   :  { %v366_v19 = vmax.f32 %v316_v16, 0.0  ;;  %v985_v20 = vmax.f32 %v895_v18, 0.0 }
 0x1c7   :  { %v385_v21 = vadd.f32 %v384_v9, %v365_v15  ;;  %v1014_v22 = vadd.f32 %v984_v17, %v982_v10 }
 0x1c8   :  { %v406_v23 = vadd.f32 %v405_v11, %v366_v19  ;;  %v320_v24 = vpop.f32.mrb[4].mxu1  ;;  %v1035_v25 = vadd.f32 %v985_v20, %v983_v13  ;;  %v899_v26 = vpop.f32.mrb[24].mxu0 }
 0x1c9   :  { %v367_v27 = vmax.f32 %v320_v24, 0.0  ;;  %v322_v28 = vpop.f32.mrb[5].mxu1  ;;  %v986_v29 = vmax.f32 %v899_v26, 0.0  ;;  %v901_v30 = vpop.f32.mrb[25].mxu0 }
 0x1ca   :  { %v368_v31 = vmax.f32 %v322_v28, 0.0  ;;  %v987_v32 = vmax.f32 %v901_v30, 0.0 }
 0x1cb   :  { %v386_v33 = vadd.f32 %v385_v21, %v367_v27  ;;  %v1015_v34 = vadd.f32 %v1014_v22, %v986_v29 }
 0x1cc   :  { %v407_v35 = vadd.f32 %v406_v23, %v368_v31  ;;  %v326_v36 = vpop.f32.mrb[6].mxu1  ;;  %v1036_v37 = vadd.f32 %v1035_v25, %v987_v32  ;;  %v905_v38 = vpop.f32.mrb[26].mxu0 }
 0x1cd   :  { %v369_v39 = vmax.f32 %v326_v36, 0.0  ;;  %v328_v40 = vpop.f32.mrb[7].mxu1  ;;  %v988_v41 = vmax.f32 %v905_v38, 0.0  ;;  %v907_v42 = vpop.f32.mrb[27].mxu0 }
 0x1ce   :  { %v370_v43 = vmax.f32 %v328_v40, 0.0  ;;  %v989_v44 = vmax.f32 %v907_v42, 0.0 }
 0x1cf   :  { %v387_v45 = vadd.f32 %v386_v33, %v369_v39  ;;  %v1016_v46 = vadd.f32 %v1015_v34, %v988_v41 }
 0x1d0   :  { %v408_v47 = vadd.f32 %v407_v35, %v370_v43  ;;  %v332_v48 = vpop.f32.mrb[8].mxu1  ;;  %v1037_v49 = vadd.f32 %v1036_v37, %v989_v44  ;;  %v911_v50 = vpop.f32.mrb[28].mxu0 }
 0x1d1   :  { %v371_v51 = vmax.f32 %v332_v48, 0.0  ;;  %v334_v52 = vpop.f32.mrb[9].mxu1  ;;  %v990_v53 = vmax.f32 %v911_v50, 0.0  ;;  %v913_v54 = vpop.f32.mrb[29].mxu0 }
 0x1d2   :  { %v372_v55 = vmax.f32 %v334_v52, 0.0  ;;  %v991_v56 = vmax.f32 %v913_v54, 0.0 }
 0x1d3   :  { %v388_v57 = vadd.f32 %v387_v45, %v371_v51  ;;  %v1017_v58 = vadd.f32 %v1016_v46, %v990_v53 }
 0x1d4   :  { %v409_v59 = vadd.f32 %v408_v47, %v372_v55  ;;  %v338_v60 = vpop.f32.mrb[10].mxu1  ;;  %v1038_v61 = vadd.f32 %v1037_v49, %v991_v56  ;;  %v917_v62 = vpop.f32.mrb[30].mxu0 }
 0x1d5   :  { %v373_v63 = vmax.f32 %v338_v60, 0.0  ;;  %v340_v1 = vpop.f32.mrb[11].mxu1  ;;  %v992_v2 = vmax.f32 %v917_v62, 0.0  ;;  %v919_v3 = vpop.f32.mrb[31].mxu0 }
 0x1d6   :  { %v374_v4 = vmax.f32 %v340_v1, 0.0  ;;  %v993_v5 = vmax.f32 %v919_v3, 0.0 }
 0x1d7   :  { %v4359_v6 = vadd.f32 %v388_v57, %v373_v63  ;;  %v1018_v7 = vadd.f32 %v1017_v58, %v992_v2 }
 0x1d8   :  { %v4361_v8 = vadd.f32 %v409_v59, %v374_v4  ;;  %v568_v9 = vpop.f32.mrb[12].mxu1  ;;  %v1039_v10 = vadd.f32 %v1038_v61, %v993_v5  ;;  %v923_v11 = vpop.f32.mrb[32].mxu0 }
 0x1d9   :  { %v570_v12 = vpop.f32.mrb[13].mxu1  ;;  %v994_v13 = vmax.f32 %v923_v11, 0.0  ;;  %v925_v14 = vpop.f32.mrb[33].mxu0  ;;  %v663_v20 = vmax.f32 %v568_v9, 0.0 }
 0x1da   :  { %v995_v15 = vmax.f32 %v925_v14, 0.0  ;;  %v664_v25 = vmax.f32 %v570_v12, 0.0 }
 0x1db   :  { %v1019_v16 = vadd.f32 %v1018_v7, %v994_v13 }
 0x1dc   :  { %v574_v17 = vpop.f32.mrb[14].mxu1  ;;  %v1040_v18 = vadd.f32 %v1039_v10, %v995_v15  ;;  %v929_v19 = vpop.f32.mrb[34].mxu0 }
 0x1dd   :  { %v665_v21 = vmax.f32 %v574_v17, 0.0  ;;  %v576_v22 = vpop.f32.mrb[15].mxu1  ;;  %v996_v23 = vmax.f32 %v929_v19, 0.0  ;;  %v931_v24 = vpop.f32.mrb[35].mxu0 }
 0x1de   :  { %v666_v26 = vmax.f32 %v576_v22, 0.0  ;;  %v997_v27 = vmax.f32 %v931_v24, 0.0 }
 0x1df   :  { %v695_v28 = vadd.f32 %v665_v21, %v663_v20  ;;  %v1020_v29 = vadd.f32 %v1019_v16, %v996_v23 }
 0x1e0   :  { %v716_v30 = vadd.f32 %v666_v26, %v664_v25  ;;  %v580_v31 = vpop.f32.mrb[16].mxu1  ;;  %v1041_v32 = vadd.f32 %v1040_v18, %v997_v27  ;;  %v935_v33 = vpop.f32.mrb[36].mxu0 }
 0x1e1   :  { %v667_v34 = vmax.f32 %v580_v31, 0.0  ;;  %v582_v35 = vpop.f32.mrb[17].mxu1  ;;  %v998_v36 = vmax.f32 %v935_v33, 0.0  ;;  %v937_v37 = vpop.f32.mrb[37].mxu0 }
 0x1e2   :  { %v668_v38 = vmax.f32 %v582_v35, 0.0  ;;  %v999_v39 = vmax.f32 %v937_v37, 0.0 }
 0x1e3   :  { %v696_v40 = vadd.f32 %v695_v28, %v667_v34  ;;  %v1021_v41 = vadd.f32 %v1020_v29, %v998_v36 }
 0x1e4   :  { %v717_v42 = vadd.f32 %v716_v30, %v668_v38  ;;  %v586_v43 = vpop.f32.mrb[18].mxu1  ;;  %v1042_v44 = vadd.f32 %v1041_v32, %v999_v39  ;;  %v941_v45 = vpop.f32.mrb[38].mxu0 }
 0x1e5   :  { %v669_v46 = vmax.f32 %v586_v43, 0.0  ;;  %v588_v47 = vpop.f32.mrb[19].mxu1  ;;  %v1000_v48 = vmax.f32 %v941_v45, 0.0  ;;  %v943_v49 = vpop.f32.mrb[39].mxu0 }
 0x1e6   :  { %v670_v50 = vmax.f32 %v588_v47, 0.0  ;;  %v1001_v51 = vmax.f32 %v943_v49, 0.0 }
 0x1e7   :  { %v697_v52 = vadd.f32 %v696_v40, %v669_v46  ;;  %v1022_v53 = vadd.f32 %v1021_v41, %v1000_v48 }
 0x1e8   :  { %v718_v54 = vadd.f32 %v717_v42, %v670_v50  ;;  %v592_v55 = vpop.f32.mrb[20].mxu1  ;;  %v1043_v56 = vadd.f32 %v1042_v44, %v1001_v51  ;;  %v947_v57 = vpop.f32.mrb[40].mxu0 }
 0x1e9   :  { %v671_v58 = vmax.f32 %v592_v55, 0.0  ;;  %v594_v59 = vpop.f32.mrb[21].mxu1  ;;  %v1002_v60 = vmax.f32 %v947_v57, 0.0  ;;  %v949_v61 = vpop.f32.mrb[41].mxu0 }
 0x1ea   :  { %v672_v62 = vmax.f32 %v594_v59, 0.0  ;;  %v1003_v63 = vmax.f32 %v949_v61, 0.0 }
 0x1eb   :  { %v698_v1 = vadd.f32 %v697_v52, %v671_v58  ;;  %v1023_v2 = vadd.f32 %v1022_v53, %v1002_v60 }
 0x1ec   :  { %v719_v3 = vadd.f32 %v718_v54, %v672_v62  ;;  %v1044_v4 = vadd.f32 %v1043_v56, %v1003_v63  ;;  %v598_v5 = vpop.f32.mrb[22].mxu1  ;;  %v953_v7 = vpop.f32.mrb[42].mxu0 }
 0x1ed   :  { %v673_v9 = vmax.f32 %v598_v5, 0.0  ;;  %v1004_v10 = vmax.f32 %v953_v7, 0.0  ;;  %v600_v11 = vpop.f32.mrb[23].mxu1  ;;  %v955_v12 = vpop.f32.mrb[43].mxu0 }
 0x1ee   :  { %v674_v13 = vmax.f32 %v600_v11, 0.0  ;;  %v1005_v14 = vmax.f32 %v955_v12, 0.0 }
 0x1ef   :  { %v699_v15 = vadd.f32 %v698_v1, %v673_v9  ;;  %v1024_v16 = vadd.f32 %v1023_v2, %v1004_v10 }
 0x1f0   :  { %v720_v17 = vadd.f32 %v719_v3, %v674_v13  ;;  %v1045_v18 = vadd.f32 %v1044_v4, %v1005_v14  ;;  %v604_v19 = vpop.f32.mrb[24].mxu1  ;;  %v959_v20 = vpop.f32.mrb[44].mxu0 }
 0x1f1   :  { %v675_v21 = vmax.f32 %v604_v19, 0.0  ;;  %v1006_v22 = vmax.f32 %v959_v20, 0.0  ;;  %v606_v23 = vpop.f32.mrb[25].mxu1  ;;  %v961_v24 = vpop.f32.mrb[45].mxu0 }
 0x1f2   :  { %v676_v25 = vmax.f32 %v606_v23, 0.0  ;;  %v1007_v26 = vmax.f32 %v961_v24, 0.0 }
 0x1f3   :  { %v700_v27 = vadd.f32 %v699_v15, %v675_v21  ;;  %v1025_v28 = vadd.f32 %v1024_v16, %v1006_v22 }
 0x1f4   :  { %v721_v29 = vadd.f32 %v720_v17, %v676_v25  ;;  %v1046_v30 = vadd.f32 %v1045_v18, %v1007_v26  ;;  %v610_v31 = vpop.f32.mrb[26].mxu1  ;;  %v965_v32 = vpop.f32.mrb[46].mxu0 }
 0x1f5   :  { %v677_v33 = vmax.f32 %v610_v31, 0.0  ;;  %v1008_v34 = vmax.f32 %v965_v32, 0.0  ;;  %v612_v35 = vpop.f32.mrb[27].mxu1  ;;  %v967_v36 = vpop.f32.mrb[47].mxu0 }
 0x1f6   :  { %v678_v37 = vmax.f32 %v612_v35, 0.0  ;;  %v1009_v38 = vmax.f32 %v967_v36, 0.0 }
 0x1f7   :  { %v701_v39 = vadd.f32 %v700_v27, %v677_v33  ;;  %v1026_v40 = vadd.f32 %v1025_v28, %v1008_v34  ;;  %v390_v28 = vrot.slane %v4359_v6, 4 }
 0x1f8   :  { %v722_v41 = vadd.f32 %v721_v29, %v678_v37  ;;  %v1047_v42 = vadd.f32 %v1046_v30, %v1009_v38  ;;  %v616_v43 = vpop.f32.mrb[28].mxu1  ;;  %v971_v44 = vpop.f32.mrb[48].mxu0  ;;  %v411_v30 = vrot.slane %v4361_v8, 4 }
 0x1f9   :  { %v679_v45 = vmax.f32 %v616_v43, 0.0  ;;  %v1010_v46 = vmax.f32 %v971_v44, 0.0  ;;  %v618_v47 = vpop.f32.mrb[29].mxu1  ;;  %v973_v48 = vpop.f32.mrb[49].mxu0  ;;  %v391_v36 = vadd.f32 %v390_v28, %v4359_v6 }
 0x1fa   :  { %v680_v49 = vmax.f32 %v618_v47, 0.0  ;;  %v1011_v50 = vmax.f32 %v973_v48, 0.0  ;;  %v412_v38 = vadd.f32 %v411_v30, %v4361_v8 }
 0x1fb   :  { %v702_v51 = vadd.f32 %v701_v39, %v679_v45  ;;  %v1027_v52 = vadd.f32 %v1026_v40, %v1010_v46  ;;  %v392_v44 = vrot.slane %v391_v36, 2 }
 0x1fc   :  { %v723_v53 = vadd.f32 %v722_v41, %v680_v49  ;;  %v1048_v54 = vadd.f32 %v1047_v42, %v1011_v50  ;;  %v622_v55 = vpop.f32.mrb[30].mxu1  ;;  %v977_v56 = vpop.f32.mrb[50].mxu0  ;;  %v413_v46 = vrot.slane %v412_v38, 2 }
 0x1fd   :  { %v681_v57 = vmax.f32 %v622_v55, 0.0  ;;  %v1012_v58 = vmax.f32 %v977_v56, 0.0  ;;  %v624_v59 = vpop.f32.mrb[31].mxu1  ;;  %v979_v60 = vpop.f32.mrb[51].mxu0 }
 0x1fe   :  { %v682_v61 = vmax.f32 %v624_v59, 0.0  ;;  %v1013_v62 = vmax.f32 %v979_v60, 0.0 }
 0x1ff   :  { %v703_v63 = vadd.f32 %v702_v51, %v681_v57  ;;  %v4363_v1 = vadd.f32 %v1027_v52, %v1012_v58  ;;  %v393_v52 = vadd.f32 %v392_v44, %v391_v36 }
 0x200   :  { %v724_v2 = vadd.f32 %v723_v53, %v682_v61  ;;  %v4365_v3 = vadd.f32 %v1048_v54, %v1013_v62  ;;  %v628_v4 = vpop.f32.mrb[32].mxu1  ;;  %v414_v54 = vadd.f32 %v413_v46, %v412_v38 }
 0x201   :  { %v683_v5 = vmax.f32 %v628_v4, 0.0  ;;  %v630_v7 = vpop.f32.mrb[33].mxu1  ;;  %v394_v62 = vrot.slane %v393_v52, 1 }
 0x202   :  { %v684_v9 = vmax.f32 %v630_v7, 0.0  ;;  %v415_v4 = vrot.slane %v414_v54, 1 }
 0x203   :  { %v704_v10 = vadd.f32 %v703_v63, %v683_v5 }
 0x204   :  { %v725_v11 = vadd.f32 %v724_v2, %v684_v9  ;;  %v634_v12 = vpop.f32.mrb[34].mxu1 }
 0x205   :  { %v685_v13 = vmax.f32 %v634_v12, 0.0  ;;  %v636_v14 = vpop.f32.mrb[35].mxu1 }
 0x206   :  { %v686_v15 = vmax.f32 %v636_v14, 0.0 }
 0x207   :  { %v705_v16 = vadd.f32 %v704_v10, %v685_v13 }
 0x208   :  { %v726_v17 = vadd.f32 %v725_v11, %v686_v15  ;;  %v640_v18 = vpop.f32.mrb[36].mxu1  ;;  %v395_v15 = vadd.f32 %v394_v62, %v393_v52 }
 0x209   :  { %v687_v19 = vmax.f32 %v640_v18, 0.0  ;;  %v642_v20 = vpop.f32.mrb[37].mxu1  ;;  %v416_v18 = vadd.f32 %v415_v4, %v414_v54 }
 0x20a   :  { %v688_v21 = vmax.f32 %v642_v20, 0.0 }
 0x20b   :  { %v706_v22 = vadd.f32 %v705_v16, %v687_v19 }
 0x20c   :  { %v727_v23 = vadd.f32 %v726_v17, %v688_v21  ;;  %v646_v24 = vpop.f32.mrb[38].mxu1 }
 0x20d   :  { %v689_v25 = vmax.f32 %v646_v24, 0.0  ;;  %v648_v26 = vpop.f32.mrb[39].mxu1 }
 0x20e   :  { %v690_v27 = vmax.f32 %v648_v26, 0.0 }
 0x20f   :  { %v707_v29 = vadd.f32 %v706_v22, %v689_v25 }
 0x210   :  { %v728_v31 = vadd.f32 %v727_v23, %v690_v27  ;;  %v652_v32 = vpop.f32.mrb[40].mxu1 }
 0x211   :  { %v691_v33 = vmax.f32 %v652_v32, 0.0  ;;  %v654_v34 = vpop.f32.mrb[41].mxu1 }
 0x212   :  { %v692_v35 = vmax.f32 %v654_v34, 0.0 }
 0x213   :  { %v708_v37 = vadd.f32 %v707_v29, %v691_v33 }
 0x214   :  { %v729_v39 = vadd.f32 %v728_v31, %v692_v35  ;;  %v658_v40 = vpop.f32.mrb[42].mxu1 }
 0x215   :  { %v693_v41 = vmax.f32 %v658_v40, 0.0  ;;  %v660_v42 = vpop.f32.mrb[43].mxu1 }
 0x216   :  { %v694_v43 = vmax.f32 %v660_v42, 0.0 }
 0x217   :  { %v709_v45 = vadd.f32 %v708_v37, %v693_v41 }
 0x218   :  { %v730_v47 = vadd.f32 %v729_v39, %v694_v43  ;;  %v1207_v48 = vpop.f32.mrb[44].mxu1 }
 0x219   :  { %v710_v49 = vrot.slane %v709_v45, 4  ;;  %v1209_v50 = vpop.f32.mrb[45].mxu1  ;;  %v1302_v8 = vmax.f32 %v1207_v48, 0.0 }
 0x21a   :  { %v731_v51 = vrot.slane %v730_v47, 4  ;;  %v1303_v60 = vmax.f32 %v1209_v50, 0.0 }
 0x21b   :  { %v711_v53 = vadd.f32 %v710_v49, %v709_v45 }
 0x21c   :  { %v732_v6 = vadd.f32 %v731_v51, %v730_v47  ;;  %v1213_v55 = vpop.f32.mrb[46].mxu1 }
 0x21d   :  { %v712_v56 = vrot.slane %v711_v53, 2  ;;  %v1304_v57 = vmax.f32 %v1213_v55, 0.0  ;;  %v1215_v58 = vpop.f32.mrb[47].mxu1 }
 0x21e   :  { %v733_v59 = vrot.slane %v732_v6, 2  ;;  %v1305_v61 = vmax.f32 %v1215_v58, 0.0 }
 0x21f   :  { %v713_v63 = vadd.f32 %v712_v56, %v711_v53  ;;  %v1334_v2 = vadd.f32 %v1304_v57, %v1302_v8 }
 0x220   :  { %v734_v5 = vadd.f32 %v733_v59, %v732_v6  ;;  %v1355_v7 = vadd.f32 %v1305_v61, %v1303_v60  ;;  %v1219_v9 = vpop.f32.mrb[48].mxu1 }
 0x221   :  { %v714_v10 = vrot.slane %v713_v63, 1  ;;  %v1306_v11 = vmax.f32 %v1219_v9, 0.0  ;;  %v1221_v12 = vpop.f32.mrb[49].mxu1 }
 0x222   :  { %v735_v13 = vrot.slane %v734_v5, 1  ;;  %v1307_v14 = vmax.f32 %v1221_v12, 0.0 }
 0x223   :  { %v715_v16 = vadd.f32 %v714_v10, %v713_v63  ;;  %v1335_v17 = vadd.f32 %v1334_v2, %v1306_v11 }
 0x224   :  { %v736_v19 = vadd.f32 %v735_v13, %v734_v5  ;;  %v1356_v20 = vadd.f32 %v1355_v7, %v1307_v14  ;;  %v1225_v21 = vpop.f32.mrb[50].mxu1 }
 0x225   :  { %v4371_v22 = vadd.f32 %v715_v16, %v395_v15  ;;  %v1308_v23 = vmax.f32 %v1225_v21, 0.0  ;;  %v1227_v24 = vpop.f32.mrb[51].mxu1 }
 0x226   :  { %v4373_v25 = vadd.f32 %v736_v19, %v416_v18  ;;  %v1309_v26 = vmax.f32 %v1227_v24, 0.0 }
 0x227   :  { %v1336_v27 = vadd.f32 %v1335_v17, %v1308_v23 }
 0x228   :  { %v1357_v28 = vadd.f32 %v1356_v20, %v1309_v26  ;;  %v1231_v29 = vpop.f32.mrb[52].mxu1 }
 0x229   :  { %v1310_v30 = vmax.f32 %v1231_v29, 0.0  ;;  %v1233_v31 = vpop.f32.mrb[53].mxu1 }
 0x22a   :  { %v1311_v32 = vmax.f32 %v1233_v31, 0.0 }
 0x22b   :  { %v1337_v33 = vadd.f32 %v1336_v27, %v1310_v30  ;;  %v1050_v30 = vrot.slane %v4365_v3, 4 }
 0x22c   :  { %v1358_v34 = vadd.f32 %v1357_v28, %v1311_v32  ;;  %v1237_v35 = vpop.f32.mrb[54].mxu1  ;;  %v1029_v28 = vrot.slane %v4363_v1, 4 }
 0x22d   :  { %v1312_v36 = vmax.f32 %v1237_v35, 0.0  ;;  %v1239_v37 = vpop.f32.mrb[55].mxu1 }
 0x22e   :  { %v1313_v38 = vmax.f32 %v1239_v37, 0.0 }
 0x22f   :  { %v1338_v39 = vadd.f32 %v1337_v33, %v1312_v36  ;;  %v1030_v36 = vadd.f32 %v1029_v28, %v4363_v1 }
 0x230   :  { %v1359_v40 = vadd.f32 %v1358_v34, %v1313_v38  ;;  %v1243_v41 = vpop.f32.mrb[56].mxu1  ;;  %v1051_v38 = vadd.f32 %v1050_v30, %v4365_v3 }
 0x231   :  { %v1314_v42 = vmax.f32 %v1243_v41, 0.0  ;;  %v1245_v43 = vpop.f32.mrb[57].mxu1 }
 0x232   :  { %v1315_v44 = vmax.f32 %v1245_v43, 0.0 }
 0x233   :  { %v1339_v45 = vadd.f32 %v1338_v39, %v1314_v42 }
 0x234   :  { %v1360_v46 = vadd.f32 %v1359_v40, %v1315_v44  ;;  %v1249_v47 = vpop.f32.mrb[58].mxu1  ;;  %v1031_v44 = vrot.slane %v1030_v36, 2 }
 0x235   :  { %v1316_v48 = vmax.f32 %v1249_v47, 0.0  ;;  %v1251_v49 = vpop.f32.mrb[59].mxu1 }
 0x236   :  { %v1317_v50 = vmax.f32 %v1251_v49, 0.0 }
 0x237   :  { %v1340_v51 = vadd.f32 %v1339_v45, %v1316_v48 }
 0x238   :  { %v1361_v52 = vadd.f32 %v1360_v46, %v1317_v50  ;;  %v1255_v53 = vpop.f32.mrb[60].mxu1  ;;  %v1052_v46 = vrot.slane %v1051_v38, 2  ;;  %v1032_v50 = vadd.f32 %v1031_v44, %v1030_v36 }
 0x239   :  { %v1318_v54 = vmax.f32 %v1255_v53, 0.0  ;;  %v1257_v6 = vpop.f32.mrb[61].mxu1 }
 0x23a   :  { %v1319_v55 = vmax.f32 %v1257_v6, 0.0  ;;  %v1033_v6 = vrot.slane %v1032_v50, 1 }
 0x23b   :  { %v1341_v56 = vadd.f32 %v1340_v51, %v1318_v54 }
 0x23c   :  { %v1362_v8 = vadd.f32 %v1361_v52, %v1319_v55  ;;  %v1261_v57 = vpop.f32.mrb[62].mxu1  ;;  %v1053_v52 = vadd.f32 %v1052_v46, %v1051_v38 }
 0x23d   :  { %v1320_v58 = vmax.f32 %v1261_v57, 0.0  ;;  %v1263_v59 = vpop.f32.mrb[63].mxu1 }
 0x23e   :  { %v1321_v60 = vmax.f32 %v1263_v59, 0.0  ;;  %v1054_v3 = vrot.slane %v1053_v52, 1 }
 0x23f   :  { %v1342_v61 = vadd.f32 %v1341_v56, %v1320_v58  ;;  %v1034_v58 = vadd.f32 %v1033_v6, %v1032_v50 }
 0x240   :  { %v1363_v62 = vadd.f32 %v1362_v8, %v1321_v60  ;;  %v1267_v63 = vpop.f32.mrb[64].mxu1  ;;  %v1055_v60 = vadd.f32 %v1054_v3, %v1053_v52 }
 0x241   :  { %v1322_v2 = vmax.f32 %v1267_v63, 0.0  ;;  %v1269_v4 = vpop.f32.mrb[65].mxu1 }
 0x242   :  { %v1323_v5 = vmax.f32 %v1269_v4, 0.0 }
 0x243   :  { %v1343_v7 = vadd.f32 %v1342_v61, %v1322_v2 }
 0x244   :  { %v1364_v9 = vadd.f32 %v1363_v62, %v1323_v5  ;;  %v1273_v10 = vpop.f32.mrb[66].mxu1 }
 0x245   :  { %v1324_v11 = vmax.f32 %v1273_v10, 0.0  ;;  %v1275_v12 = vpop.f32.mrb[67].mxu1 }
 0x246   :  { %v1325_v13 = vmax.f32 %v1275_v12, 0.0 }
 0x247   :  { %v1344_v14 = vadd.f32 %v1343_v7, %v1324_v11 }
 0x248   :  { %v1365_v15 = vadd.f32 %v1364_v9, %v1325_v13  ;;  %v1279_v16 = vpop.f32.mrb[68].mxu1 }
 0x249   :  { %v1326_v17 = vmax.f32 %v1279_v16, 0.0  ;;  %v1281_v18 = vpop.f32.mrb[69].mxu1 }
 0x24a   :  { %v1327_v19 = vmax.f32 %v1281_v18, 0.0 }
 0x24b   :  { %v1345_v20 = vadd.f32 %v1344_v14, %v1326_v17 }
 0x24c   :  { %v1366_v21 = vadd.f32 %v1365_v15, %v1327_v19  ;;  %v1285_v23 = vpop.f32.mrb[70].mxu1 }
 0x24d   :  { %v1328_v24 = vmax.f32 %v1285_v23, 0.0  ;;  %v1287_v26 = vpop.f32.mrb[71].mxu1 }
 0x24e   :  { %v1329_v27 = vmax.f32 %v1287_v26, 0.0 }
 0x24f   :  { %v1346_v29 = vadd.f32 %v1345_v20, %v1328_v24 }
 0x250   :  { %v1367_v31 = vadd.f32 %v1366_v21, %v1329_v27  ;;  %v1291_v32 = vpop.f32.mrb[72].mxu1 }
 0x251   :  { %v1330_v33 = vmax.f32 %v1291_v32, 0.0  ;;  %v1293_v34 = vpop.f32.mrb[73].mxu1 }
 0x252   :  { %v1331_v35 = vmax.f32 %v1293_v34, 0.0 }
 0x253   :  { %v1347_v37 = vadd.f32 %v1346_v29, %v1330_v33 }
 0x254   :  { %v1368_v39 = vadd.f32 %v1367_v31, %v1331_v35  ;;  %v1297_v40 = vpop.f32.mrb[74].mxu1 }
 0x255   :  { %v1332_v41 = vmax.f32 %v1297_v40, 0.0  ;;  %v1299_v42 = vpop.f32.mrb[75].mxu1 }
 0x256   :  { %v1333_v43 = vmax.f32 %v1299_v42, 0.0 }
 0x257   :  { %v1348_v45 = vadd.f32 %v1347_v37, %v1332_v41 }
 0x258   :  { %v1369_v47 = vadd.f32 %v1368_v39, %v1333_v43 }
 0x259   :  { %v1349_v48 = vrot.slane %v1348_v45, 4 }
 0x25a   :  { %v1370_v49 = vrot.slane %v1369_v47, 4 }
 0x25b   :  { %v1350_v51 = vadd.f32 %v1349_v48, %v1348_v45 }
 0x25c   :  { %v1371_v53 = vadd.f32 %v1370_v49, %v1369_v47 }
 0x25d   :  { %v1351_v54 = vrot.slane %v1350_v51, 2 }
 0x25e   :  { %v1372_v1 = vrot.slane %v1371_v53, 2 }
 0x25f   :  { %v1352_v55 = vadd.f32 %v1351_v54, %v1350_v51 }
 0x260   :  { %v1373_v56 = vadd.f32 %v1372_v1, %v1371_v53 }
 0x261   :  { %v1353_v8 = vrot.slane %v1352_v55, 1 }
 0x262   :  { %v1374_v57 = vrot.slane %v1373_v56, 1 }
 0x263   :  { %v1354_v59 = vadd.f32 %v1353_v8, %v1352_v55 }
 0x264   :  { %v1375_v61 = vadd.f32 %v1374_v57, %v1373_v56 }
 0x265   :  { %v1376_v62 = vadd.f32 %v1354_v59, %v1034_v58 }
 0x266   :  { %v1377_v63 = vadd.f32 %v1375_v61, %v1055_v60 }
 0x267   :  { %v1379_v2 = vsel %vm1378_vm2, %v4371_v22, %v1376_v62 }
 0x268   :  { %v4381_v4 = vmul.f32 0.00390625, %v1379_v2  ;;  %v1380_v5 = vsel %vm1378_vm2, %v4373_v25, %v1377_v63 }
 0x269   :  { %v1382_v7 = vmul.f32 0.00390625, %v1380_v5 }
 0x26a   :  { %4115 = dma.done.wait [#allocation3], 49152 }
 0x26b   :  { %4116 = vsyncadd [#allocation3], 4294918144  ;;  %v4385_v9 = vpack.c.bf16 %v1382_v7, %v1382_v7  ;;  %v1396_v10 = vld [vmem:[#allocation2 + $0x8] sm:$0xff]  ;;  %v1398_v11 = vld [vmem:[#allocation2 + $0x18] sm:$0xff]  ;;  %vm4134_vm3 = vmmov 0   ;;  %vm3340_vm4 = vcmask 64512  }
 0x26c   :  { %v1395_v12 = vld [vmem:[#allocation2] sm:$0xff]  ;;  %1902 = vmatprep.subr.bf16.mxu0 %v1396_v10  ;;  %1943 = vmatprep.subr.bf16.mxu1 %v1398_v11  ;;  %v1397_v22 = vld [vmem:[#allocation2 + $0x10] sm:$0xff]  ;;  %v1420_v13 = vld [vmem:[#allocation2 + $0xc8] sm:$0xff]  ;;  %vm3454_vm5 = vcmask 1041408   ;;  %vm3450_vm6 = vcmask 408576   ;;  %vm3574_vm7 = vcmask 1043456  }
 0x26d   :  { %1934 = vmatprep.mubr.bf16.mxu0 %v4385_v9  ;;  %1975 = vmatprep.mubr.bf16.mxu1 %v4385_v9  ;;  %v1422_v14 = vld [vmem:[#allocation2 + $0xd8] sm:$0xff]  ;;  %v1419_v25 = vld [vmem:[#allocation2 + $0xc0] sm:$0xff]  ;;  %v1421_v15 = vld [vmem:[#allocation2 + $0xd0] sm:$0xff]  ;;  %vm3570_vm8 = vcmask 818176   ;;  %s4136_s0 = smov [#allocation10]   ;;  %vm3648_vm9 = vcmask 140288  }
 0x26e   :  { %1903 = vmatpush1.bf16.msra.mxu0 %v1395_v12  ;;  %1944 = vmatpush1.bf16.msra.mxu1 %v1397_v22  ;;  %v1444_v16 = vld [vmem:[#allocation2 + $0x188] sm:$0xff]  ;;  %v1446_v17 = vld [vmem:[#allocation2 + $0x198] sm:$0xff]  ;;  %v1443_v18 = vld [vmem:[#allocation2 + $0x180] sm:$0xff]  ;;  %s3656_s4 = sshll.u32 %s4136_s0, 4  ;;  %s3657_s4 = int_to_ptr.vmem [resolvable:$true] %s3656_s4 }
 0x26f   :  { %1904 = vmatprep.subr.bf16.mxu0 %v1420_v13  ;;  %1945 = vmatprep.subr.bf16.mxu1 %v1422_v14  ;;  %v1445_v19 = vld [vmem:[#allocation2 + $0x190] sm:$0xff]  ;;  %v1468_v20 = vld [vmem:[#allocation2 + $0x248] sm:$0xff]  ;;  %v1470_v21 = vld [vmem:[#allocation2 + $0x258] sm:$0xff]  ;;  %v4391_v14 = vpack.c.bf16 %v4381_v4, %v4381_v4  ;;  %s4089_s22 = scalar_lea.vmem %s3657_s4, 32  ;;  %p4094_p11 = scmp.lt.s32.totalorder %s3657_s4, %s3657_s4 }
 0x270   :  { %v1467_v23 = vld [vmem:[#allocation2 + $0x240] sm:$0xff]  ;;  %v1469_v24 = vld [vmem:[#allocation2 + $0x250] sm:$0xff]  ;;  %v1492_v26 = vld [vmem:[#allocation2 + $0x308] sm:$0xff]  ;;  %p4090_p10 = scmp.ne.s32.totalorder %s3657_s4, %s4089_s22  ;;  %p4095_p12 = scmp.lt.s32.totalorder %s4089_s22, %s4089_s22 }
 0x271   :  { %v1494_v27 = vld [vmem:[#allocation2 + $0x318] sm:$0xff]  ;;  %v1491_v28 = vld [vmem:[#allocation2 + $0x300] sm:$0xff]  ;;  %v1493_v29 = vld [vmem:[#allocation2 + $0x310] sm:$0xff] }
 0x272   :  { %1905 = vmatpush1.bf16.msra.mxu0 %v1419_v25  ;;  %1946 = vmatpush1.bf16.msra.mxu1 %v1421_v15  ;;  %v1516_v30 = vld [vmem:[#allocation2 + $0x3c8] sm:$0xff]  ;;  %v1518_v31 = vld [vmem:[#allocation2 + $0x3d8] sm:$0xff]  ;;  %v1515_v32 = vld [vmem:[#allocation2 + $0x3c0] sm:$0xff]  ;;  %p4096_p13 = por %p4095_p12, %p4094_p11 }
 0x273   :  { %1906 = vmatprep.subr.bf16.mxu0 %v1444_v16  ;;  %1947 = vmatprep.subr.bf16.mxu1 %v1446_v17  ;;  %v1517_v33 = vld [vmem:[#allocation2 + $0x3d0] sm:$0xff]  ;;  %v1540_v34 = vld [vmem:[#allocation2 + $0x488] sm:$0xff]  ;;  %v1542_v35 = vld [vmem:[#allocation2 + $0x498] sm:$0xff] }
 0x274   :  { %v1539_v36 = vld [vmem:[#allocation2 + $0x480] sm:$0xff]  ;;  %v1541_v37 = vld [vmem:[#allocation2 + $0x490] sm:$0xff]  ;;  %v1564_v38 = vld [vmem:[#allocation2 + $0x548] sm:$0xff]  ;;  %p4097_p0 = pnand %p4096_p13, %p4090_p10 }
 0x275   :  { %v1566_v39 = vld [vmem:[#allocation2 + $0x558] sm:$0xff]  ;;  %v1563_v40 = vld [vmem:[#allocation2 + $0x540] sm:$0xff]  ;;  %v1565_v41 = vld [vmem:[#allocation2 + $0x550] sm:$0xff] }
 0x276   :  { %1907 = vmatpush1.bf16.msra.mxu0 %v1443_v18  ;;  %1948 = vmatpush1.bf16.msra.mxu1 %v1445_v19  ;;  %v1588_v42 = vld [vmem:[#allocation2 + $0x608] sm:$0xff]  ;;  %v1590_v43 = vld [vmem:[#allocation2 + $0x618] sm:$0xff]  ;;  %v1587_v44 = vld [vmem:[#allocation2 + $0x600] sm:$0xff] }
 0x277   :  { %1908 = vmatprep.subr.bf16.mxu0 %v1468_v20  ;;  %1949 = vmatprep.subr.bf16.mxu1 %v1470_v21  ;;  %v1589_v45 = vld [vmem:[#allocation2 + $0x610] sm:$0xff]  ;;  %v1612_v46 = vld [vmem:[#allocation2 + $0x6c8] sm:$0xff]  ;;  %v1614_v47 = vld [vmem:[#allocation2 + $0x6d8] sm:$0xff] }
 0x278   :  { %v1611_v48 = vld [vmem:[#allocation2 + $0x6c0] sm:$0xff]  ;;  %v1613_v49 = vld [vmem:[#allocation2 + $0x6d0] sm:$0xff]  ;;  %v1636_v50 = vld [vmem:[#allocation2 + $0x788] sm:$0xff] }
 0x279   :  { %v1638_v51 = vld [vmem:[#allocation2 + $0x798] sm:$0xff]  ;;  %v1635_v52 = vld [vmem:[#allocation2 + $0x780] sm:$0xff]  ;;  %v1637_v53 = vld [vmem:[#allocation2 + $0x790] sm:$0xff] }
 0x27a   :  { %1909 = vmatpush1.bf16.msra.mxu0 %v1467_v23  ;;  %1950 = vmatpush1.bf16.msra.mxu1 %v1469_v24  ;;  %v1660_v54 = vld [vmem:[#allocation2 + $0x848] sm:$0xff]  ;;  %v1662_v1 = vld [vmem:[#allocation2 + $0x858] sm:$0xff]  ;;  %v1659_v6 = vld [vmem:[#allocation2 + $0x840] sm:$0xff] }
 0x27b   :  { %1910 = vmatprep.subr.bf16.mxu0 %v1492_v26  ;;  %1951 = vmatprep.subr.bf16.mxu1 %v1494_v27  ;;  %v1661_v55 = vld [vmem:[#allocation2 + $0x850] sm:$0xff]  ;;  %v1684_v3 = vld [vmem:[#allocation2 + $0x908] sm:$0xff]  ;;  %v1686_v56 = vld [vmem:[#allocation2 + $0x918] sm:$0xff] }
 0x27c   :  { %v1683_v8 = vld [vmem:[#allocation2 + $0x900] sm:$0xff]  ;;  %v1685_v57 = vld [vmem:[#allocation2 + $0x910] sm:$0xff]  ;;  %v1708_v58 = vld [vmem:[#allocation2 + $0x9c8] sm:$0xff] }
 0x27d   :  { %v1710_v59 = vld [vmem:[#allocation2 + $0x9d8] sm:$0xff]  ;;  %v1707_v60 = vld [vmem:[#allocation2 + $0x9c0] sm:$0xff]  ;;  %v1709_v61 = vld [vmem:[#allocation2 + $0x9d0] sm:$0xff] }
 0x27e   :  { %1911 = vmatpush1.bf16.msra.mxu0 %v1491_v28  ;;  %1952 = vmatpush1.bf16.msra.mxu1 %v1493_v29  ;;  %v1732_v62 = vld [vmem:[#allocation2 + $0xa88] sm:$0xff]  ;;  %v1734_v63 = vld [vmem:[#allocation2 + $0xa98] sm:$0xff]  ;;  %v1731_v2 = vld [vmem:[#allocation2 + $0xa80] sm:$0xff] }
 0x27f   :  { %1912 = vmatprep.subr.bf16.mxu0 %v1516_v30  ;;  %1953 = vmatprep.subr.bf16.mxu1 %v1518_v31  ;;  %v1733_v5 = vld [vmem:[#allocation2 + $0xa90] sm:$0xff]  ;;  %v1756_v7 = vld [vmem:[#allocation2 + $0xb48] sm:$0xff]  ;;  %v1758_v10 = vld [vmem:[#allocation2 + $0xb58] sm:$0xff] }
 0x280   :  { %v1755_v11 = vld [vmem:[#allocation2 + $0xb40] sm:$0xff]  ;;  %v1757_v12 = vld [vmem:[#allocation2 + $0xb50] sm:$0xff]  ;;  %v1400_v22 = vld [vmem:[#allocation2 + $0x28] sm:$0xff] }
 0x281   :  { %v1402_v13 = vld [vmem:[#allocation2 + $0x38] sm:$0xff]  ;;  %v1399_v25 = vld [vmem:[#allocation2 + $0x20] sm:$0xff]  ;;  %v1401_v15 = vld [vmem:[#allocation2 + $0x30] sm:$0xff] }
 0x282   :  { %1913 = vmatpush1.bf16.msra.mxu0 %v1515_v32  ;;  %1954 = vmatpush1.bf16.msra.mxu1 %v1517_v33  ;;  %v1424_v16 = vld [vmem:[#allocation2 + $0xe8] sm:$0xff]  ;;  %v1426_v17 = vld [vmem:[#allocation2 + $0xf8] sm:$0xff]  ;;  %v1423_v18 = vld [vmem:[#allocation2 + $0xe0] sm:$0xff] }
 0x283   :  { %1914 = vmatprep.subr.bf16.mxu0 %v1540_v34  ;;  %1955 = vmatprep.subr.bf16.mxu1 %v1542_v35  ;;  %v1425_v19 = vld [vmem:[#allocation2 + $0xf0] sm:$0xff]  ;;  %v1448_v4 = vld [vmem:[#allocation2 + $0x1a8] sm:$0xff]  ;;  %v1450_v20 = vld [vmem:[#allocation2 + $0x1b8] sm:$0xff] }
 0x284   :  { %v1447_v21 = vld [vmem:[#allocation2 + $0x1a0] sm:$0xff]  ;;  %v1449_v23 = vld [vmem:[#allocation2 + $0x1b0] sm:$0xff]  ;;  %v1472_v24 = vld [vmem:[#allocation2 + $0x268] sm:$0xff] }
 0x285   :  { %v1474_v26 = vld [vmem:[#allocation2 + $0x278] sm:$0xff]  ;;  %v1471_v27 = vld [vmem:[#allocation2 + $0x260] sm:$0xff]  ;;  %v1473_v28 = vld [vmem:[#allocation2 + $0x270] sm:$0xff] }
 0x286   :  { %1915 = vmatpush1.bf16.msra.mxu0 %v1539_v36  ;;  %1956 = vmatpush1.bf16.msra.mxu1 %v1541_v37  ;;  %v1496_v29 = vld [vmem:[#allocation2 + $0x328] sm:$0xff]  ;;  %v1498_v30 = vld [vmem:[#allocation2 + $0x338] sm:$0xff]  ;;  %v1495_v31 = vld [vmem:[#allocation2 + $0x320] sm:$0xff] }
 0x287   :  { %1916 = vmatprep.subr.bf16.mxu0 %v1564_v38  ;;  %1957 = vmatprep.subr.bf16.mxu1 %v1566_v39  ;;  %v1497_v32 = vld [vmem:[#allocation2 + $0x330] sm:$0xff]  ;;  %v1520_v33 = vld [vmem:[#allocation2 + $0x3e8] sm:$0xff]  ;;  %v1522_v34 = vld [vmem:[#allocation2 + $0x3f8] sm:$0xff] }
 0x288   :  { %v1519_v35 = vld [vmem:[#allocation2 + $0x3e0] sm:$0xff]  ;;  %v1521_v36 = vld [vmem:[#allocation2 + $0x3f0] sm:$0xff]  ;;  %v1544_v37 = vld [vmem:[#allocation2 + $0x4a8] sm:$0xff] }
 0x289   :  { %v1546_v38 = vld [vmem:[#allocation2 + $0x4b8] sm:$0xff]  ;;  %v1543_v39 = vld [vmem:[#allocation2 + $0x4a0] sm:$0xff] }
 0x28a   :  { %1917 = vmatpush1.bf16.msra.mxu0 %v1563_v40  ;;  %1958 = vmatpush1.bf16.msra.mxu1 %v1565_v41  ;;  %v1545_v40 = vld [vmem:[#allocation2 + $0x4b0] sm:$0xff]  ;;  %v1568_v41 = vld [vmem:[#allocation2 + $0x568] sm:$0xff] }
 0x28b   :  { %1918 = vmatprep.subr.bf16.mxu0 %v1588_v42  ;;  %1959 = vmatprep.subr.bf16.mxu1 %v1590_v43  ;;  %v1570_v42 = vld [vmem:[#allocation2 + $0x578] sm:$0xff]  ;;  %v1567_v43 = vld [vmem:[#allocation2 + $0x560] sm:$0xff] }
 0x28e   :  { %1919 = vmatpush1.bf16.msra.mxu0 %v1587_v44  ;;  %1960 = vmatpush1.bf16.msra.mxu1 %v1589_v45  ;;  %v1569_v44 = vld [vmem:[#allocation2 + $0x570] sm:$0xff]  ;;  %v1592_v45 = vld [vmem:[#allocation2 + $0x628] sm:$0xff] }
 0x28f   :  { %1920 = vmatprep.subr.bf16.mxu0 %v1612_v46  ;;  %1961 = vmatprep.subr.bf16.mxu1 %v1614_v47  ;;  %v1594_v46 = vld [vmem:[#allocation2 + $0x638] sm:$0xff]  ;;  %v1591_v47 = vld [vmem:[#allocation2 + $0x620] sm:$0xff] }
 0x292   :  { %1921 = vmatpush1.bf16.msra.mxu0 %v1611_v48  ;;  %1962 = vmatpush1.bf16.msra.mxu1 %v1613_v49  ;;  %v1593_v48 = vld [vmem:[#allocation2 + $0x630] sm:$0xff]  ;;  %v1616_v49 = vld [vmem:[#allocation2 + $0x6e8] sm:$0xff] }
 0x293   :  { %1922 = vmatprep.subr.bf16.mxu0 %v1636_v50  ;;  %1963 = vmatprep.subr.bf16.mxu1 %v1638_v51  ;;  %v1618_v50 = vld [vmem:[#allocation2 + $0x6f8] sm:$0xff]  ;;  %v1615_v51 = vld [vmem:[#allocation2 + $0x6e0] sm:$0xff] }
 0x296   :  { %1923 = vmatpush1.bf16.msra.mxu0 %v1635_v52  ;;  %1964 = vmatpush1.bf16.msra.mxu1 %v1637_v53  ;;  %v1617_v52 = vld [vmem:[#allocation2 + $0x6f0] sm:$0xff]  ;;  %v1640_v53 = vld [vmem:[#allocation2 + $0x7a8] sm:$0xff] }
 0x297   :  { %1924 = vmatprep.subr.bf16.mxu0 %v1660_v54  ;;  %1965 = vmatprep.subr.bf16.mxu1 %v1662_v1  ;;  %v1642_v54 = vld [vmem:[#allocation2 + $0x7b8] sm:$0xff]  ;;  %v1639_v1 = vld [vmem:[#allocation2 + $0x7a0] sm:$0xff] }
 0x29a   :  { %1925 = vmatpush1.bf16.msra.mxu0 %v1659_v6  ;;  %1966 = vmatpush1.bf16.msra.mxu1 %v1661_v55  ;;  %v1641_v6 = vld [vmem:[#allocation2 + $0x7b0] sm:$0xff]  ;;  %v1664_v55 = vld [vmem:[#allocation2 + $0x868] sm:$0xff] }
 0x29b   :  { %1926 = vmatprep.subr.bf16.mxu0 %v1684_v3  ;;  %1967 = vmatprep.subr.bf16.mxu1 %v1686_v56  ;;  %v1666_v3 = vld [vmem:[#allocation2 + $0x878] sm:$0xff]  ;;  %v1663_v56 = vld [vmem:[#allocation2 + $0x860] sm:$0xff] }
 0x29e   :  { %1927 = vmatpush1.bf16.msra.mxu0 %v1683_v8  ;;  %1968 = vmatpush1.bf16.msra.mxu1 %v1685_v57  ;;  %v1665_v8 = vld [vmem:[#allocation2 + $0x870] sm:$0xff]  ;;  %v1688_v57 = vld [vmem:[#allocation2 + $0x928] sm:$0xff] }
 0x29f   :  { %1928 = vmatprep.subr.bf16.mxu0 %v1708_v58  ;;  %1969 = vmatprep.subr.bf16.mxu1 %v1710_v59  ;;  %v1690_v58 = vld [vmem:[#allocation2 + $0x938] sm:$0xff]  ;;  %v1687_v59 = vld [vmem:[#allocation2 + $0x920] sm:$0xff] }
 0x2a2   :  { %1929 = vmatpush1.bf16.msra.mxu0 %v1707_v60  ;;  %1970 = vmatpush1.bf16.msra.mxu1 %v1709_v61  ;;  %v1689_v60 = vld [vmem:[#allocation2 + $0x930] sm:$0xff]  ;;  %v1712_v61 = vld [vmem:[#allocation2 + $0x9e8] sm:$0xff] }
 0x2a3   :  { %1930 = vmatprep.subr.bf16.mxu0 %v1732_v62  ;;  %1971 = vmatprep.subr.bf16.mxu1 %v1734_v63  ;;  %v1714_v62 = vld [vmem:[#allocation2 + $0x9f8] sm:$0xff]  ;;  %v1711_v63 = vld [vmem:[#allocation2 + $0x9e0] sm:$0xff] }
 0x2a6   :  { %1931 = vmatpush1.bf16.msra.mxu0 %v1731_v2  ;;  %1972 = vmatpush1.bf16.msra.mxu1 %v1733_v5  ;;  %v1713_v2 = vld [vmem:[#allocation2 + $0x9f0] sm:$0xff]  ;;  %v1736_v5 = vld [vmem:[#allocation2 + $0xaa8] sm:$0xff] }
 0x2a7   :  { %1932 = vmatprep.subr.bf16.mxu0 %v1756_v7  ;;  %1973 = vmatprep.subr.bf16.mxu1 %v1758_v10  ;;  %v1738_v7 = vld [vmem:[#allocation2 + $0xab8] sm:$0xff]  ;;  %v1735_v10 = vld [vmem:[#allocation2 + $0xaa0] sm:$0xff] }
 0x2aa   :  { %1933 = vmatpush1.bf16.msra.mxu0 %v1755_v11  ;;  %1974 = vmatpush1.bf16.msra.mxu1 %v1757_v12  ;;  %v1737_v11 = vld [vmem:[#allocation2 + $0xab0] sm:$0xff]  ;;  %v1760_v12 = vld [vmem:[#allocation2 + $0xb68] sm:$0xff] }
 0x2ab   :  { %1984 = vmatprep.subr.bf16.mxu0 %v1400_v22  ;;  %2025 = vmatprep.subr.bf16.mxu1 %v1402_v13  ;;  %v1762_v22 = vld [vmem:[#allocation2 + $0xb78] sm:$0xff]  ;;  %v1759_v13 = vld [vmem:[#allocation2 + $0xb60] sm:$0xff] }
 0x2ad   :  { %1935 = vmatmul.mubr.bf16.vlgmr.msra.gmra.mrb[52].mxu0 %v4391_v14  ;;  %1976 = vmatmul.mubr.bf16.vlgmr.msra.gmra.mrb[76].mxu1 %v4391_v14 }
 0x2ae   :  { %1985 = vmatpush1.bf16.msra.mxu0 %v1399_v25  ;;  %2026 = vmatpush1.bf16.msra.mxu1 %v1401_v15  ;;  %v1761_v25 = vld [vmem:[#allocation2 + $0xb70] sm:$0xff]  ;;  %v1404_v15 = vld [vmem:[#allocation2 + $0x48] sm:$0xff] }
 0x2af   :  { %1986 = vmatprep.subr.bf16.mxu0 %v1424_v16  ;;  %2027 = vmatprep.subr.bf16.mxu1 %v1426_v17  ;;  %v1406_v16 = vld [vmem:[#allocation2 + $0x58] sm:$0xff]  ;;  %v1403_v17 = vld [vmem:[#allocation2 + $0x40] sm:$0xff] }
 0x2b0   :  { %2016 = vmatprep.mubr.bf16.mxu0 %v4385_v9  ;;  %2057 = vmatprep.mubr.bf16.mxu1 %v4385_v9 }
 0x2b2   :  { %1987 = vmatpush1.bf16.msra.mxu0 %v1423_v18  ;;  %2028 = vmatpush1.bf16.msra.mxu1 %v1425_v19  ;;  %v1405_v18 = vld [vmem:[#allocation2 + $0x50] sm:$0xff]  ;;  %v1428_v19 = vld [vmem:[#allocation2 + $0x108] sm:$0xff] }
 0x2b3   :  { %1988 = vmatprep.subr.bf16.mxu0 %v1448_v4  ;;  %2029 = vmatprep.subr.bf16.mxu1 %v1450_v20  ;;  %v1430_v4 = vld [vmem:[#allocation2 + $0x118] sm:$0xff]  ;;  %v1427_v20 = vld [vmem:[#allocation2 + $0x100] sm:$0xff] }
 0x2b6   :  { %1989 = vmatpush1.bf16.msra.mxu0 %v1447_v21  ;;  %2030 = vmatpush1.bf16.msra.mxu1 %v1449_v23  ;;  %v1429_v21 = vld [vmem:[#allocation2 + $0x110] sm:$0xff]  ;;  %v1452_v23 = vld [vmem:[#allocation2 + $0x1c8] sm:$0xff] }
 0x2b7   :  { %1990 = vmatprep.subr.bf16.mxu0 %v1472_v24  ;;  %2031 = vmatprep.subr.bf16.mxu1 %v1474_v26  ;;  %v1454_v24 = vld [vmem:[#allocation2 + $0x1d8] sm:$0xff]  ;;  %v1451_v26 = vld [vmem:[#allocation2 + $0x1c0] sm:$0xff] }
 0x2ba   :  { %1991 = vmatpush1.bf16.msra.mxu0 %v1471_v27  ;;  %2032 = vmatpush1.bf16.msra.mxu1 %v1473_v28  ;;  %v1453_v27 = vld [vmem:[#allocation2 + $0x1d0] sm:$0xff]  ;;  %v1476_v28 = vld [vmem:[#allocation2 + $0x288] sm:$0xff] }
 0x2bb   :  { %1992 = vmatprep.subr.bf16.mxu0 %v1496_v29  ;;  %2033 = vmatprep.subr.bf16.mxu1 %v1498_v30  ;;  %v1478_v29 = vld [vmem:[#allocation2 + $0x298] sm:$0xff]  ;;  %v1475_v30 = vld [vmem:[#allocation2 + $0x280] sm:$0xff] }
 0x2be   :  { %1993 = vmatpush1.bf16.msra.mxu0 %v1495_v31  ;;  %2034 = vmatpush1.bf16.msra.mxu1 %v1497_v32  ;;  %v1477_v31 = vld [vmem:[#allocation2 + $0x290] sm:$0xff]  ;;  %v1500_v32 = vld [vmem:[#allocation2 + $0x348] sm:$0xff] }
 0x2bf   :  { %1994 = vmatprep.subr.bf16.mxu0 %v1520_v33  ;;  %2035 = vmatprep.subr.bf16.mxu1 %v1522_v34  ;;  %v1502_v33 = vld [vmem:[#allocation2 + $0x358] sm:$0xff]  ;;  %v1499_v34 = vld [vmem:[#allocation2 + $0x340] sm:$0xff] }
 0x2c2   :  { %1995 = vmatpush1.bf16.msra.mxu0 %v1519_v35  ;;  %2036 = vmatpush1.bf16.msra.mxu1 %v1521_v36  ;;  %v1501_v35 = vld [vmem:[#allocation2 + $0x350] sm:$0xff]  ;;  %v1524_v36 = vld [vmem:[#allocation2 + $0x408] sm:$0xff] }
 0x2c3   :  { %1996 = vmatprep.subr.bf16.mxu0 %v1544_v37  ;;  %2037 = vmatprep.subr.bf16.mxu1 %v1546_v38  ;;  %v1526_v37 = vld [vmem:[#allocation2 + $0x418] sm:$0xff]  ;;  %v1523_v38 = vld [vmem:[#allocation2 + $0x400] sm:$0xff] }
 0x2c6   :  { %1997 = vmatpush1.bf16.msra.mxu0 %v1543_v39  ;;  %2038 = vmatpush1.bf16.msra.mxu1 %v1545_v40  ;;  %v1525_v39 = vld [vmem:[#allocation2 + $0x410] sm:$0xff]  ;;  %v1548_v40 = vld [vmem:[#allocation2 + $0x4c8] sm:$0xff] }
 0x2c7   :  { %1998 = vmatprep.subr.bf16.mxu0 %v1568_v41  ;;  %2039 = vmatprep.subr.bf16.mxu1 %v1570_v42  ;;  %v1550_v41 = vld [vmem:[#allocation2 + $0x4d8] sm:$0xff]  ;;  %v1547_v42 = vld [vmem:[#allocation2 + $0x4c0] sm:$0xff] }
 0x2ca   :  { %1999 = vmatpush1.bf16.msra.mxu0 %v1567_v43  ;;  %2040 = vmatpush1.bf16.msra.mxu1 %v1569_v44  ;;  %v1549_v43 = vld [vmem:[#allocation2 + $0x4d0] sm:$0xff]  ;;  %v1572_v44 = vld [vmem:[#allocation2 + $0x588] sm:$0xff] }
 0x2cb   :  { %2000 = vmatprep.subr.bf16.mxu0 %v1592_v45  ;;  %2041 = vmatprep.subr.bf16.mxu1 %v1594_v46  ;;  %v1574_v45 = vld [vmem:[#allocation2 + $0x598] sm:$0xff]  ;;  %v1571_v46 = vld [vmem:[#allocation2 + $0x580] sm:$0xff] }
 0x2ce   :  { %2001 = vmatpush1.bf16.msra.mxu0 %v1591_v47  ;;  %2042 = vmatpush1.bf16.msra.mxu1 %v1593_v48  ;;  %v1573_v47 = vld [vmem:[#allocation2 + $0x590] sm:$0xff]  ;;  %v1596_v48 = vld [vmem:[#allocation2 + $0x648] sm:$0xff] }
 0x2cf   :  { %2002 = vmatprep.subr.bf16.mxu0 %v1616_v49  ;;  %2043 = vmatprep.subr.bf16.mxu1 %v1618_v50  ;;  %v1598_v49 = vld [vmem:[#allocation2 + $0x658] sm:$0xff]  ;;  %v1595_v50 = vld [vmem:[#allocation2 + $0x640] sm:$0xff] }
 0x2d2   :  { %2003 = vmatpush1.bf16.msra.mxu0 %v1615_v51  ;;  %2044 = vmatpush1.bf16.msra.mxu1 %v1617_v52  ;;  %v1597_v51 = vld [vmem:[#allocation2 + $0x650] sm:$0xff]  ;;  %v1620_v52 = vld [vmem:[#allocation2 + $0x708] sm:$0xff] }
 0x2d3   :  { %2004 = vmatprep.subr.bf16.mxu0 %v1640_v53  ;;  %2045 = vmatprep.subr.bf16.mxu1 %v1642_v54  ;;  %v1622_v53 = vld [vmem:[#allocation2 + $0x718] sm:$0xff]  ;;  %v1619_v54 = vld [vmem:[#allocation2 + $0x700] sm:$0xff] }
 0x2d6   :  { %2005 = vmatpush1.bf16.msra.mxu0 %v1639_v1  ;;  %2046 = vmatpush1.bf16.msra.mxu1 %v1641_v6  ;;  %v1621_v1 = vld [vmem:[#allocation2 + $0x710] sm:$0xff]  ;;  %v1644_v6 = vld [vmem:[#allocation2 + $0x7c8] sm:$0xff] }
 0x2d7   :  { %2006 = vmatprep.subr.bf16.mxu0 %v1664_v55  ;;  %2047 = vmatprep.subr.bf16.mxu1 %v1666_v3  ;;  %v1646_v55 = vld [vmem:[#allocation2 + $0x7d8] sm:$0xff]  ;;  %v1643_v3 = vld [vmem:[#allocation2 + $0x7c0] sm:$0xff] }
 0x2da   :  { %2007 = vmatpush1.bf16.msra.mxu0 %v1663_v56  ;;  %2048 = vmatpush1.bf16.msra.mxu1 %v1665_v8  ;;  %v1645_v56 = vld [vmem:[#allocation2 + $0x7d0] sm:$0xff]  ;;  %v1668_v8 = vld [vmem:[#allocation2 + $0x888] sm:$0xff] }
 0x2db   :  { %2008 = vmatprep.subr.bf16.mxu0 %v1688_v57  ;;  %2049 = vmatprep.subr.bf16.mxu1 %v1690_v58  ;;  %v1670_v57 = vld [vmem:[#allocation2 + $0x898] sm:$0xff]  ;;  %v1667_v58 = vld [vmem:[#allocation2 + $0x880] sm:$0xff] }
 0x2de   :  { %2009 = vmatpush1.bf16.msra.mxu0 %v1687_v59  ;;  %2050 = vmatpush1.bf16.msra.mxu1 %v1689_v60  ;;  %v1669_v59 = vld [vmem:[#allocation2 + $0x890] sm:$0xff]  ;;  %v1692_v60 = vld [vmem:[#allocation2 + $0x948] sm:$0xff] }
 0x2df   :  { %2010 = vmatprep.subr.bf16.mxu0 %v1712_v61  ;;  %2051 = vmatprep.subr.bf16.mxu1 %v1714_v62  ;;  %v1694_v61 = vld [vmem:[#allocation2 + $0x958] sm:$0xff]  ;;  %v1691_v62 = vld [vmem:[#allocation2 + $0x940] sm:$0xff] }
 0x2e2   :  { %2011 = vmatpush1.bf16.msra.mxu0 %v1711_v63  ;;  %2052 = vmatpush1.bf16.msra.mxu1 %v1713_v2  ;;  %v1693_v63 = vld [vmem:[#allocation2 + $0x950] sm:$0xff]  ;;  %v1716_v2 = vld [vmem:[#allocation2 + $0xa08] sm:$0xff] }
 0x2e3   :  { %2012 = vmatprep.subr.bf16.mxu0 %v1736_v5  ;;  %2053 = vmatprep.subr.bf16.mxu1 %v1738_v7  ;;  %v1718_v5 = vld [vmem:[#allocation2 + $0xa18] sm:$0xff]  ;;  %v1715_v7 = vld [vmem:[#allocation2 + $0xa00] sm:$0xff] }
 0x2e6   :  { %2013 = vmatpush1.bf16.msra.mxu0 %v1735_v10  ;;  %2054 = vmatpush1.bf16.msra.mxu1 %v1737_v11  ;;  %v1717_v10 = vld [vmem:[#allocation2 + $0xa10] sm:$0xff]  ;;  %v1740_v11 = vld [vmem:[#allocation2 + $0xac8] sm:$0xff] }
 0x2e7   :  { %2014 = vmatprep.subr.bf16.mxu0 %v1760_v12  ;;  %2055 = vmatprep.subr.bf16.mxu1 %v1762_v22  ;;  %v1742_v12 = vld [vmem:[#allocation2 + $0xad8] sm:$0xff]  ;;  %v1739_v22 = vld [vmem:[#allocation2 + $0xac0] sm:$0xff] }
 0x2ea   :  { %2015 = vmatpush1.bf16.msra.mxu0 %v1759_v13  ;;  %2056 = vmatpush1.bf16.msra.mxu1 %v1761_v25  ;;  %v1741_v13 = vld [vmem:[#allocation2 + $0xad0] sm:$0xff]  ;;  %v1764_v25 = vld [vmem:[#allocation2 + $0xb88] sm:$0xff] }
 0x2eb   :  { %2066 = vmatprep.subr.bf16.mxu0 %v1404_v15  ;;  %2107 = vmatprep.subr.bf16.mxu1 %v1406_v16  ;;  %v1766_v15 = vld [vmem:[#allocation2 + $0xb98] sm:$0xff]  ;;  %v1763_v16 = vld [vmem:[#allocation2 + $0xb80] sm:$0xff] }
 0x2ed   :  { %2017 = vmatmul.mubr.bf16.vlgmr.msra.gmra.mrb[56].mxu0 %v4391_v14  ;;  %2058 = vmatmul.mubr.bf16.vlgmr.msra.gmra.mrb[80].mxu1 %v4391_v14 }
 0x2ee   :  { %2067 = vmatpush1.bf16.msra.mxu0 %v1403_v17  ;;  %2108 = vmatpush1.bf16.msra.mxu1 %v1405_v18  ;;  %v1765_v17 = vld [vmem:[#allocation2 + $0xb90] sm:$0xff]  ;;  %v1408_v18 = vld [vmem:[#allocation2 + $0x68] sm:$0xff] }
 0x2ef   :  { %2068 = vmatprep.subr.bf16.mxu0 %v1428_v19  ;;  %2109 = vmatprep.subr.bf16.mxu1 %v1430_v4  ;;  %v1410_v19 = vld [vmem:[#allocation2 + $0x78] sm:$0xff]  ;;  %v1407_v4 = vld [vmem:[#allocation2 + $0x60] sm:$0xff] }
 0x2f0   :  { %2098 = vmatprep.mubr.bf16.mxu0 %v4385_v9  ;;  %2139 = vmatprep.mubr.bf16.mxu1 %v4385_v9 }
 0x2f2   :  { %2069 = vmatpush1.bf16.msra.mxu0 %v1427_v20  ;;  %2110 = vmatpush1.bf16.msra.mxu1 %v1429_v21  ;;  %v1409_v20 = vld [vmem:[#allocation2 + $0x70] sm:$0xff]  ;;  %v1432_v21 = vld [vmem:[#allocation2 + $0x128] sm:$0xff] }
 0x2f3   :  { %2070 = vmatprep.subr.bf16.mxu0 %v1452_v23  ;;  %2111 = vmatprep.subr.bf16.mxu1 %v1454_v24  ;;  %v1434_v23 = vld [vmem:[#allocation2 + $0x138] sm:$0xff]  ;;  %v1431_v24 = vld [vmem:[#allocation2 + $0x120] sm:$0xff] }
 0x2f6   :  { %2071 = vmatpush1.bf16.msra.mxu0 %v1451_v26  ;;  %2112 = vmatpush1.bf16.msra.mxu1 %v1453_v27  ;;  %v1433_v26 = vld [vmem:[#allocation2 + $0x130] sm:$0xff]  ;;  %v1456_v27 = vld [vmem:[#allocation2 + $0x1e8] sm:$0xff] }
 0x2f7   :  { %2072 = vmatprep.subr.bf16.mxu0 %v1476_v28  ;;  %2113 = vmatprep.subr.bf16.mxu1 %v1478_v29  ;;  %v1458_v28 = vld [vmem:[#allocation2 + $0x1f8] sm:$0xff]  ;;  %v1455_v29 = vld [vmem:[#allocation2 + $0x1e0] sm:$0xff] }
 0x2fa   :  { %2073 = vmatpush1.bf16.msra.mxu0 %v1475_v30  ;;  %2114 = vmatpush1.bf16.msra.mxu1 %v1477_v31  ;;  %v1457_v30 = vld [vmem:[#allocation2 + $0x1f0] sm:$0xff]  ;;  %v1480_v31 = vld [vmem:[#allocation2 + $0x2a8] sm:$0xff] }
 0x2fb   :  { %2074 = vmatprep.subr.bf16.mxu0 %v1500_v32  ;;  %2115 = vmatprep.subr.bf16.mxu1 %v1502_v33  ;;  %v1482_v32 = vld [vmem:[#allocation2 + $0x2b8] sm:$0xff]  ;;  %v1479_v33 = vld [vmem:[#allocation2 + $0x2a0] sm:$0xff] }
 0x2fe   :  { %2075 = vmatpush1.bf16.msra.mxu0 %v1499_v34  ;;  %2116 = vmatpush1.bf16.msra.mxu1 %v1501_v35  ;;  %v1481_v34 = vld [vmem:[#allocation2 + $0x2b0] sm:$0xff]  ;;  %v1504_v35 = vld [vmem:[#allocation2 + $0x368] sm:$0xff] }
 0x2ff   :  { %2076 = vmatprep.subr.bf16.mxu0 %v1524_v36  ;;  %2117 = vmatprep.subr.bf16.mxu1 %v1526_v37  ;;  %v1506_v36 = vld [vmem:[#allocation2 + $0x378] sm:$0xff]  ;;  %v1503_v37 = vld [vmem:[#allocation2 + $0x360] sm:$0xff] }
 0x302   :  { %2077 = vmatpush1.bf16.msra.mxu0 %v1523_v38  ;;  %2118 = vmatpush1.bf16.msra.mxu1 %v1525_v39  ;;  %v1505_v38 = vld [vmem:[#allocation2 + $0x370] sm:$0xff]  ;;  %v1528_v39 = vld [vmem:[#allocation2 + $0x428] sm:$0xff] }
 0x303   :  { %2078 = vmatprep.subr.bf16.mxu0 %v1548_v40  ;;  %2119 = vmatprep.subr.bf16.mxu1 %v1550_v41  ;;  %v1530_v40 = vld [vmem:[#allocation2 + $0x438] sm:$0xff]  ;;  %v1527_v41 = vld [vmem:[#allocation2 + $0x420] sm:$0xff] }
 0x306   :  { %2079 = vmatpush1.bf16.msra.mxu0 %v1547_v42  ;;  %2120 = vmatpush1.bf16.msra.mxu1 %v1549_v43  ;;  %v1529_v42 = vld [vmem:[#allocation2 + $0x430] sm:$0xff]  ;;  %v1552_v43 = vld [vmem:[#allocation2 + $0x4e8] sm:$0xff] }
 0x307   :  { %2080 = vmatprep.subr.bf16.mxu0 %v1572_v44  ;;  %2121 = vmatprep.subr.bf16.mxu1 %v1574_v45  ;;  %v1554_v44 = vld [vmem:[#allocation2 + $0x4f8] sm:$0xff]  ;;  %v1551_v45 = vld [vmem:[#allocation2 + $0x4e0] sm:$0xff] }
 0x30a   :  { %2081 = vmatpush1.bf16.msra.mxu0 %v1571_v46  ;;  %2122 = vmatpush1.bf16.msra.mxu1 %v1573_v47  ;;  %v1553_v46 = vld [vmem:[#allocation2 + $0x4f0] sm:$0xff]  ;;  %v1576_v47 = vld [vmem:[#allocation2 + $0x5a8] sm:$0xff] }
 0x30b   :  { %2082 = vmatprep.subr.bf16.mxu0 %v1596_v48  ;;  %2123 = vmatprep.subr.bf16.mxu1 %v1598_v49  ;;  %v1578_v48 = vld [vmem:[#allocation2 + $0x5b8] sm:$0xff]  ;;  %v1575_v49 = vld [vmem:[#allocation2 + $0x5a0] sm:$0xff] }
 0x30e   :  { %2083 = vmatpush1.bf16.msra.mxu0 %v1595_v50  ;;  %2124 = vmatpush1.bf16.msra.mxu1 %v1597_v51  ;;  %v1577_v50 = vld [vmem:[#allocation2 + $0x5b0] sm:$0xff]  ;;  %v1600_v51 = vld [vmem:[#allocation2 + $0x668] sm:$0xff] }
 0x30f   :  { %2084 = vmatprep.subr.bf16.mxu0 %v1620_v52  ;;  %2125 = vmatprep.subr.bf16.mxu1 %v1622_v53  ;;  %v1602_v52 = vld [vmem:[#allocation2 + $0x678] sm:$0xff]  ;;  %v1599_v53 = vld [vmem:[#allocation2 + $0x660] sm:$0xff] }
 0x312   :  { %2085 = vmatpush1.bf16.msra.mxu0 %v1619_v54  ;;  %2126 = vmatpush1.bf16.msra.mxu1 %v1621_v1  ;;  %v1601_v54 = vld [vmem:[#allocation2 + $0x670] sm:$0xff]  ;;  %v1624_v1 = vld [vmem:[#allocation2 + $0x728] sm:$0xff] }
 0x313   :  { %2086 = vmatprep.subr.bf16.mxu0 %v1644_v6  ;;  %2127 = vmatprep.subr.bf16.mxu1 %v1646_v55  ;;  %v1626_v6 = vld [vmem:[#allocation2 + $0x738] sm:$0xff]  ;;  %v1623_v55 = vld [vmem:[#allocation2 + $0x720] sm:$0xff] }
 0x316   :  { %2087 = vmatpush1.bf16.msra.mxu0 %v1643_v3  ;;  %2128 = vmatpush1.bf16.msra.mxu1 %v1645_v56  ;;  %v1625_v3 = vld [vmem:[#allocation2 + $0x730] sm:$0xff]  ;;  %v1648_v56 = vld [vmem:[#allocation2 + $0x7e8] sm:$0xff] }
 0x317   :  { %2088 = vmatprep.subr.bf16.mxu0 %v1668_v8  ;;  %2129 = vmatprep.subr.bf16.mxu1 %v1670_v57  ;;  %v1650_v8 = vld [vmem:[#allocation2 + $0x7f8] sm:$0xff]  ;;  %v1647_v57 = vld [vmem:[#allocation2 + $0x7e0] sm:$0xff] }
 0x31a   :  { %2089 = vmatpush1.bf16.msra.mxu0 %v1667_v58  ;;  %2130 = vmatpush1.bf16.msra.mxu1 %v1669_v59  ;;  %v1649_v58 = vld [vmem:[#allocation2 + $0x7f0] sm:$0xff]  ;;  %v1672_v59 = vld [vmem:[#allocation2 + $0x8a8] sm:$0xff] }
 0x31b   :  { %2090 = vmatprep.subr.bf16.mxu0 %v1692_v60  ;;  %2131 = vmatprep.subr.bf16.mxu1 %v1694_v61  ;;  %v1674_v60 = vld [vmem:[#allocation2 + $0x8b8] sm:$0xff]  ;;  %v1671_v61 = vld [vmem:[#allocation2 + $0x8a0] sm:$0xff] }
 0x31e   :  { %2091 = vmatpush1.bf16.msra.mxu0 %v1691_v62  ;;  %2132 = vmatpush1.bf16.msra.mxu1 %v1693_v63  ;;  %v1673_v62 = vld [vmem:[#allocation2 + $0x8b0] sm:$0xff]  ;;  %v1696_v63 = vld [vmem:[#allocation2 + $0x968] sm:$0xff] }
 0x31f   :  { %2092 = vmatprep.subr.bf16.mxu0 %v1716_v2  ;;  %2133 = vmatprep.subr.bf16.mxu1 %v1718_v5  ;;  %v1698_v2 = vld [vmem:[#allocation2 + $0x978] sm:$0xff]  ;;  %v1695_v5 = vld [vmem:[#allocation2 + $0x960] sm:$0xff] }
 0x322   :  { %2093 = vmatpush1.bf16.msra.mxu0 %v1715_v7  ;;  %2134 = vmatpush1.bf16.msra.mxu1 %v1717_v10  ;;  %v1697_v7 = vld [vmem:[#allocation2 + $0x970] sm:$0xff]  ;;  %v1720_v10 = vld [vmem:[#allocation2 + $0xa28] sm:$0xff] }
 0x323   :  { %2094 = vmatprep.subr.bf16.mxu0 %v1740_v11  ;;  %2135 = vmatprep.subr.bf16.mxu1 %v1742_v12  ;;  %v1722_v11 = vld [vmem:[#allocation2 + $0xa38] sm:$0xff]  ;;  %v1719_v12 = vld [vmem:[#allocation2 + $0xa20] sm:$0xff] }
 0x326   :  { %2095 = vmatpush1.bf16.msra.mxu0 %v1739_v22  ;;  %2136 = vmatpush1.bf16.msra.mxu1 %v1741_v13  ;;  %v1721_v22 = vld [vmem:[#allocation2 + $0xa30] sm:$0xff]  ;;  %v1744_v13 = vld [vmem:[#allocation2 + $0xae8] sm:$0xff] }
 0x327   :  { %2096 = vmatprep.subr.bf16.mxu0 %v1764_v25  ;;  %2137 = vmatprep.subr.bf16.mxu1 %v1766_v15  ;;  %v1746_v25 = vld [vmem:[#allocation2 + $0xaf8] sm:$0xff]  ;;  %v1743_v15 = vld [vmem:[#allocation2 + $0xae0] sm:$0xff] }
 0x32a   :  { %2097 = vmatpush1.bf16.msra.mxu0 %v1763_v16  ;;  %2138 = vmatpush1.bf16.msra.mxu1 %v1765_v17  ;;  %v1745_v16 = vld [vmem:[#allocation2 + $0xaf0] sm:$0xff]  ;;  %v1768_v17 = vld [vmem:[#allocation2 + $0xba8] sm:$0xff] }
 0x32b   :  { %2148 = vmatprep.subr.bf16.mxu0 %v1408_v18  ;;  %2189 = vmatprep.subr.bf16.mxu1 %v1410_v19  ;;  %v1770_v18 = vld [vmem:[#allocation2 + $0xbb8] sm:$0xff]  ;;  %v1767_v19 = vld [vmem:[#allocation2 + $0xba0] sm:$0xff] }
 0x32d   :  { %2099 = vmatmul.mubr.bf16.vlgmr.msra.gmra.mrb[60].mxu0 %v4391_v14  ;;  %2140 = vmatmul.mubr.bf16.vlgmr.msra.gmra.mrb[84].mxu1 %v4391_v14 }
 0x32e   :  { %2149 = vmatpush1.bf16.msra.mxu0 %v1407_v4  ;;  %2190 = vmatpush1.bf16.msra.mxu1 %v1409_v20  ;;  %v1769_v4 = vld [vmem:[#allocation2 + $0xbb0] sm:$0xff]  ;;  %v1412_v20 = vld [vmem:[#allocation2 + $0x88] sm:$0xff] }
 0x32f   :  { %2150 = vmatprep.subr.bf16.mxu0 %v1432_v21  ;;  %2191 = vmatprep.subr.bf16.mxu1 %v1434_v23  ;;  %v1414_v21 = vld [vmem:[#allocation2 + $0x98] sm:$0xff]  ;;  %v1411_v23 = vld [vmem:[#allocation2 + $0x80] sm:$0xff] }
 0x330   :  { %2180 = vmatprep.mubr.bf16.mxu0 %v4385_v9  ;;  %2221 = vmatprep.mubr.bf16.mxu1 %v4385_v9 }
 0x332   :  { %2151 = vmatpush1.bf16.msra.mxu0 %v1431_v24  ;;  %2192 = vmatpush1.bf16.msra.mxu1 %v1433_v26  ;;  %v1413_v24 = vld [vmem:[#allocation2 + $0x90] sm:$0xff]  ;;  %v1436_v26 = vld [vmem:[#allocation2 + $0x148] sm:$0xff] }
 0x333   :  { %2152 = vmatprep.subr.bf16.mxu0 %v1456_v27  ;;  %2193 = vmatprep.subr.bf16.mxu1 %v1458_v28  ;;  %v1438_v27 = vld [vmem:[#allocation2 + $0x158] sm:$0xff]  ;;  %v1435_v28 = vld [vmem:[#allocation2 + $0x140] sm:$0xff] }
 0x336   :  { %2153 = vmatpush1.bf16.msra.mxu0 %v1455_v29  ;;  %2194 = vmatpush1.bf16.msra.mxu1 %v1457_v30  ;;  %v1437_v29 = vld [vmem:[#allocation2 + $0x150] sm:$0xff]  ;;  %v1460_v30 = vld [vmem:[#allocation2 + $0x208] sm:$0xff] }
 0x337   :  { %2154 = vmatprep.subr.bf16.mxu0 %v1480_v31  ;;  %2195 = vmatprep.subr.bf16.mxu1 %v1482_v32  ;;  %v1462_v31 = vld [vmem:[#allocation2 + $0x218] sm:$0xff]  ;;  %v1459_v32 = vld [vmem:[#allocation2 + $0x200] sm:$0xff] }
 0x33a   :  { %2155 = vmatpush1.bf16.msra.mxu0 %v1479_v33  ;;  %2196 = vmatpush1.bf16.msra.mxu1 %v1481_v34  ;;  %v1461_v33 = vld [vmem:[#allocation2 + $0x210] sm:$0xff]  ;;  %v1484_v34 = vld [vmem:[#allocation2 + $0x2c8] sm:$0xff] }
 0x33b   :  { %2156 = vmatprep.subr.bf16.mxu0 %v1504_v35  ;;  %2197 = vmatprep.subr.bf16.mxu1 %v1506_v36  ;;  %v1486_v35 = vld [vmem:[#allocation2 + $0x2d8] sm:$0xff]  ;;  %v1483_v36 = vld [vmem:[#allocation2 + $0x2c0] sm:$0xff] }
 0x33e   :  { %2157 = vmatpush1.bf16.msra.mxu0 %v1503_v37  ;;  %2198 = vmatpush1.bf16.msra.mxu1 %v1505_v38  ;;  %v1485_v37 = vld [vmem:[#allocation2 + $0x2d0] sm:$0xff]  ;;  %v1508_v38 = vld [vmem:[#allocation2 + $0x388] sm:$0xff] }
 0x33f   :  { %2158 = vmatprep.subr.bf16.mxu0 %v1528_v39  ;;  %2199 = vmatprep.subr.bf16.mxu1 %v1530_v40  ;;  %v1510_v39 = vld [vmem:[#allocation2 + $0x398] sm:$0xff]  ;;  %v1507_v40 = vld [vmem:[#allocation2 + $0x380] sm:$0xff] }
 0x342   :  { %2159 = vmatpush1.bf16.msra.mxu0 %v1527_v41  ;;  %2200 = vmatpush1.bf16.msra.mxu1 %v1529_v42  ;;  %v1509_v41 = vld [vmem:[#allocation2 + $0x390] sm:$0xff]  ;;  %v1532_v42 = vld [vmem:[#allocation2 + $0x448] sm:$0xff] }
 0x343   :  { %2160 = vmatprep.subr.bf16.mxu0 %v1552_v43  ;;  %2201 = vmatprep.subr.bf16.mxu1 %v1554_v44  ;;  %v1534_v43 = vld [vmem:[#allocation2 + $0x458] sm:$0xff]  ;;  %v1531_v44 = vld [vmem:[#allocation2 + $0x440] sm:$0xff] }
 0x346   :  { %2161 = vmatpush1.bf16.msra.mxu0 %v1551_v45  ;;  %2202 = vmatpush1.bf16.msra.mxu1 %v1553_v46  ;;  %v1533_v45 = vld [vmem:[#allocation2 + $0x450] sm:$0xff] }
 0x347   :  { %2162 = vmatprep.subr.bf16.mxu0 %v1576_v47  ;;  %2203 = vmatprep.subr.bf16.mxu1 %v1578_v48  ;;  %v1556_v48 = vld [vmem:[#allocation2 + $0x508] sm:$0xff] }
 0x34a   :  { %2163 = vmatpush1.bf16.msra.mxu0 %v1575_v49  ;;  %2204 = vmatpush1.bf16.msra.mxu1 %v1577_v50  ;;  %v1558_v49 = vld [vmem:[#allocation2 + $0x518] sm:$0xff] }
 0x34b   :  { %2164 = vmatprep.subr.bf16.mxu0 %v1600_v51  ;;  %2205 = vmatprep.subr.bf16.mxu1 %v1602_v52 }
 0x34e   :  { %2165 = vmatpush1.bf16.msra.mxu0 %v1599_v53  ;;  %2206 = vmatpush1.bf16.msra.mxu1 %v1601_v54 }
 0x34f   :  { %2166 = vmatprep.subr.bf16.mxu0 %v1624_v1  ;;  %2207 = vmatprep.subr.bf16.mxu1 %v1626_v6  ;;  %v1555_v1 = vld [vmem:[#allocation2 + $0x500] sm:$0xff]  ;;  %v1557_v6 = vld [vmem:[#allocation2 + $0x510] sm:$0xff] }
 0x352   :  { %2167 = vmatpush1.bf16.msra.mxu0 %v1623_v55  ;;  %2208 = vmatpush1.bf16.msra.mxu1 %v1625_v3  ;;  %v1580_v3 = vld [vmem:[#allocation2 + $0x5c8] sm:$0xff] }
 0x353   :  { %2168 = vmatprep.subr.bf16.mxu0 %v1648_v56  ;;  %2209 = vmatprep.subr.bf16.mxu1 %v1650_v8  ;;  %v1582_v56 = vld [vmem:[#allocation2 + $0x5d8] sm:$0xff]  ;;  %v1579_v8 = vld [vmem:[#allocation2 + $0x5c0] sm:$0xff] }
 0x356   :  { %2169 = vmatpush1.bf16.msra.mxu0 %v1647_v57  ;;  %2210 = vmatpush1.bf16.msra.mxu1 %v1649_v58  ;;  %v1581_v57 = vld [vmem:[#allocation2 + $0x5d0] sm:$0xff]  ;;  %v1604_v58 = vld [vmem:[#allocation2 + $0x688] sm:$0xff] }
 0x357   :  { %2170 = vmatprep.subr.bf16.mxu0 %v1672_v59  ;;  %2211 = vmatprep.subr.bf16.mxu1 %v1674_v60  ;;  %v1606_v59 = vld [vmem:[#allocation2 + $0x698] sm:$0xff]  ;;  %v1603_v60 = vld [vmem:[#allocation2 + $0x680] sm:$0xff] }
 0x35a   :  { %2171 = vmatpush1.bf16.msra.mxu0 %v1671_v61  ;;  %2212 = vmatpush1.bf16.msra.mxu1 %v1673_v62  ;;  %v1605_v61 = vld [vmem:[#allocation2 + $0x690] sm:$0xff]  ;;  %v1628_v62 = vld [vmem:[#allocation2 + $0x748] sm:$0xff] }
 0x35b   :  { %2172 = vmatprep.subr.bf16.mxu0 %v1696_v63  ;;  %2213 = vmatprep.subr.bf16.mxu1 %v1698_v2  ;;  %v1630_v63 = vld [vmem:[#allocation2 + $0x758] sm:$0xff]  ;;  %v1627_v2 = vld [vmem:[#allocation2 + $0x740] sm:$0xff] }
 0x35e   :  { %2173 = vmatpush1.bf16.msra.mxu0 %v1695_v5  ;;  %2214 = vmatpush1.bf16.msra.mxu1 %v1697_v7  ;;  %v1629_v5 = vld [vmem:[#allocation2 + $0x750] sm:$0xff]  ;;  %v1652_v7 = vld [vmem:[#allocation2 + $0x808] sm:$0xff] }
 0x35f   :  { %2174 = vmatprep.subr.bf16.mxu0 %v1720_v10  ;;  %2215 = vmatprep.subr.bf16.mxu1 %v1722_v11  ;;  %v1654_v10 = vld [vmem:[#allocation2 + $0x818] sm:$0xff]  ;;  %v1651_v11 = vld [vmem:[#allocation2 + $0x800] sm:$0xff] }
 0x362   :  { %2175 = vmatpush1.bf16.msra.mxu0 %v1719_v12  ;;  %2216 = vmatpush1.bf16.msra.mxu1 %v1721_v22  ;;  %v1653_v12 = vld [vmem:[#allocation2 + $0x810] sm:$0xff]  ;;  %v1676_v22 = vld [vmem:[#allocation2 + $0x8c8] sm:$0xff] }
 0x363   :  { %2176 = vmatprep.subr.bf16.mxu0 %v1744_v13  ;;  %2217 = vmatprep.subr.bf16.mxu1 %v1746_v25  ;;  %v1678_v13 = vld [vmem:[#allocation2 + $0x8d8] sm:$0xff]  ;;  %v1675_v25 = vld [vmem:[#allocation2 + $0x8c0] sm:$0xff] }
 0x366   :  { %2177 = vmatpush1.bf16.msra.mxu0 %v1743_v15  ;;  %2218 = vmatpush1.bf16.msra.mxu1 %v1745_v16  ;;  %v1677_v15 = vld [vmem:[#allocation2 + $0x8d0] sm:$0xff]  ;;  %v1700_v16 = vld [vmem:[#allocation2 + $0x988] sm:$0xff] }
 0x367   :  { %2178 = vmatprep.subr.bf16.mxu0 %v1768_v17  ;;  %2219 = vmatprep.subr.bf16.mxu1 %v1770_v18  ;;  %v1702_v17 = vld [vmem:[#allocation2 + $0x998] sm:$0xff]  ;;  %v1699_v18 = vld [vmem:[#allocation2 + $0x980] sm:$0xff] }
 0x36a   :  { %2179 = vmatpush1.bf16.msra.mxu0 %v1767_v19  ;;  %2220 = vmatpush1.bf16.msra.mxu1 %v1769_v4  ;;  %v1701_v19 = vld [vmem:[#allocation2 + $0x990] sm:$0xff]  ;;  %v1724_v4 = vld [vmem:[#allocation2 + $0xa48] sm:$0xff] }
 0x36b   :  { %2230 = vmatprep.subr.bf16.mxu0 %v1412_v20  ;;  %2271 = vmatprep.subr.bf16.mxu1 %v1414_v21  ;;  %v1726_v20 = vld [vmem:[#allocation2 + $0xa58] sm:$0xff]  ;;  %v1723_v21 = vld [vmem:[#allocation2 + $0xa40] sm:$0xff] }
 0x36d   :  { %2181 = vmatmul.mubr.bf16.vlgmr.msra.gmra.mrb[64].mxu0 %v4391_v14  ;;  %2222 = vmatmul.mubr.bf16.vlgmr.msra.gmra.mrb[88].mxu1 %v4391_v14 }
 0x36e   :  { %2231 = vmatpush1.bf16.msra.mxu0 %v1411_v23  ;;  %2272 = vmatpush1.bf16.msra.mxu1 %v1413_v24  ;;  %v1725_v23 = vld [vmem:[#allocation2 + $0xa50] sm:$0xff]  ;;  %v1748_v24 = vld [vmem:[#allocation2 + $0xb08] sm:$0xff] }
 0x36f   :  { %2232 = vmatprep.subr.bf16.mxu0 %v1436_v26  ;;  %2273 = vmatprep.subr.bf16.mxu1 %v1438_v27  ;;  %v1750_v26 = vld [vmem:[#allocation2 + $0xb18] sm:$0xff]  ;;  %v1747_v27 = vld [vmem:[#allocation2 + $0xb00] sm:$0xff] }
 0x370   :  { %2262 = vmatprep.mubr.bf16.mxu0 %v4385_v9  ;;  %2303 = vmatprep.mubr.bf16.mxu1 %v4385_v9 }
 0x372   :  { %2233 = vmatpush1.bf16.msra.mxu0 %v1435_v28  ;;  %2274 = vmatpush1.bf16.msra.mxu1 %v1437_v29  ;;  %v1749_v28 = vld [vmem:[#allocation2 + $0xb10] sm:$0xff]  ;;  %v1772_v29 = vld [vmem:[#allocation2 + $0xbc8] sm:$0xff] }
 0x373   :  { %2234 = vmatprep.subr.bf16.mxu0 %v1460_v30  ;;  %2275 = vmatprep.subr.bf16.mxu1 %v1462_v31  ;;  %v1774_v30 = vld [vmem:[#allocation2 + $0xbd8] sm:$0xff]  ;;  %v1771_v31 = vld [vmem:[#allocation2 + $0xbc0] sm:$0xff] }
 0x376   :  { %2235 = vmatpush1.bf16.msra.mxu0 %v1459_v32  ;;  %2276 = vmatpush1.bf16.msra.mxu1 %v1461_v33  ;;  %v1773_v32 = vld [vmem:[#allocation2 + $0xbd0] sm:$0xff]  ;;  %v1782_v33 = vlaneseq }
 0x377   :  { %2236 = vmatprep.subr.bf16.mxu0 %v1484_v34  ;;  %2277 = vmatprep.subr.bf16.mxu1 %v1486_v35  ;;  %v1416_v34 = vld [vmem:[#allocation2 + $0xa8] sm:$0xff]  ;;  %v1418_v35 = vld [vmem:[#allocation2 + $0xb8] sm:$0xff] }
 0x37a   :  { %2237 = vmatpush1.bf16.msra.mxu0 %v1483_v36  ;;  %2278 = vmatpush1.bf16.msra.mxu1 %v1485_v37  ;;  %v1415_v36 = vld [vmem:[#allocation2 + $0xa0] sm:$0xff]  ;;  %v1417_v37 = vld [vmem:[#allocation2 + $0xb0] sm:$0xff] }
 0x37b   :  { %2238 = vmatprep.subr.bf16.mxu0 %v1508_v38  ;;  %2279 = vmatprep.subr.bf16.mxu1 %v1510_v39  ;;  %v4417_v38 = vshrl.u32 %v1782_v33, 7  ;;  %v1440_v39 = vld [vmem:[#allocation2 + $0x168] sm:$0xff] }
 0x37e   :  { %2239 = vmatpush1.bf16.msra.mxu0 %v1507_v40  ;;  %2280 = vmatpush1.bf16.msra.mxu1 %v1509_v41  ;;  %v1442_v40 = vld [vmem:[#allocation2 + $0x178] sm:$0xff]  ;;  %v1439_v41 = vld [vmem:[#allocation2 + $0x160] sm:$0xff] }
 0x37f   :  { %2240 = vmatprep.subr.bf16.mxu0 %v1532_v42  ;;  %2281 = vmatprep.subr.bf16.mxu1 %v1534_v43  ;;  %v1441_v42 = vld [vmem:[#allocation2 + $0x170] sm:$0xff]  ;;  %v4422_v43 = vsub.s32 1, %v4417_v38 }
 0x380   :  { %v4409_v46 = vpop.f32.mrb[52].mxu0  ;;  %v4411_v47 = vpop.f32.mrb[76].mxu1 }
 0x381   :  { %v4413_v50 = vpop.f32.mrb[53].mxu0  ;;  %v4415_v51 = vpop.f32.mrb[77].mxu1 }
 0x382   :  { %v1940_v52 = vpop.f32.mrb[54].mxu0  ;;  %2241 = vmatpush1.bf16.msra.mxu0 %v1531_v44  ;;  %2282 = vmatpush1.bf16.msra.mxu1 %v1533_v45  ;;  %v1981_v53 = vpop.f32.mrb[78].mxu1  ;;  %v1464_v44 = vld [vmem:[#allocation2 + $0x228] sm:$0xff]  ;;  %v1466_v45 = vld [vmem:[#allocation2 + $0x238] sm:$0xff] }
 0x383   :  { %v1941_v54 = vpop.f32.mrb[55].mxu0  ;;  %2242 = vmatprep.subr.bf16.mxu0 %v1556_v48  ;;  %2283 = vmatprep.subr.bf16.mxu1 %v1558_v49  ;;  %v1982_v55 = vpop.f32.mrb[79].mxu1  ;;  %v4426_v48 = vld [vmem:[#allocation4 + $0x3] ss:$4 sm:$0xff] }
 0x384   :  { %v1463_v49 = vld [vmem:[#allocation2 + $0x220] sm:$0xff]  ;;  %v1465_v52 = vld [vmem:[#allocation2 + $0x230] sm:$0xff]  ;;  %v1789_v53 = vrot.slane %v4426_v48, %v4422_v43  ;;  %v1488_v54 = vld [vmem:[#allocation2 + $0x2e8] sm:$0xff] }
 0x385   :  { %v1489_v55 = vld [vmem:[#allocation2 + $0x2f0] sm:$0xff] }
 0x386   :  { %2243 = vmatpush1.bf16.msra.mxu0 %v1555_v1  ;;  %2284 = vmatpush1.bf16.msra.mxu1 %v1557_v6  ;;  %v1490_v1 = vld [vmem:[#allocation2 + $0x2f8] sm:$0xff]  ;;  %v1487_v6 = vld [vmem:[#allocation2 + $0x2e0] sm:$0xff] }
 0x387   :  { %2244 = vmatprep.subr.bf16.mxu0 %v1580_v3  ;;  %2285 = vmatprep.subr.bf16.mxu1 %v1582_v56  ;;  %v1512_v3 = vld [vmem:[#allocation2 + $0x3a8] sm:$0xff]  ;;  %v1514_v56 = vld [vmem:[#allocation2 + $0x3b8] sm:$0xff] }
 0x38a   :  { %2245 = vmatpush1.bf16.msra.mxu0 %v1579_v8  ;;  %2286 = vmatpush1.bf16.msra.mxu1 %v1581_v57  ;;  %v1511_v8 = vld [vmem:[#allocation2 + $0x3a0] sm:$0xff]  ;;  %v1513_v57 = vld [vmem:[#allocation2 + $0x3b0] sm:$0xff] }
 0x38b   :  { %2246 = vmatprep.subr.bf16.mxu0 %v1604_v58  ;;  %2287 = vmatprep.subr.bf16.mxu1 %v1606_v59  ;;  %v4432_v58 = vsub.s32 0, %v4417_v38 }
 0x38e   :  { %2247 = vmatpush1.bf16.msra.mxu0 %v1603_v60  ;;  %2288 = vmatpush1.bf16.msra.mxu1 %v1605_v61  ;;  %v1536_v60 = vld [vmem:[#allocation2 + $0x468] sm:$0xff]  ;;  %v1538_v61 = vld [vmem:[#allocation2 + $0x478] sm:$0xff] }
 0x38f   :  { %2248 = vmatprep.subr.bf16.mxu0 %v1628_v62  ;;  %2289 = vmatprep.subr.bf16.mxu1 %v1630_v63  ;;  %v4435_v62 = vsub.s32 3, %v4417_v38  ;;  %v1537_v63 = vld [vmem:[#allocation2 + $0x470] sm:$0xff] }
 0x392   :  { %2249 = vmatpush1.bf16.msra.mxu0 %v1627_v2  ;;  %2290 = vmatpush1.bf16.msra.mxu1 %v1629_v5  ;;  %v1785_v2 = vrot.slane %v4426_v48, %v4432_v58 }
 0x393   :  { %2250 = vmatprep.subr.bf16.mxu0 %v1652_v7  ;;  %2291 = vmatprep.subr.bf16.mxu1 %v1654_v10 }
 0x396   :  { %2251 = vmatpush1.bf16.msra.mxu0 %v1651_v11  ;;  %2292 = vmatpush1.bf16.msra.mxu1 %v1653_v12  ;;  %v1560_v11 = vld [vmem:[#allocation2 + $0x528] sm:$0xff]  ;;  %v1562_v12 = vld [vmem:[#allocation2 + $0x538] sm:$0xff] }
 0x397   :  { %2252 = vmatprep.subr.bf16.mxu0 %v1676_v22  ;;  %2293 = vmatprep.subr.bf16.mxu1 %v1678_v13  ;;  %v1797_v22 = vrot.slane %v4426_v48, %v4435_v62 }
 0x39a   :  { %2253 = vmatpush1.bf16.msra.mxu0 %v1675_v25  ;;  %2294 = vmatpush1.bf16.msra.mxu1 %v1677_v15 }
 0x39b   :  { %2254 = vmatprep.subr.bf16.mxu0 %v1700_v16  ;;  %2295 = vmatprep.subr.bf16.mxu1 %v1702_v17 }
 0x39e   :  { %2255 = vmatpush1.bf16.msra.mxu0 %v1699_v18  ;;  %2296 = vmatpush1.bf16.msra.mxu1 %v1701_v19  ;;  %v1559_v18 = vld [vmem:[#allocation2 + $0x520] sm:$0xff]  ;;  %v1561_v19 = vld [vmem:[#allocation2 + $0x530] sm:$0xff] }
 0x39f   :  { %2256 = vmatprep.subr.bf16.mxu0 %v1724_v4  ;;  %2297 = vmatprep.subr.bf16.mxu1 %v1726_v20  ;;  %v1937_v20 = vadd.f32 %v4409_v46, %v1785_v2  ;;  %v1608_v46 = vld [vmem:[#allocation2 + $0x6a8] sm:$0xff]  ;;  %v1681_v2 = vld [vmem:[#allocation2 + $0x8f0] sm:$0xff] }
 0x3a2   :  { %2257 = vmatpush1.bf16.msra.mxu0 %v1723_v21  ;;  %2298 = vmatpush1.bf16.msra.mxu1 %v1725_v23  ;;  %v1584_v23 = vld [vmem:[#allocation2 + $0x5e8] sm:$0xff] }
 0x3a3   :  { %2258 = vmatprep.subr.bf16.mxu0 %v1748_v24  ;;  %2299 = vmatprep.subr.bf16.mxu1 %v1750_v26  ;;  %v1586_v24 = vld [vmem:[#allocation2 + $0x5f8] sm:$0xff]  ;;  %v1980_v26 = vadd.f32 %v4415_v51, %v1797_v22  ;;  %v1607_v51 = vld [vmem:[#allocation2 + $0x6a0] sm:$0xff]  ;;  %v1704_v22 = vld [vmem:[#allocation2 + $0x9a8] sm:$0xff] }
 0x3a5   :  { %v2421_v33 = vrot.slane %v1980_v26, 1 }
 0x3a6   :  { %2259 = vmatpush1.bf16.msra.mxu0 %v1747_v27  ;;  %2300 = vmatpush1.bf16.msra.mxu1 %v1749_v28  ;;  %v1583_v27 = vld [vmem:[#allocation2 + $0x5e0] sm:$0xff]  ;;  %v1585_v28 = vld [vmem:[#allocation2 + $0x5f0] sm:$0xff] }
 0x3a7   :  { %2260 = vmatprep.subr.bf16.mxu0 %v1772_v29  ;;  %2301 = vmatprep.subr.bf16.mxu1 %v1774_v30  ;;  %v2418_v29 = vrot.slane %v1937_v20, 1  ;;  %v4452_v30 = vsub.s32 2, %v4417_v38 }
 0x3aa   :  { %2261 = vmatpush1.bf16.msra.mxu0 %v1771_v31  ;;  %2302 = vmatpush1.bf16.msra.mxu1 %v1773_v32  ;;  %v1610_v32 = vld [vmem:[#allocation2 + $0x6b8] sm:$0xff] }
 0x3ab   :  { %2312 = vmatprep.subr.bf16.mxu0 %v1416_v34  ;;  %2353 = vmatprep.subr.bf16.mxu1 %v1418_v35  ;;  %v4457_v34 = vsub.s32 5, %v4417_v38  ;;  %v1609_v35 = vld [vmem:[#allocation2 + $0x6b0] sm:$0xff] }
 0x3ad   :  { %2263 = vmatmul.mubr.bf16.vlgmr.msra.gmra.mrb[68].mxu0 %v4391_v14  ;;  %2304 = vmatmul.mubr.bf16.vlgmr.msra.gmra.mrb[92].mxu1 %v4391_v14 }
 0x3ae   :  { %2313 = vmatpush1.bf16.msra.mxu0 %v1415_v36  ;;  %2354 = vmatpush1.bf16.msra.mxu1 %v1417_v37  ;;  %v2466_v36 = vsub.f32 %v1937_v20, %v2418_v29  ;;  %v1793_v37 = vrot.slane %v4426_v48, %v4452_v30 }
 0x3af   :  { %2314 = vmatprep.subr.bf16.mxu0 %v1440_v39  ;;  %2355 = vmatprep.subr.bf16.mxu1 %v1442_v40  ;;  %v1632_v40 = vld [vmem:[#allocation2 + $0x768] sm:$0xff] }
 0x3b0   :  { %2344 = vmatprep.mubr.bf16.mxu0 %v4385_v9  ;;  %2385 = vmatprep.mubr.bf16.mxu1 %v4385_v9  ;;  %v1939_v9 = vadd.f32 %v4413_v50, %v1789_v53  ;;  %v1535_v50 = vld [vmem:[#allocation2 + $0x460] sm:$0xff]  ;;  %v1978_v53 = vadd.f32 %v4411_v47, %v1793_v37  ;;  %v1680_v47 = vld [vmem:[#allocation2 + $0x8e8] sm:$0xff] }
 0x3b1   :  { %v1751_v37 = vld [vmem:[#allocation2 + $0xb20] sm:$0xff] }
 0x3b2   :  { %2315 = vmatpush1.bf16.msra.mxu0 %v1439_v41  ;;  %2356 = vmatpush1.bf16.msra.mxu1 %v1441_v42  ;;  %v2419_v59 = vrot.slane %v1939_v9, 1  ;;  %v1634_v41 = vld [vmem:[#allocation2 + $0x778] sm:$0xff]  ;;  %v2469_v42 = vsub.f32 %v1980_v26, %v2421_v33 }
 0x3b3   :  { %2316 = vmatprep.subr.bf16.mxu0 %v1464_v44  ;;  %2357 = vmatprep.subr.bf16.mxu1 %v1466_v45  ;;  %v1805_v44 = vrot.slane %v4426_v48, %v4457_v34  ;;  %v1631_v45 = vld [vmem:[#allocation2 + $0x760] sm:$0xff]  ;;  %v1730_v26 = vld [vmem:[#allocation2 + $0xa78] sm:$0xff] }
 0x3b4   :  { %v2467_v5 = vsub.f32 %v1939_v9, %v2419_v59  ;;  %v1655_v9 = vld [vmem:[#allocation2 + $0x820] sm:$0xff]  ;;  %v1682_v59 = vld [vmem:[#allocation2 + $0x8f8] sm:$0xff] }
 0x3b6   :  { %2317 = vmatpush1.bf16.msra.mxu0 %v1463_v49  ;;  %2358 = vmatpush1.bf16.msra.mxu1 %v1465_v52  ;;  %v4448_v21 = vmul.f32 0.5, %v2467_v5  ;;  %v1633_v49 = vld [vmem:[#allocation2 + $0x770] sm:$0xff]  ;;  %v4463_v52 = vmul.f32 0.5, %v2466_v36 }
 0x3b7   :  { %2318 = vmatprep.subr.bf16.mxu0 %v1488_v54  ;;  %2359 = vmatprep.subr.bf16.mxu1 %v1490_v1  ;;  %v1656_v54 = vld [vmem:[#allocation2 + $0x828] sm:$0xff]  ;;  %v1658_v1 = vld [vmem:[#allocation2 + $0x838] sm:$0xff] }
 0x3b8   :  { %v2515_v31 = vmul.f32 %v4448_v21, %v4448_v21 }
 0x3ba   :  { %2319 = vmatpush1.bf16.msra.mxu0 %v1487_v6  ;;  %2360 = vmatpush1.bf16.msra.mxu1 %v1489_v55  ;;  %v2539_v39 = vadd.f32 1e-05, %v2515_v31  ;;  %v4466_v6 = vmul.f32 0.5, %v2469_v42  ;;  %v1727_v31 = vld [vmem:[#allocation2 + $0xa60] sm:$0xff] }
 0x3bb   :  { %2320 = vmatprep.subr.bf16.mxu0 %v1512_v3  ;;  %2361 = vmatprep.subr.bf16.mxu1 %v1514_v56  ;;  %v1657_v3 = vld [vmem:[#allocation2 + $0x830] sm:$0xff]  ;;  %v2514_v56 = vmul.f32 %v4463_v52, %v4463_v52 }
 0x3bc   :  { %3971 = vrsqrt.f32 %v2539_v39  ;;  %v1753_v39 = vld [vmem:[#allocation2 + $0xb30] sm:$0xff] }
 0x3bd   :  { %v2538_v5 = vadd.f32 1e-05, %v2514_v56 }
 0x3be   :  { %2321 = vmatpush1.bf16.msra.mxu0 %v1511_v8  ;;  %2362 = vmatpush1.bf16.msra.mxu1 %v1513_v57  ;;  %v2420_v8 = vrot.slane %v1978_v53, 1  ;;  %v4471_v57 = vsub.s32 4, %v4417_v38 }
 0x3bf   :  { %2322 = vmatprep.subr.bf16.mxu0 %v1536_v60  ;;  %2363 = vmatprep.subr.bf16.mxu1 %v1538_v61  ;;  %v2517_v60 = vmul.f32 %v4466_v6, %v4466_v6  ;;  %3973 = vrsqrt.f32 %v2538_v5 }
 0x3c0   :  { %v4439_v7 = vpop.f32.mrb[56].mxu0  ;;  %v4441_v10 = vpop.f32.mrb[80].mxu1 }
 0x3c1   :  { %v2020_v13 = vpop.f32.mrb[57].mxu0  ;;  %v4445_v25 = vpop.f32.mrb[81].mxu1 }
 0x3c2   :  { %v2022_v15 = vpop.f32.mrb[58].mxu0  ;;  %2323 = vmatpush1.bf16.msra.mxu0 %v1535_v50  ;;  %2364 = vmatpush1.bf16.msra.mxu1 %v1537_v63  ;;  %v2063_v16 = vpop.f32.mrb[82].mxu1  ;;  %v2021_v55 = vadd.f32 %v2020_v13, %v1805_v44  ;;  %v4476_v50 = vsub.s32 7, %v4417_v38  ;;  %v1679_v63 = vld [vmem:[#allocation2 + $0x8e0] sm:$0xff]  ;;  %v1706_v13 = vld [vmem:[#allocation2 + $0x9b8] sm:$0xff] }
 0x3c3   :  { %v2023_v17 = vpop.f32.mrb[59].mxu0  ;;  %2324 = vmatprep.subr.bf16.mxu0 %v1560_v11  ;;  %2365 = vmatprep.subr.bf16.mxu1 %v1562_v12  ;;  %v2064_v4 = vpop.f32.mrb[83].mxu1  ;;  %v2468_v11 = vsub.f32 %v1978_v53, %v2420_v8  ;;  %v1801_v12 = vrot.slane %v4426_v48, %v4471_v57  ;;  %v2541_v15 = vadd.f32 1e-05, %v2517_v60  ;;  %v1778_v44 = vld [vmem:[#allocation2 + $0xbf8] sm:$0xff] }
 0x3c4   :  { %v2423_v61 = vrot.slane %v2021_v55, 1  ;;  %v1813_v17 = vrot.slane %v4426_v48, %v4476_v50  ;;  %v1705_v4 = vld [vmem:[#allocation2 + $0x9b0] sm:$0xff] }
 0x3c5   :  { %v4482_v20 = vmul.f32 0.5, %v2468_v11  ;;  %3975 = vrsqrt.f32 %v2541_v15  ;;  %v2756_v11 = vld [vmem:[#allocation7 + $0x8] sm:$0xff] }
 0x3c6   :  { %2325 = vmatpush1.bf16.msra.mxu0 %v1559_v18  ;;  %2366 = vmatpush1.bf16.msra.mxu1 %v1561_v19  ;;  %v2471_v16 = vsub.f32 %v2021_v55, %v2423_v61  ;;  %v3972_v18 = vpop.eup %3971  ;;  %v1703_v19 = vld [vmem:[#allocation2 + $0x9a0] sm:$0xff]  ;;  %v2062_v29 = vadd.f32 %v4445_v25, %v1813_v17  ;;  %v3750_v15 = vcombine.high %v2756_v11, %v2756_v11 }
 0x3c7   :  { %2326 = vmatprep.subr.bf16.mxu0 %v1584_v23  ;;  %2367 = vmatprep.subr.bf16.mxu1 %v1586_v24  ;;  %v2019_v23 = vadd.f32 %v4439_v7, %v1801_v12  ;;  %v1728_v24 = vld [vmem:[#allocation2 + $0xa68] sm:$0xff]  ;;  %v4492_v7 = vsub.s32 6, %v4417_v38 }
 0x3c8   :  { %v2425_v36 = vrot.slane %v2062_v29, 1  ;;  %v1776_v38 = vld [vmem:[#allocation2 + $0xbe8] sm:$0xff] }
 0x3c9   :  { %v2422_v33 = vrot.slane %v2019_v23, 1  ;;  %v1809_v42 = vrot.slane %v4426_v48, %v4492_v7 }
 0x3ca   :  { %2327 = vmatpush1.bf16.msra.mxu0 %v1583_v27  ;;  %2368 = vmatpush1.bf16.msra.mxu1 %v1585_v28  ;;  %v2587_v27 = vmul.f32 %v3972_v18, %v4448_v21  ;;  %v4486_v28 = vmul.f32 0.5, %v2471_v16  ;;  %v1754_v21 = vld [vmem:[#allocation2 + $0xb38] sm:$0xff]  ;;  %v2473_v53 = vsub.f32 %v2062_v29, %v2425_v36 }
 0x3cb   :  { %2328 = vmatprep.subr.bf16.mxu0 %v1608_v46  ;;  %2369 = vmatprep.subr.bf16.mxu1 %v1610_v32  ;;  %v1729_v46 = vld [vmem:[#allocation2 + $0xa70] sm:$0xff]  ;;  %v2516_v32 = vmul.f32 %v4482_v20, %v4482_v20  ;;  %v2060_v48 = vadd.f32 %v4441_v10, %v1809_v42 }
 0x3cc   :  { %v2611_v25 = vsub.f32 0.0, %v2587_v27 }
 0x3ce   :  { %2329 = vmatpush1.bf16.msra.mxu0 %v1607_v51  ;;  %2370 = vmatpush1.bf16.msra.mxu1 %v1609_v35  ;;  %v1752_v51 = vld [vmem:[#allocation2 + $0xb28] sm:$0xff]  ;;  %v2519_v35 = vmul.f32 %v4486_v28, %v4486_v28 }
 0x3cf   :  { %2330 = vmatprep.subr.bf16.mxu0 %v1632_v40  ;;  %2371 = vmatprep.subr.bf16.mxu1 %v1634_v41  ;;  %v2540_v40 = vadd.f32 1e-05, %v2516_v32  ;;  %v2470_v41 = vsub.f32 %v2019_v23, %v2422_v33 }
 0x3d1   :  { %3977 = vrsqrt.f32 %v2540_v40  ;;  %v4498_v8 = vmul.f32 0.5, %v2470_v41 }
 0x3d2   :  { %2331 = vmatpush1.bf16.msra.mxu0 %v1631_v45  ;;  %2372 = vmatpush1.bf16.msra.mxu1 %v1633_v49  ;;  %v2755_v45 = vld [vmem:[#allocation7] sm:$0xff]  ;;  %v2543_v49 = vadd.f32 1e-05, %v2519_v35 }
 0x3d3   :  { %2332 = vmatprep.subr.bf16.mxu0 %v1656_v54  ;;  %2373 = vmatprep.subr.bf16.mxu1 %v1658_v1  ;;  %v2659_v54 = vrot.slane %v2611_v25, 7  ;;  %v3974_v1 = vpop.eup %3973  ;;  %v3748_v56 = vcombine.high %v2755_v45, %v2755_v45  ;;  %v3747_v12 = vcombine.low %v2755_v45, %v2755_v45  ;;  %v4521_v35 = vld [vmem:[#allocation4 + $0x23] ss:$4 sm:$0xff] }
 0x3d4   :  { %v3976_v55 = vpop.eup %3975  ;;  %3979 = vrsqrt.f32 %v2543_v49  ;;  %v1821_v40 = vrot.slane %v4521_v35, %v4422_v43  ;;  %v1829_v41 = vrot.slane %v4521_v35, %v4435_v62  ;;  %v2758_v49 = vld [vmem:[#allocation7 + $0x18] sm:$0xff] }
 0x3d5   :  { %v2707_v60 = vsel %vm1378_vm2, %v2587_v27, %v2659_v54  ;;  %v2589_v61 = vmul.f32 %v3976_v55, %v4466_v6 }
 0x3d6   :  { %2333 = vmatpush1.bf16.msra.mxu0 %v1655_v9  ;;  %2374 = vmatpush1.bf16.msra.mxu1 %v1657_v3  ;;  %v1775_v9 = vld [vmem:[#allocation2 + $0xbe0] sm:$0xff]  ;;  %v1777_v3 = vld [vmem:[#allocation2 + $0xbf0] sm:$0xff]  ;;  %v2732_v5 = vpack.c.bf16 %v2707_v60, %v2707_v60 }
 0x3d7   :  { %2334 = vmatprep.subr.bf16.mxu0 %v1680_v47  ;;  %2375 = vmatprep.subr.bf16.mxu1 %v1682_v59  ;;  %v2586_v47 = vmul.f32 %v3974_v1, %v4463_v52  ;;  %v4502_v59 = vmul.f32 0.5, %v2473_v53  ;;  %v2613_v6 = vsub.f32 0.0, %v2589_v61 }
 0x3d9   :  { %v2610_v10 = vsub.f32 0.0, %v2586_v47  ;;  %v2521_v52 = vmul.f32 %v4502_v59, %v4502_v59 }
 0x3da   :  { %2335 = vmatpush1.bf16.msra.mxu0 %v1679_v63  ;;  %2376 = vmatpush1.bf16.msra.mxu1 %v1681_v2  ;;  %v2518_v63 = vmul.f32 %v4498_v8, %v4498_v8  ;;  %v2424_v2 = vrot.slane %v2060_v48, 1 }
 0x3db   :  { %2336 = vmatprep.subr.bf16.mxu0 %v1704_v22  ;;  %2377 = vmatprep.subr.bf16.mxu1 %v1706_v13  ;;  %v2658_v16 = vrot.slane %v2610_v10, 7  ;;  %v2545_v17 = vadd.f32 1e-05, %v2521_v52  ;;  %v3978_v18 = vpop.eup %3977 }
 0x3dc   :  { %v2542_v22 = vadd.f32 1e-05, %v2518_v63  ;;  %v2472_v13 = vsub.f32 %v2060_v48, %v2424_v2 }
 0x3de   :  { %2337 = vmatpush1.bf16.msra.mxu0 %v1703_v19  ;;  %2378 = vmatpush1.bf16.msra.mxu1 %v1705_v4  ;;  %v2661_v19 = vrot.slane %v2613_v6, 7  ;;  %v3980_v4 = vpop.eup %3979  ;;  %3981 = vrsqrt.f32 %v2542_v22  ;;  %v4513_v23 = vmul.f32 0.5, %v2472_v13 }
 0x3df   :  { %2338 = vmatprep.subr.bf16.mxu0 %v1728_v24  ;;  %2379 = vmatprep.subr.bf16.mxu1 %v1730_v26  ;;  %v2706_v24 = vsel %vm1378_vm2, %v2586_v47, %v2658_v16  ;;  %3983 = vrsqrt.f32 %v2545_v17  ;;  %v2757_v26 = vld [vmem:[#allocation7 + $0x10] sm:$0xff]  ;;  %v2591_v27 = vmul.f32 %v3980_v4, %v4486_v28  ;;  %v1817_v28 = vrot.slane %v4521_v35, %v4432_v58 }
 0x3e0   :  { %v2709_v29 = vsel %vm1378_vm2, %v2589_v61, %v2661_v19  ;;  %v2520_v32 = vmul.f32 %v4513_v23, %v4513_v23  ;;  %v3752_v33 = vcombine.high %v2757_v26, %v2757_v26  ;;  %v3751_v10 = vcombine.low %v2757_v26, %v2757_v26 }
 0x3e1   :  { %v2615_v36 = vsub.f32 0.0, %v2591_v27 }
 0x3e2   :  { %2339 = vmatpush1.bf16.msra.mxu0 %v1727_v31  ;;  %2380 = vmatpush1.bf16.msra.mxu1 %v1729_v46  ;;  %v3749_v31 = vcombine.low %v2756_v11, %v2756_v11  ;;  %v2731_v46 = vpack.c.bf16 %v2706_v24, %v2706_v24  ;;  %v3754_v11 = vcombine.high %v2758_v49, %v2758_v49 }
 0x3e3   :  { %2340 = vmatprep.subr.bf16.mxu0 %v1752_v51  ;;  %2381 = vmatprep.subr.bf16.mxu1 %v1754_v21  ;;  %v2734_v21 = vpack.c.bf16 %v2709_v29, %v2709_v29  ;;  %v2663_v42 = vrot.slane %v2615_v36, 7 }
 0x3e5   :  { %v2711_v61 = vsel %vm1378_vm2, %v2591_v27, %v2663_v42 }
 0x3e6   :  { %2341 = vmatpush1.bf16.msra.mxu0 %v1751_v37  ;;  %2382 = vmatpush1.bf16.msra.mxu1 %v1753_v39  ;;  %v1825_v37 = vrot.slane %v4521_v35, %v4452_v30  ;;  %v2736_v16 = vpack.c.bf16 %v2711_v61, %v2711_v61 }
 0x3e7   :  { %2342 = vmatprep.subr.bf16.mxu0 %v1776_v38  ;;  %2383 = vmatprep.subr.bf16.mxu1 %v1778_v44 }
 0x3e8   :  { %v3982_v39 = vpop.eup %3981 }
 0x3e9   :  { %v3984_v38 = vpop.eup %3983  ;;  %v2590_v54 = vmul.f32 %v3982_v39, %v4498_v8  ;;  %v3753_v39 = vcombine.low %v2758_v49, %v2758_v49 }
 0x3ea   :  { %2343 = vmatpush1.bf16.msra.mxu0 %v1775_v9  ;;  %2384 = vmatpush1.bf16.msra.mxu1 %v1777_v3 }
 0x3eb   :  { %2855 = vmatprep.subr.bf16.mxu0 %v3748_v56  ;;  %3801 = vmatprep.subr.mxu1 %v4125_v0  ;;  %v2593_v56 = vmul.f32 %v3984_v38, %v4502_v59  ;;  %v2614_v13 = vsub.f32 0.0, %v2590_v54 }
 0x3ed   :  { %2345 = vmatmul.mubr.bf16.vlgmr.msra.gmra.mrb[72].mxu0 %v4391_v14  ;;  %2386 = vmatmul.mubr.bf16.vlgmr.msra.gmra.mrb[96].mxu1 %v4391_v14  ;;  %v2588_v14 = vmul.f32 %v3978_v18, %v4482_v20  ;;  %v2544_v20 = vadd.f32 1e-05, %v2520_v32  ;;  %v2617_v18 = vsub.f32 0.0, %v2593_v56  ;;  %v2662_v26 = vrot.slane %v2614_v13, 7  ;;  %v2761_v13 = vld [vmem:[#allocation7 + $0x30] sm:$0xff] }
 0x3ee   :  { %2887 = vmatprep.mubr.bf16.mxu0 %v2732_v5  ;;  %3803 = vmatprep.mubr.msk.f32.mxu1 %vm4134_vm3, %v4125_v0 }
 0x3ef   :  { %v2612_v51 = vsub.f32 0.0, %v2588_v14  ;;  %3985 = vrsqrt.f32 %v2544_v20  ;;  %v2665_v32 = vrot.slane %v2617_v18, 7  ;;  %v2710_v20 = vsel %vm1378_vm2, %v2590_v54, %v2662_v26 }
 0x3f0   :  { %v3759_v26 = vcombine.low %v2761_v13, %v2761_v13 }
 0x3f1   :  { %v2660_v25 = vrot.slane %v2612_v51, 7 }
 0x3f3   :  { %2856 = vmatpush1.bf16.xpose.msra.mxu0 %v3747_v12  ;;  %v2708_v53 = vsel %vm1378_vm2, %v2588_v14, %v2660_v25 }
 0x3f4   :  { %2895 = vmatprep.subr.bf16.mxu0 %v3750_v15  ;;  %v2733_v6 = vpack.c.bf16 %v2708_v53, %v2708_v53 }
 0x3f9   :  { %v3986_v29 = vpop.eup %3985 }
 0x3fa   :  { %2888 = vmatmul.mubr.bf16.vlgmr.msra.gmra.mrb[76].mxu0 %v2731_v46  ;;  %v2592_v25 = vmul.f32 %v3986_v29, %v4513_v23 }
 0x3fb   :  { %2927 = vmatprep.mubr.bf16.mxu0 %v2734_v21  ;;  %2896 = vmatpush1.bf16.xpose.msra.mxu0 %v3749_v31 }
 0x3fc   :  { %2935 = vmatprep.subr.bf16.mxu0 %v3752_v33  ;;  %v2616_v38 = vsub.f32 0.0, %v2592_v25 }
 0x3fe   :  { %v2664_v53 = vrot.slane %v2616_v38, 7 }
 0x400   :  { %v2100_v44 = vpop.f32.mrb[60].mxu0  ;;  %v2141_v45 = vpop.f32.mrb[84].mxu1 }
 0x401   :  { %v2101_v1 = vadd.f32 %v2100_v44, %v1817_v28  ;;  %v2142_v55 = vadd.f32 %v2141_v45, %v1825_v37  ;;  %v2102_v9 = vpop.f32.mrb[61].mxu0  ;;  %v2143_v3 = vpop.f32.mrb[85].mxu1  ;;  %v2759_v28 = vld [vmem:[#allocation7 + $0x20] sm:$0xff]  ;;  %v2713_v37 = vsel %vm1378_vm2, %v2593_v56, %v2665_v32  ;;  %v1837_v32 = vrot.slane %v4521_v35, %v4457_v34 }
 0x402   :  { %v2103_v48 = vadd.f32 %v2102_v9, %v1821_v40  ;;  %v2144_v47 = vadd.f32 %v2143_v3, %v1829_v41  ;;  %v2104_v60 = vpop.f32.mrb[62].mxu0  ;;  %v2145_v63 = vpop.f32.mrb[86].mxu1  ;;  %v2735_v40 = vpack.c.bf16 %v2710_v20, %v2710_v20  ;;  %v3756_v42 = vcombine.high %v2759_v28, %v2759_v28  ;;  %v2760_v9 = vld [vmem:[#allocation7 + $0x28] sm:$0xff] }
 0x403   :  { %v2426_v2 = vrot.slane %v2101_v1, 1  ;;  %v2105_v5 = vpop.f32.mrb[63].mxu0  ;;  %v2146_v52 = vpop.f32.mrb[87].mxu1  ;;  %v2428_v12 = vrot.slane %v2142_v55, 1  ;;  %v2738_v44 = vpack.c.bf16 %v2713_v37, %v2713_v37  ;;  %v3758_v61 = vcombine.high %v2760_v9, %v2760_v9 }
 0x404   :  { %v2427_v8 = vrot.slane %v2103_v48, 1  ;;  %v2429_v22 = vrot.slane %v2144_v47, 1 }
 0x405   :  { %v2474_v15 = vsub.f32 %v2101_v1, %v2426_v2  ;;  %v2476_v4 = vsub.f32 %v2142_v55, %v2428_v12  ;;  %v2712_v1 = vsel %vm1378_vm2, %v2592_v25, %v2664_v53 }
 0x406   :  { %v2475_v17 = vsub.f32 %v2103_v48, %v2427_v8  ;;  %v2477_v59 = vsub.f32 %v2144_v47, %v2429_v22  ;;  %2928 = vmatmul.mubr.bf16.vlgmr.msra.gmra.mrb[76].mxu0 %v2733_v6  ;;  %v3755_v48 = vcombine.low %v2759_v28, %v2759_v28  ;;  %v2737_v47 = vpack.c.bf16 %v2712_v1, %v2712_v1 }
 0x407   :  { %v2498_v19 = vmul.f32 0.5, %v2474_v15  ;;  %2967 = vmatprep.mubr.bf16.mxu0 %v2736_v16  ;;  %2936 = vmatpush1.bf16.xpose.msra.mxu0 %v3751_v10  ;;  %v2500_v51 = vmul.f32 0.5, %v2476_v4  ;;  %v3757_v16 = vcombine.low %v2760_v9, %v2760_v9 }
 0x408   :  { %v2499_v24 = vmul.f32 0.5, %v2475_v17  ;;  %v2501_v14 = vmul.f32 0.5, %v2477_v59  ;;  %2975 = vmatprep.subr.bf16.mxu0 %v3754_v11  ;;  %v3760_v59 = vcombine.high %v2761_v13, %v2761_v13 }
 0x409   :  { %v2522_v27 = vmul.f32 %v2498_v19, %v2498_v19  ;;  %v2524_v41 = vmul.f32 %v2500_v51, %v2500_v51 }
 0x40a   :  { %v2523_v31 = vmul.f32 %v2499_v24, %v2499_v24  ;;  %v2525_v46 = vmul.f32 %v2501_v14, %v2501_v14 }
 0x40b   :  { %v2546_v33 = vadd.f32 1e-05, %v2522_v27  ;;  %v2548_v45 = vadd.f32 1e-05, %v2524_v41 }
 0x40c   :  { %v2547_v21 = vadd.f32 1e-05, %v2523_v31  ;;  %v2549_v36 = vadd.f32 1e-05, %v2525_v46  ;;  %v1833_v31 = vrot.slane %v4521_v35, %v4471_v57  ;;  %v1841_v46 = vrot.slane %v4521_v35, %v4492_v7 }
 0x40d   :  { %3987 = vrsqrt.f32 %v2546_v33  ;;  %v1845_v33 = vrot.slane %v4521_v35, %v4476_v50 }
 0x40e   :  { %3989 = vrsqrt.f32 %v2547_v21 }
 0x40f   :  { %3991 = vrsqrt.f32 %v2549_v36 }
 0x410   :  { %3993 = vrsqrt.f32 %v2548_v45 }
 0x412   :  { %2968 = vmatmul.mubr.bf16.vlgmr.msra.gmra.mrb[76].mxu0 %v2735_v40 }
 0x413   :  { %3007 = vmatprep.mubr.bf16.mxu0 %v2738_v44  ;;  %2976 = vmatpush1.bf16.xpose.msra.mxu0 %v3753_v39 }
 0x414   :  { %3015 = vmatprep.subr.bf16.mxu0 %v3756_v42 }
 0x417   :  { %v3988_v54 = vpop.eup %3987 }
 0x418   :  { %v3990_v23 = vpop.eup %3989  ;;  %v2594_v55 = vmul.f32 %v3988_v54, %v2498_v19 }
 0x419   :  { %v3992_v49 = vpop.eup %3991  ;;  %v2595_v3 = vmul.f32 %v3990_v23, %v2499_v24 }
 0x41a   :  { %v2597_v56 = vmul.f32 %v3992_v49, %v2501_v14  ;;  %v2618_v63 = vsub.f32 0.0, %v2594_v55  ;;  %v3994_v6 = vpop.eup %3993  ;;  %v4543_v14 = vld [vmem:[#allocation7 + $0x38] sm:$0xff] }
 0x41b   :  { %v2619_v60 = vsub.f32 0.0, %v2595_v3  ;;  %v2596_v22 = vmul.f32 %v3994_v6, %v2500_v51  ;;  %v3762_v29 = vcombine.high %v4543_v14, %v4543_v14 }
 0x41c   :  { %v2621_v5 = vsub.f32 0.0, %v2597_v56  ;;  %v2666_v52 = vrot.slane %v2618_v63, 7 }
 0x41d   :  { %v2667_v2 = vrot.slane %v2619_v60, 7  ;;  %v2620_v18 = vsub.f32 0.0, %v2596_v22 }
 0x41e   :  { %3008 = vmatmul.mubr.bf16.vlgmr.msra.gmra.mrb[76].mxu0 %v2737_v47  ;;  %v2669_v12 = vrot.slane %v2621_v5, 7  ;;  %v2714_v8 = vsel %vm1378_vm2, %v2594_v55, %v2666_v52 }
 0x41f   :  { %3016 = vmatpush1.bf16.xpose.msra.mxu0 %v3755_v48  ;;  %v2715_v10 = vsel %vm1378_vm2, %v2595_v3, %v2667_v2  ;;  %v2739_v17 = vpack.c.bf16 %v2714_v8, %v2714_v8  ;;  %v2668_v4 = vrot.slane %v2620_v18, 7 }
 0x420   :  { %3055 = vmatprep.subr.bf16.mxu0 %v3758_v61  ;;  %v2740_v11 = vpack.c.bf16 %v2715_v10, %v2715_v10  ;;  %v2717_v15 = vsel %vm1378_vm2, %v2597_v56, %v2669_v12 }
 0x421   :  { %v2742_v19 = vpack.c.bf16 %v2717_v15, %v2717_v15  ;;  %v2716_v24 = vsel %vm1378_vm2, %v2596_v22, %v2668_v4 }
 0x422   :  { %3047 = vmatprep.mubr.bf16.mxu0 %v2740_v11  ;;  %v2741_v27 = vpack.c.bf16 %v2716_v24, %v2716_v24 }
 0x42a   :  { %3048 = vmatmul.mubr.bf16.vlgmr.msra.gmra.mrb[76].mxu0 %v2739_v17 }
 0x42b   :  { %3087 = vmatprep.mubr.bf16.mxu0 %v2742_v19  ;;  %3056 = vmatpush1.bf16.xpose.msra.mxu0 %v3757_v16 }
 0x42c   :  { %3095 = vmatprep.subr.bf16.mxu0 %v3760_v59 }
 0x436   :  { %3088 = vmatmul.mubr.bf16.vlgmr.msra.gmra.mrb[76].mxu0 %v2741_v27 }
 0x437   :  { %3096 = vmatpush1.bf16.xpose.msra.mxu0 %v3759_v26  ;;  %v2763_v26 = vld [vmem:[#allocation7 + $0x40] sm:$0xff] }
 0x438   :  { %3135 = vmatprep.subr.bf16.mxu0 %v3762_v29 }
 0x440   :  { %v2182_v51 = vpop.f32.mrb[64].mxu0  ;;  %v2223_v21 = vpop.f32.mrb[88].mxu1 }
 0x441   :  { %v2183_v36 = vadd.f32 %v2182_v51, %v1833_v31  ;;  %v2224_v20 = vadd.f32 %v2223_v21, %v1841_v46  ;;  %v2184_v25 = vpop.f32.mrb[65].mxu0  ;;  %v2225_v28 = vpop.f32.mrb[89].mxu1  ;;  %v3761_v46 = vcombine.low %v4543_v14, %v4543_v14  ;;  %v3335_v14 = vld [vmem:[#allocation9] sm:$0xff] }
 0x442   :  { %v2185_v37 = vadd.f32 %v2184_v25, %v1837_v32  ;;  %v2226_v39 = vadd.f32 %v2225_v28, %v1845_v33  ;;  %v2186_v40 = vpop.f32.mrb[66].mxu0  ;;  %v2227_v41 = vpop.f32.mrb[90].mxu1  ;;  %v3764_v33 = vcombine.high %v2763_v26, %v2763_v26  ;;  %v4561_v25 = vld [vmem:[#allocation7 + $0x48] sm:$0xff]  ;;  %v3763_v28 = vcombine.low %v2763_v26, %v2763_v26  ;;  %3802 = vmatpush3.msra.mxu1 %v3335_v14 }
 0x443   :  { %v2430_v42 = vrot.slane %v2183_v36, 1  ;;  %v2432_v38 = vrot.slane %v2224_v20, 1  ;;  %v2187_v44 = vpop.f32.mrb[67].mxu0  ;;  %v2228_v45 = vpop.f32.mrb[91].mxu1  ;;  %v4565_v40 = vld [vmem:[#allocation4 + $0x43] ss:$4 sm:$0xff] }
 0x444   :  { %v2431_v53 = vrot.slane %v2185_v37, 1  ;;  %v2433_v54 = vrot.slane %v2226_v39, 1  ;;  %v1849_v41 = vrot.slane %v4565_v40, %v4432_v58  ;;  %v1861_v44 = vrot.slane %v4565_v40, %v4435_v62 }
 0x445   :  { %v2478_v23 = vsub.f32 %v2183_v36, %v2430_v42  ;;  %v2480_v1 = vsub.f32 %v2224_v20, %v2432_v38  ;;  %v1857_v42 = vrot.slane %v4565_v40, %v4452_v30  ;;  %v1853_v38 = vrot.slane %v4565_v40, %v4422_v43 }
 0x446   :  { %v2479_v55 = vsub.f32 %v2185_v37, %v2431_v53  ;;  %v2481_v35 = vsub.f32 %v2226_v39, %v2433_v54  ;;  %v3766_v39 = vcombine.high %v4561_v25, %v4561_v25 }
 0x447   :  { %v2502_v9 = vmul.f32 0.5, %v2478_v23  ;;  %v2504_v49 = vmul.f32 0.5, %v2480_v1 }
 0x448   :  { %v2503_v3 = vmul.f32 0.5, %v2479_v55  ;;  %v2505_v56 = vmul.f32 0.5, %v2481_v35 }
 0x449   :  { %v2526_v48 = vmul.f32 %v2502_v9, %v2502_v9  ;;  %v2528_v47 = vmul.f32 %v2504_v49, %v2504_v49 }
 0x44a   :  { %v2527_v60 = vmul.f32 %v2503_v3, %v2503_v3  ;;  %v2529_v61 = vmul.f32 %v2505_v56, %v2505_v56 }
 0x44b   :  { %v2550_v63 = vadd.f32 1e-05, %v2526_v48  ;;  %v2552_v10 = vadd.f32 1e-05, %v2528_v47 }
 0x44c   :  { %v2551_v2 = vadd.f32 1e-05, %v2527_v60  ;;  %v2553_v5 = vadd.f32 1e-05, %v2529_v61 }
 0x44d   :  { %3995 = vrsqrt.f32 %v2550_v63 }
 0x44e   :  { %3997 = vrsqrt.f32 %v2551_v2 }
 0x44f   :  { %3999 = vrsqrt.f32 %v2553_v5 }
 0x450   :  { %4001 = vrsqrt.f32 %v2552_v10 }
 0x457   :  { %v3996_v52 = vpop.eup %3995 }
 0x458   :  { %v2598_v11 = vmul.f32 %v3996_v52, %v2502_v9  ;;  %v3998_v6 = vpop.eup %3997 }
 0x459   :  { %v4000_v12 = vpop.eup %3999  ;;  %v2599_v22 = vmul.f32 %v3998_v6, %v2503_v3 }
 0x45a   :  { %v2622_v8 = vsub.f32 0.0, %v2598_v11  ;;  %v2601_v13 = vmul.f32 %v4000_v12, %v2505_v56  ;;  %v4002_v15 = vpop.eup %4001 }
 0x45b   :  { %v2623_v17 = vsub.f32 0.0, %v2599_v22  ;;  %v2600_v4 = vmul.f32 %v4002_v15, %v2504_v49 }
 0x45c   :  { %v2670_v16 = vrot.slane %v2622_v8, 7  ;;  %v2625_v59 = vsub.f32 0.0, %v2601_v13 }
 0x45d   :  { %v2671_v18 = vrot.slane %v2623_v17, 7  ;;  %v2624_v51 = vsub.f32 0.0, %v2600_v4 }
 0x45e   :  { %v2718_v19 = vsel %vm1378_vm2, %v2598_v11, %v2670_v16  ;;  %v2673_v24 = vrot.slane %v2625_v59, 7 }
 0x45f   :  { %v2719_v27 = vsel %vm1378_vm2, %v2599_v22, %v2671_v18  ;;  %v2743_v32 = vpack.c.bf16 %v2718_v19, %v2718_v19  ;;  %v2672_v36 = vrot.slane %v2624_v51, 7 }
 0x460   :  { %v2744_v29 = vpack.c.bf16 %v2719_v27, %v2719_v27  ;;  %v2721_v31 = vsel %vm1378_vm2, %v2601_v13, %v2673_v24 }
 0x461   :  { %v2746_v21 = vpack.c.bf16 %v2721_v31, %v2721_v31  ;;  %v2720_v20 = vsel %vm1378_vm2, %v2600_v4, %v2672_v36 }
 0x462   :  { %3127 = vmatprep.mubr.bf16.mxu0 %v2744_v29  ;;  %v2745_v37 = vpack.c.bf16 %v2720_v20, %v2720_v20 }
 0x463   :  { %3128 = vmatmul.mubr.bf16.vlgmr.msra.gmra.mrb[76].mxu0 %v2743_v32 }
 0x464   :  { %3167 = vmatprep.mubr.bf16.mxu0 %v2746_v21  ;;  %3136 = vmatpush1.bf16.xpose.msra.mxu0 %v3761_v46 }
 0x465   :  { %3175 = vmatprep.subr.bf16.mxu0 %v3764_v33 }
 0x46f   :  { %3168 = vmatmul.mubr.bf16.vlgmr.msra.gmra.mrb[76].mxu0 %v2745_v37 }
 0x470   :  { %3176 = vmatpush1.bf16.xpose.msra.mxu0 %v3763_v28 }
 0x471   :  { %3215 = vmatprep.subr.bf16.mxu0 %v3766_v39  ;;  %v2765_v39 = vld [vmem:[#allocation7 + $0x50] sm:$0xff] }
 0x480   :  { %v2264_v45 = vpop.f32.mrb[68].mxu0  ;;  %v2305_v53 = vpop.f32.mrb[92].mxu1 }
 0x481   :  { %v2265_v54 = vadd.f32 %v2264_v45, %v1849_v41  ;;  %v2306_v23 = vadd.f32 %v2305_v53, %v1857_v42  ;;  %v2266_v1 = vpop.f32.mrb[69].mxu0  ;;  %v2307_v55 = vpop.f32.mrb[93].mxu1  ;;  %v3768_v45 = vcombine.high %v2765_v39, %v2765_v39 }
 0x482   :  { %v2267_v35 = vadd.f32 %v2266_v1, %v1853_v38  ;;  %v2308_v9 = vadd.f32 %v2307_v55, %v1861_v44  ;;  %v2268_v49 = vpop.f32.mrb[70].mxu0  ;;  %v2309_v3 = vpop.f32.mrb[94].mxu1  ;;  %v3765_v38 = vcombine.low %v4561_v25, %v4561_v25  ;;  %v4581_v55 = vld [vmem:[#allocation7 + $0x58] sm:$0xff]  ;;  %v1865_v25 = vrot.slane %v4565_v40, %v4471_v57 }
 0x483   :  { %v2434_v56 = vrot.slane %v2265_v54, 1  ;;  %v2436_v48 = vrot.slane %v2306_v23, 1  ;;  %v2269_v47 = vpop.f32.mrb[71].mxu0  ;;  %v2310_v60 = vpop.f32.mrb[95].mxu1  ;;  %v3770_v49 = vcombine.high %v4581_v55, %v4581_v55  ;;  %v1873_v3 = vrot.slane %v4565_v40, %v4492_v7 }
 0x484   :  { %v2435_v61 = vrot.slane %v2267_v35, 1  ;;  %v2437_v63 = vrot.slane %v2308_v9, 1 }
 0x485   :  { %v2482_v2 = vsub.f32 %v2265_v54, %v2434_v56  ;;  %v2484_v5 = vsub.f32 %v2306_v23, %v2436_v48  ;;  %v1869_v56 = vrot.slane %v4565_v40, %v4457_v34  ;;  %v1877_v48 = vrot.slane %v4565_v40, %v4476_v50 }
 0x486   :  { %v2483_v10 = vsub.f32 %v2267_v35, %v2435_v61  ;;  %v2485_v52 = vsub.f32 %v2308_v9, %v2437_v63  ;;  %v3767_v35 = vcombine.low %v2765_v39, %v2765_v39 }
 0x487   :  { %v2506_v11 = vmul.f32 0.5, %v2482_v2  ;;  %v2508_v6 = vmul.f32 0.5, %v2484_v5 }
 0x488   :  { %v2507_v12 = vmul.f32 0.5, %v2483_v10  ;;  %v2509_v8 = vmul.f32 0.5, %v2485_v52 }
 0x489   :  { %v2530_v22 = vmul.f32 %v2506_v11, %v2506_v11  ;;  %v2532_v13 = vmul.f32 %v2508_v6, %v2508_v6 }
 0x48a   :  { %v2531_v15 = vmul.f32 %v2507_v12, %v2507_v12  ;;  %v2533_v16 = vmul.f32 %v2509_v8, %v2509_v8 }
 0x48b   :  { %v2554_v17 = vadd.f32 1e-05, %v2530_v22  ;;  %v2556_v19 = vadd.f32 1e-05, %v2532_v13 }
 0x48c   :  { %v2555_v59 = vadd.f32 1e-05, %v2531_v15  ;;  %v2557_v18 = vadd.f32 1e-05, %v2533_v16 }
 0x48d   :  { %4003 = vrsqrt.f32 %v2554_v17 }
 0x48e   :  { %4005 = vrsqrt.f32 %v2555_v59 }
 0x48f   :  { %4007 = vrsqrt.f32 %v2557_v18 }
 0x490   :  { %4009 = vrsqrt.f32 %v2556_v19 }
 0x497   :  { %v4004_v4 = vpop.eup %4003 }
 0x498   :  { %v2602_v24 = vmul.f32 %v4004_v4, %v2506_v11  ;;  %v4006_v26 = vpop.eup %4005 }
 0x499   :  { %v4008_v27 = vpop.eup %4007  ;;  %v2603_v31 = vmul.f32 %v4006_v26, %v2507_v12 }
 0x49a   :  { %v2626_v29 = vsub.f32 0.0, %v2602_v24  ;;  %v2605_v46 = vmul.f32 %v4008_v27, %v2509_v8  ;;  %v4010_v32 = vpop.eup %4009 }
 0x49b   :  { %v2627_v51 = vsub.f32 0.0, %v2603_v31  ;;  %v2604_v28 = vmul.f32 %v4010_v32, %v2508_v6 }
 0x49c   :  { %v2674_v33 = vrot.slane %v2626_v29, 7  ;;  %v2629_v21 = vsub.f32 0.0, %v2605_v46 }
 0x49d   :  { %v2675_v36 = vrot.slane %v2627_v51, 7  ;;  %v2628_v53 = vsub.f32 0.0, %v2604_v28 }
 0x49e   :  { %v2722_v20 = vsel %vm1378_vm2, %v2602_v24, %v2674_v33  ;;  %v2677_v37 = vrot.slane %v2629_v21, 7 }
 0x49f   :  { %v2723_v14 = vsel %vm1378_vm2, %v2603_v31, %v2675_v36  ;;  %v2747_v44 = vpack.c.bf16 %v2722_v20, %v2722_v20  ;;  %v2676_v23 = vrot.slane %v2628_v53, 7 }
 0x4a0   :  { %v2748_v41 = vpack.c.bf16 %v2723_v14, %v2723_v14  ;;  %v2725_v42 = vsel %vm1378_vm2, %v2605_v46, %v2677_v37 }
 0x4a1   :  { %v2750_v54 = vpack.c.bf16 %v2725_v42, %v2725_v42  ;;  %v2724_v1 = vsel %vm1378_vm2, %v2604_v28, %v2676_v23 }
 0x4a2   :  { %3207 = vmatprep.mubr.bf16.mxu0 %v2748_v41  ;;  %v2749_v9 = vpack.c.bf16 %v2724_v1, %v2724_v1 }
 0x4a3   :  { %3208 = vmatmul.mubr.bf16.vlgmr.msra.gmra.mrb[76].mxu0 %v2747_v44 }
 0x4a4   :  { %3247 = vmatprep.mubr.bf16.mxu0 %v2750_v54  ;;  %3216 = vmatpush1.bf16.xpose.msra.mxu0 %v3765_v38 }
 0x4a5   :  { %3255 = vmatprep.subr.bf16.mxu0 %v3768_v45 }
 0x4af   :  { %3248 = vmatmul.mubr.bf16.vlgmr.msra.gmra.mrb[76].mxu0 %v2749_v9 }
 0x4b0   :  { %3256 = vmatpush1.bf16.xpose.msra.mxu0 %v3767_v35 }
 0x4b1   :  { %3295 = vmatprep.subr.bf16.mxu0 %v3770_v49  ;;  %v3769_v49 = vcombine.low %v4581_v55, %v4581_v55 }
 0x4c0   :  { %v2346_v47 = vpop.f32.mrb[72].mxu0  ;;  %v2387_v60 = vpop.f32.mrb[96].mxu1 }
 0x4c1   :  { %v2347_v61 = vadd.f32 %v2346_v47, %v1865_v25  ;;  %v2388_v63 = vadd.f32 %v2387_v60, %v1873_v3  ;;  %v2348_v2 = vpop.f32.mrb[73].mxu0  ;;  %v2389_v5 = vpop.f32.mrb[97].mxu1 }
 0x4c2   :  { %v2349_v10 = vadd.f32 %v2348_v2, %v1869_v56  ;;  %v2390_v52 = vadd.f32 %v2389_v5, %v1877_v48  ;;  %v2350_v11 = vpop.f32.mrb[74].mxu0  ;;  %v2391_v6 = vpop.f32.mrb[98].mxu1 }
 0x4c3   :  { %v2438_v12 = vrot.slane %v2347_v61, 1  ;;  %v2440_v8 = vrot.slane %v2388_v63, 1  ;;  %v2351_v22 = vpop.f32.mrb[75].mxu0  ;;  %v2392_v13 = vpop.f32.mrb[99].mxu1  ;;  %v3439_v6 = vld [vmem:[#allocation9 + $0x10] sm:$0xff] }
 0x4c4   :  { %v2439_v15 = vrot.slane %v2349_v10, 1  ;;  %v2441_v16 = vrot.slane %v2390_v52, 1  ;;  %v4135_v22 = vmov 0.0|0.0   ;;  %v3442_v13 = vld [vmem:[#allocation9 + $0x28] sm:$0xff] }
 0x4c5   :  { %v2486_v17 = vsub.f32 %v2347_v61, %v2438_v12  ;;  %v2488_v59 = vsub.f32 %v2388_v63, %v2440_v8  ;;  %v4601_v63 = vld [vmem:[#allocation9 + $0x8] sm:$0xff]  ;;  %v3440_v12 = vld [vmem:[#allocation9 + $0x18] sm:$0xff]  ;;  %3852 = vmatprep.subr.bf16.mxu1 %v4135_v22 }
 0x4c6   :  { %v2487_v18 = vsub.f32 %v2349_v10, %v2439_v15  ;;  %v2489_v40 = vsub.f32 %v2390_v52, %v2441_v16  ;;  %v2770_v55 = vrot.slane %v4601_v63, %v4476_v50  ;;  %v3853_v8 = vpack.c.bf16 %v3440_v12, %v3439_v6  ;;  %v3441_v50 = vld [vmem:[#allocation9 + $0x20] sm:$0xff]  ;;  %v3443_v16 = vld [vmem:[#allocation9 + $0x30] sm:$0xff] }
 0x4c7   :  { %v2510_v19 = vmul.f32 0.5, %v2486_v17  ;;  %v2512_v4 = vmul.f32 0.5, %v2488_v59  ;;  %v3856_v15 = vpack.c.bf16 %v3442_v13, %v3441_v50  ;;  %v3444_v17 = vld [vmem:[#allocation9 + $0x38] sm:$0xff]  ;;  %v3550_v50 = vrot.slane %v4601_v63, %v4457_v34 }
 0x4c8   :  { %v2511_v24 = vmul.f32 0.5, %v2487_v18  ;;  %v2513_v26 = vmul.f32 0.5, %v2489_v40  ;;  %v3859_v59 = vpack.c.bf16 %v3444_v17, %v3443_v16  ;;  %v3445_v18 = vld [vmem:[#allocation9 + $0x40] sm:$0x3]  ;;  %v3339_v40 = vrot.slane %v4601_v63, %v4432_v58 }
 0x4c9   :  { %v2534_v27 = vmul.f32 %v2510_v19, %v2510_v19  ;;  %v2536_v29 = vmul.f32 %v2512_v4, %v2512_v4  ;;  %v3569_v17 = vrot.slane %v4601_v63, %v4492_v7 }
 0x4ca   :  { %v2535_v31 = vmul.f32 %v2511_v24, %v2511_v24  ;;  %v2537_v46 = vmul.f32 %v2513_v26, %v2513_v26 }
 0x4cb   :  { %v2558_v32 = vadd.f32 1e-05, %v2534_v27  ;;  %v2560_v21 = vadd.f32 1e-05, %v2536_v29 }
 0x4cc   :  { %v2559_v33 = vadd.f32 1e-05, %v2535_v31  ;;  %v2561_v51 = vadd.f32 1e-05, %v2537_v46 }
 0x4cd   :  { %4011 = vrsqrt.f32 %v2558_v32 }
 0x4ce   :  { %4013 = vrsqrt.f32 %v2559_v33 }
 0x4cf   :  { %4015 = vrsqrt.f32 %v2561_v51 }
 0x4d0   :  { %4017 = vrsqrt.f32 %v2560_v21  ;;  %v3431_v21 = vrot.slane %v4601_v63, %v4422_v43  ;;  %v3555_v43 = vld [vmem:[#allocation9 + $0x58] sm:$0xff] }
 0x4d7   :  { %v4012_v36 = vpop.eup %4011 }
 0x4d8   :  { %v2606_v20 = vmul.f32 %v4012_v36, %v2510_v19  ;;  %v4014_v28 = vpop.eup %4013 }
 0x4d9   :  { %v4016_v37 = vpop.eup %4015  ;;  %v2607_v14 = vmul.f32 %v4014_v28, %v2511_v24 }
 0x4da   :  { %v2630_v39 = vsub.f32 0.0, %v2606_v20  ;;  %v2609_v41 = vmul.f32 %v4016_v37, %v2513_v26  ;;  %v4018_v42 = vpop.eup %4017 }
 0x4db   :  { %v2631_v44 = vsub.f32 0.0, %v2607_v14  ;;  %v2608_v23 = vmul.f32 %v4018_v42, %v2512_v4 }
 0x4dc   :  { %v2678_v38 = vrot.slane %v2630_v39, 7  ;;  %v2633_v45 = vsub.f32 0.0, %v2609_v41 }
 0x4dd   :  { %v2679_v53 = vrot.slane %v2631_v44, 7  ;;  %v2632_v56 = vsub.f32 0.0, %v2608_v23 }
 0x4de   :  { %v2726_v54 = vsel %vm1378_vm2, %v2606_v20, %v2678_v38  ;;  %v2681_v1 = vrot.slane %v2633_v45, 7  ;;  %v3436_v20 = vrot.slane %v4601_v63, %v4452_v30  ;;  %v3556_v38 = vld [vmem:[#allocation9 + $0x60] sm:$0xff]  ;;  %v3557_v30 = vld [vmem:[#allocation9 + $0x68] sm:$0xff]  ;;  %v3558_v45 = vld [vmem:[#allocation9 + $0x70] sm:$0xff] }
 0x4df   :  { %v2727_v35 = vsel %vm1378_vm2, %v2607_v14, %v2679_v53  ;;  %v2751_v3 = vpack.c.bf16 %v2726_v54, %v2726_v54  ;;  %v2680_v47 = vrot.slane %v2632_v56, 7  ;;  %v3553_v14 = vld [vmem:[#allocation9 + $0x48] sm:$0xff]  ;;  %v3865_v44 = vpack.c.bf16 %v3556_v38, %v3555_v43  ;;  %v3559_v54 = vld [vmem:[#allocation9 + $0x78] sm:$0xff] }
 0x4e0   :  { %v2752_v9 = vpack.c.bf16 %v2727_v35, %v2727_v35  ;;  %v2729_v25 = vsel %vm1378_vm2, %v2609_v41, %v2681_v1  ;;  %v3554_v41 = vld [vmem:[#allocation9 + $0x50] sm:$0xff]  ;;  %v3868_v53 = vpack.c.bf16 %v3558_v45, %v3557_v30  ;;  %v3561_v35 = vld [vmem:[#allocation9 + $0x88] sm:$0xff] }
 0x4e1   :  { %v2754_v48 = vpack.c.bf16 %v2729_v25, %v2729_v25  ;;  %v2728_v60 = vsel %vm1378_vm2, %v2608_v23, %v2680_v47  ;;  %v3862_v42 = vpack.c.bf16 %v3554_v41, %v3553_v14  ;;  %v3560_v23 = vld [vmem:[#allocation9 + $0x80] sm:$0xff]  ;;  %v3563_v25 = vld [vmem:[#allocation9 + $0x98] sm:$0xff]  ;;  %v3449_v47 = vrot.slane %v4601_v63, %v4435_v62 }
 0x4e2   :  { %3287 = vmatprep.mubr.bf16.mxu0 %v2752_v9  ;;  %v2753_v61 = vpack.c.bf16 %v2728_v60, %v2728_v60  ;;  %v3871_v1 = vpack.c.bf16 %v3560_v23, %v3559_v54  ;;  %v3562_v9 = vld [vmem:[#allocation9 + $0x90] sm:$0xff] }
 0x4e3   :  { %3288 = vmatmul.mubr.bf16.vlgmr.msra.gmra.mrb[76].mxu0 %v2751_v3  ;;  %v3564_v3 = vld [vmem:[#allocation9 + $0xa0] sm:$0xff] }
 0x4e4   :  { %3296 = vmatpush1.bf16.xpose.msra.mxu0 %v3769_v49  ;;  %3327 = vmatprep.mubr.bf16.mxu0 %v2754_v48  ;;  %v3874_v49 = vpack.c.bf16 %v3562_v9, %v3561_v35  ;;  %v3877_v56 = vpack.c.bf16 %v3564_v3, %v3563_v25  ;;  %v3565_v48 = vld [vmem:[#allocation9 + $0xa8] sm:$0xf] }
 0x4ef   :  { %3328 = vmatmul.mubr.bf16.vlgmr.msra.gmra.mrb[76].mxu0 %v2753_v61 }
 0x5c2   :  { %v3329_v2 = vpop.f32.mrb[76].mxu0 }
 0x5c3   :  { %v3881_v5 = vadd.f32 %v3329_v2, %v2770_v55  ;;  %v3331_v10 = vpop.f32.mrb[77].mxu0 }
 0x5c4   :  { %v3332_v52 = vpop.f32.mrb[78].mxu0 }
 0x5c5   :  { %v3333_v11 = vpop.f32.mrb[79].mxu0  ;;  %3804 = vmatmul.mubr.msk.f32.vlgmr.msra.gmra.mrb[100].mxu1 %vm3340_vm4, %v3881_v5 }
 0x5c6   :  { %3820 = vmatprep.mubr.msk.f32.mxu1 %vm4134_vm3, %v4125_v0  ;;  %3854 = vmatpush3.bf16.msra.mxu1 %v3853_v8 }
 0x5c7   :  { %3855 = vmatprep.subr.bf16.mxu1 %v4135_v22 }
 0x5ca   :  { %3857 = vmatpush3.bf16.msra.mxu1 %v3856_v15 }
 0x5cb   :  { %3858 = vmatprep.subr.bf16.mxu1 %v4135_v22 }
 0x5ce   :  { %3860 = vmatpush3.bf16.msra.mxu1 %v3859_v59 }
 0x5cf   :  { %3818 = vmatprep.subr.mxu1 %v4125_v0 }
 0x5d2   :  { %3819 = vmatpush3.msk.msra.mxu1 %vm3454_vm5, %v3445_v18 }
 0x5d3   :  { %3861 = vmatprep.subr.bf16.mxu1 %v4135_v22 }
 0x698   :  { %v3410_v19 = vpop.f32.mrb[100].mxu1 }
 0x699   :  { %v3411_v4 = vadd.f32 %v3410_v19, %v3339_v40  ;;  %v3805_v24 = vpop.f32.mrb[101].mxu1 }
 0x69b   :  { %v3415_v26 = vrot.slane %v3411_v4, 1 }
 0x69d   :  { %v3417_v27 = vsub.f32 %v3411_v4, %v3415_v26 }
 0x69f   :  { %v3418_v29 = vmul.f32 0.5, %v3417_v27 }
 0x6a1   :  { %v3419_v31 = vmul.f32 %v3418_v29, %v3418_v29 }
 0x6a3   :  { %v3420_v46 = vadd.f32 1e-05, %v3419_v31 }
 0x6a5   :  { %4019 = vrsqrt.f32 %v3420_v46 }
 0x6af   :  { %v4020_v32 = vpop.eup %4019 }
 0x6b0   :  { %v3422_v33 = vmul.f32 %v4020_v32, %v3418_v29 }
 0x6b2   :  { %v3423_v51 = vsub.f32 0.0, %v3422_v33 }
 0x6b4   :  { %v3425_v36 = vrot.slane %v3423_v51, 7 }
 0x6b6   :  { %v3427_v58 = vsel %vm1378_vm2, %v3422_v33, %v3425_v36 }
 0x6b7   :  { %v3432_v28 = vmul.f32 %v3431_v21, %v3427_v58 }
 0x6b9   :  { %v3437_v37 = vadd.f32 %v3436_v20, %v3432_v28 }
 0x6bb   :  { %v3438_v39 = vmax.f32 %v3437_v37, 0.0 }
 0x6bd   :  { %3821 = vmatmul.mubr.msk.f32.vlgmr.msra.gmra.mrb[102].mxu1 %vm3450_vm6, %v3438_v39 }
 0x6be   :  { %3849 = vmatprep.mubr.msk.f32.mxu1 %vm4134_vm3, %v4125_v0  ;;  %3863 = vmatpush3.bf16.msra.mxu1 %v3862_v42 }
 0x6bf   :  { %3864 = vmatprep.subr.bf16.mxu1 %v4135_v22 }
 0x6c2   :  { %3866 = vmatpush3.bf16.msra.mxu1 %v3865_v44 }
 0x6c3   :  { %3867 = vmatprep.subr.bf16.mxu1 %v4135_v22 }
 0x6c6   :  { %3869 = vmatpush3.bf16.msra.mxu1 %v3868_v53 }
 0x6c7   :  { %3870 = vmatprep.subr.bf16.mxu1 %v4135_v22 }
 0x6ca   :  { %3872 = vmatpush3.bf16.msra.mxu1 %v3871_v1 }
 0x6cb   :  { %3873 = vmatprep.subr.bf16.mxu1 %v4135_v22 }
 0x6ce   :  { %3875 = vmatpush3.bf16.msra.mxu1 %v3874_v49 }
 0x6cf   :  { %3876 = vmatprep.subr.bf16.mxu1 %v4135_v22 }
 0x6d2   :  { %3878 = vmatpush3.bf16.msra.mxu1 %v3877_v56 }
 0x6d3   :  { %3847 = vmatprep.subr.mxu1 %v4125_v0  ;;  %v3545_v0 = vrot.slane %v4601_v63, %v4471_v57 }
 0x6d6   :  { %3848 = vmatpush3.msk.msra.mxu1 %vm3574_vm7, %v3565_v48 }
 0x790   :  { %v3524_v60 = vpop.f32.mrb[102].mxu1 }
 0x791   :  { %v3525_v61 = vadd.f32 %v3524_v60, %v3449_v47  ;;  %v3822_v55 = vpop.f32.mrb[103].mxu1 }
 0x793   :  { %v3529_v2 = vrot.slane %v3525_v61, 1 }
 0x795   :  { %v3531_v5 = vsub.f32 %v3525_v61, %v3529_v2 }
 0x797   :  { %v3532_v10 = vmul.f32 0.5, %v3531_v5 }
 0x799   :  { %v3533_v52 = vmul.f32 %v3532_v10, %v3532_v10 }
 0x79b   :  { %v3534_v11 = vadd.f32 1e-05, %v3533_v52 }
 0x79d   :  { %4021 = vrsqrt.f32 %v3534_v11 }
 0x7a7   :  { %v4022_v6 = vpop.eup %4021 }
 0x7a8   :  { %v3536_v12 = vmul.f32 %v4022_v6, %v3532_v10 }
 0x7aa   :  { %v3537_v8 = vsub.f32 0.0, %v3536_v12 }
 0x7ac   :  { %v3539_v22 = vrot.slane %v3537_v8, 7 }
 0x7ae   :  { %v3541_v62 = vsel %vm1378_vm2, %v3536_v12, %v3539_v22 }
 0x7af   :  { %v3546_v13 = vmul.f32 %v3545_v0, %v3541_v62 }
 0x7b1   :  { %v3551_v15 = vadd.f32 %v3550_v50, %v3546_v13 }
 0x7b3   :  { %v3552_v16 = vmax.f32 %v3551_v15, 0.0 }
 0x7b5   :  { %3850 = vmatmul.mubr.msk.f32.vlgmr.msra.gmra.mrb[104].mxu1 %vm3570_vm8, %v3552_v16 }
 0x888   :  { %v3644_v59 = vpop.f32.mrb[104].mxu1 }
 0x889   :  { %v3645_v18 = vadd.f32 %v3644_v59, %v3569_v17  ;;  %v3851_v57 = vpop.f32.mrb[105].mxu1 }
 0x88b   :  { %3649 = vst.msk [vmem:[#allocation10] sm:$0x3] %vm3648_vm9, %v3645_v18 }
 0x88c   :  { %4100 = shalt.err (!%p4097_p0)
}
 0x88d   :  { %s4101_s25 = scalar_lea.hbm %s4653_s5, 32 }
 0x88e   :  { %p4102_p1 = scmp.ne.s32.totalorder %s4653_s5, %s4101_s25  ;;  %p4105_p2 = scmp.lt.u32.totalorder %s4101_s25, %s4653_s5 }
 0x890   :  { %p4107_p3 = pnand %p4105_p2, %p4102_p1 }
 0x892   :  { %4110 = shalt.err (!%p4107_p3)
}
 0x893   :  { %3659 = dma.vmem_to_hbm [thread:$0]  %s3657_s4, 32, %s4653_s5, [#allocation6]  }
 0x894   :  { %4117 = dma.done.wait [#allocation6], 32  }
 0x895   :  { %4118 = vsyncadd [#allocation6], 4294967264 }
 0x896   :  { %3663 = vsyncpa [#allocation5], 1 }
 0x897   :  { %3664 = vsyncpa [#allocation8], 1 }
 0x898   :  { %3665 = vsyncpa [#allocation6], 1 }
 0x899   :  { %3666 = vsyncmov [#allocation3] }
 0x89c   :  { %s3667_s30 = vpop.sfrf %3666 }
 0x89d   :  { %p3776_p4 = scmp.ne.s32.totalorder %s3667_s30, 0 }
 0x89f   :  { %3671 = shalt.err (%p3776_p4)  }

</bundles_post_ra>
